<compile_context>
chip_gen: v7x
topology: tpu7x:2x2x1
jax: 0.10.0
libtpu: 0.0.40
codegen_flags: <defaults>
</compile_context>

<pallas_src>
import functools

import numpy as np
import jax
import jax.numpy as jnp
from jax.experimental import pallas as pl
from jax.experimental.pallas import tpu as pltpu


# 32 MiB scoped VMEM: safe on v5e/v6e/v7x (v7x has only 64 MiB physical VMEM).
# On v6e with large batch this (and the 512-row tile cap) can be raised.
_VMEM_LIMIT = 32 * 1024 * 1024
_MAX_TILE_ROWS = 512


def _round_up(x, m):
    return (x + m - 1) // m * m


def _pick_tile(rows, cap=_MAX_TILE_ROWS):
    """Row tile: multiple of 8, <= cap, >= 2 grid steps when rows allow (v7x megacore)."""
    rows8 = _round_up(max(rows, 8), 8)
    min_steps = 2 if rows8 >= 16 else 1
    steps = max(min_steps, pl.cdiv(rows8, cap))
    tile = _round_up(pl.cdiv(rows8, steps), 8)
    rows_pad = _round_up(rows8, tile)
    return tile, rows_pad


# ----------------------------- Pallas kernels ------------------------------

def _conv_bn_relu_pool_kernel(x_ref, w_ref, scale_ref, shift_ref, o_ref):
    """Fused conv-as-matmul + BN + ReLU + 2x2 maxpool, single MXU pass.

    x_ref: (4, TP, K) im2col patches (leading axis = 2x2 pool-window position),
    w_ref: (K, C) bf16, scale/shift: (1, C) f32, o_ref: (TP, C) bf16 pooled rows.
    """
    tp = o_ref.shape[0]
    # One dot over all four pool taps (sublane-aligned concat, no relayout).
    x = jnp.concatenate([x_ref[0], x_ref[1], x_ref[2], x_ref[3]], axis=0)   # (4*tp, K)
    y = jnp.dot(x, w_ref[...], preferred_element_type=jnp.float32)          # (4*tp, C)
    y = jnp.maximum(y * scale_ref[...] + shift_ref[...], 0.0)               # BN + ReLU per tap
    y = jnp.maximum(jnp.maximum(y[0:tp], y[tp:2 * tp]),                     # 2x2 max-pool
                    jnp.maximum(y[2 * tp:3 * tp], y[3 * tp:4 * tp]))
    o_ref[...] = y.astype(o_ref.dtype)


def conv_bn_relu_pool(patches4, w_mat, scale, shift):
    """patches4: (4, P, K) bf16; returns pooled activations (P, C) in bf16."""
    _, P, K = patches4.shape
    C = w_mat.shape[1]
    tp, P_pad = _pick_tile(P)
    if P_pad != P:
        patches4 = jnp.pad(patches4, ((0, 0), (0, P_pad - P), (0, 0)))
    out = pl.pallas_call(
        _conv_bn_relu_pool_kernel,
        out_shape=jax.ShapeDtypeStruct((P_pad, C), jnp.bfloat16),
        grid=(P_pad // tp,),
        in_specs=[
            pl.BlockSpec((4, tp, K), lambda i: (0, i, 0)),
            pl.BlockSpec((K, C), lambda i: (0, 0)),
            pl.BlockSpec((1, C), lambda i: (0, 0)),
            pl.BlockSpec((1, C), lambda i: (0, 0)),
        ],
        out_specs=pl.BlockSpec((tp, C), lambda i: (i, 0)),
        compiler_params=pltpu.CompilerParams(
            dimension_semantics=("parallel",),
            vmem_limit_bytes=_VMEM_LIMIT),
    )(patches4.astype(jnp.bfloat16), w_mat,
      scale.reshape(1, C).astype(jnp.float32),
      shift.reshape(1, C).astype(jnp.float32))
    return out[:P] if P_pad != P else out


def _mlp_kernel(x_ref, w1_ref, b1_ref, w2_ref, b2_ref, o_ref):
    """Fused fc1 + ReLU + (eval Dropout) + fc2; fc1 activation stays in VMEM."""
    h = jnp.dot(x_ref[...], w1_ref[...], preferred_element_type=jnp.float32)
    h = jnp.maximum(h + b1_ref[...], 0.0)
    # TODO(synk): Dropout(0.5) implemented as eval-mode identity (no PRNG mask).
    y = jnp.dot(h.astype(jnp.bfloat16), w2_ref[...],
                preferred_element_type=jnp.float32)
    o_ref[...] = (y + b2_ref[...]).astype(o_ref.dtype)


def mlp(x, w1, b1, w2, b2):
    """out = (relu(x @ w1 + b1)) @ w2 + b2; M-tiled, weights resident, bf16 MXU."""
    M, K = x.shape
    N1 = w1.shape[1]
    N2 = w2.shape[1]
    tm, M_pad = _pick_tile(M)
    if M_pad != M:
        x = jnp.pad(x, ((0, M_pad - M), (0, 0)))
    out = pl.pallas_call(
        _mlp_kernel,
        out_shape=jax.ShapeDtypeStruct((M_pad, N2), jnp.float32),
        grid=(M_pad // tm,),
        in_specs=[
            pl.BlockSpec((tm, K), lambda i: (i, 0)),
            pl.BlockSpec((K, N1), lambda i: (0, 0)),
            pl.BlockSpec((1, N1), lambda i: (0, 0)),
            pl.BlockSpec((N1, N2), lambda i: (0, 0)),
            pl.BlockSpec((1, N2), lambda i: (0, 0)),
        ],
        out_specs=pl.BlockSpec((tm, N2), lambda i: (i, 0)),
        compiler_params=pltpu.CompilerParams(
            dimension_semantics=("parallel",),
            vmem_limit_bytes=_VMEM_LIMIT),
    )(x.astype(jnp.bfloat16), w1, b1.reshape(1, N1).astype(jnp.float32),
      w2, b2.reshape(1, N2).astype(jnp.float32))
    return out[:M] if M_pad != M else out


# ------------------------------- JAX glue -----------------------------------

def im2col_pool_order(x_nhwc, pad):
    """3x3/stride-1 patches, feature order (kh, kw, cin); rows regrouped so the four
    2x2 maxpool window positions form the leading axis: (4, N*Ho/2*Wo/2, 9C).
    NOTE: assumes even conv output dims (true for 28x28 pad=1 and 14x14 pad=2)."""
    N, H, W, C = x_nhwc.shape
    xp = jnp.pad(x_nhwc, ((0, 0), (pad, pad), (pad, pad), (0, 0)))
    Ho = H + 2 * pad - 2
    Wo = W + 2 * pad - 2
    cols = [xp[:, dh:dh + Ho, dw:dw + Wo, :] for dh in range(3) for dw in range(3)]
    patches = jnp.concatenate(cols, axis=-1)                   # (N, Ho, Wo, 9C)
    Hp, Wp = Ho // 2, Wo // 2
    patches = patches.reshape(N, Hp, 2, Wp, 2, 9 * C)
    patches = patches.transpose(2, 4, 0, 1, 3, 5)               # (ph, pw, N, Hp, Wp, 9C)
    patches = patches.reshape(4, N * Hp * Wp, 9 * C)
    return patches.astype(jnp.bfloat16), (N, Hp, Wp)


def conv_weight_to_matrix(w_oihw):
    # PyTorch conv weight (Cout, Cin, KH, KW) -> (KH*KW*Cin, Cout)
    return jnp.transpose(w_oihw, (2, 3, 1, 0)).reshape(-1, w_oihw.shape[0])


def fold_bn(gamma, beta, mean, var, conv_bias, eps=1e-5):
    s = gamma / jnp.sqrt(var + eps)
    t = beta + (conv_bias - mean) * s
    return s, t


# ------------------------------ Parameters ----------------------------------

def _uniform(key, shape, fan_in):
    bound = 1.0 / np.sqrt(fan_in)
    return jax.random.uniform(key, shape, jnp.float32, -bound, bound)


def init_params(key):
    ks = jax.random.split(key, 8)
    p = {}
    p["conv1_w"] = _uniform(ks[0], (8, 1, 3, 3), 1 * 9)
    p["conv1_b"] = _uniform(ks[1], (8,), 1 * 9)
    p["conv2_w"] = _uniform(ks[2], (32, 8, 3, 3), 8 * 9)
    p["conv2_b"] = _uniform(ks[3], (32,), 8 * 9)
    p["fc1_w"] = _uniform(ks[4], (600, 32 * 8 * 8), 32 * 8 * 8)
    p["fc1_b"] = _uniform(ks[5], (600,), 32 * 8 * 8)
    p["fc2_w"] = _uniform(ks[6], (10, 600), 600)
    p["fc2_b"] = _uniform(ks[7], (10,), 600)
    # BatchNorm2d default init (eval-mode running stats)
    p["bn1_gamma"] = jnp.ones((8,), jnp.float32)
    p["bn1_beta"] = jnp.zeros((8,), jnp.float32)
    p["bn1_mean"] = jnp.zeros((8,), jnp.float32)
    p["bn1_var"] = jnp.ones((8,), jnp.float32)
    p["bn2_gamma"] = jnp.ones((32,), jnp.float32)
    p["bn2_beta"] = jnp.zeros((32,), jnp.float32)
    p["bn2_mean"] = jnp.zeros((32,), jnp.float32)
    p["bn2_var"] = jnp.ones((32,), jnp.float32)
    return p


def prepare_params(p):
    """One-time prep: matmul-ready (K,N) bf16 weights, folded BN, lane-padded fc."""
    q = {}
    q["conv1_wm"] = conv_weight_to_matrix(p["conv1_w"]).astype(jnp.bfloat16)
    q["conv2_wm"] = conv_weight_to_matrix(p["conv2_w"]).astype(jnp.bfloat16)
    q["bn1_scale"], q["bn1_shift"] = fold_bn(
        p["bn1_gamma"], p["bn1_beta"], p["bn1_mean"], p["bn1_var"], p["conv1_b"])
    q["bn2_scale"], q["bn2_shift"] = fold_bn(
        p["bn2_gamma"], p["bn2_beta"], p["bn2_mean"], p["bn2_var"], p["conv2_b"])
    # fc1: permute the input dim from PyTorch's (c, h, w) flatten order to the NHWC
    # (h, w, c) order so the stage-2 output feeds it with a contiguous reshape (no
    # NCHW transpose copy), then transpose to (K, N) and pad 600 -> 640 lanes.
    fc1_w = p["fc1_w"].reshape(600, 32, 8, 8)                   # (out, c, h, w)
    fc1_w = jnp.transpose(fc1_w, (0, 2, 3, 1)).reshape(600, 2048)  # (out, h*w*c)
    fc1_w = jnp.transpose(fc1_w)                                # (2048, 600)
    q["fc1_wm"] = jnp.pad(fc1_w, ((0, 0), (0, 40))).astype(jnp.bfloat16)   # (2048, 640)
    q["fc1_bm"] = jnp.pad(p["fc1_b"], (0, 40))
    # fc2: (10, 600) -> (640, 128); zero rows absorb the padded fc1 lanes, zero cols
    # (and zero bias) make the MXU N-tile and the final stores lane-dense.
    fc2_w = jnp.transpose(p["fc2_w"])                           # (600, 10)
    q["fc2_wm"] = jnp.pad(fc2_w, ((0, 40), (0, 118))).astype(jnp.bfloat16)  # (640, 128)
    q["fc2_bm"] = jnp.pad(p["fc2_b"], (0, 118))
    return q


# ------------------------------- Forward ------------------------------------

def cnn_forward(x_nchw, p):
    N = x_nchw.shape[0]
    x = jnp.transpose(x_nchw, (0, 2, 3, 1))                     # NCHW -> NHWC

    # Stage 1: conv1(1->8,k3,p1) + bn1 + relu + maxpool(2) -- one fused kernel.
    patches, (_, Hp, Wp) = im2col_pool_order(x, pad=1)           # (4, N*14*14, 9)
    y = conv_bn_relu_pool(patches, p["conv1_wm"], p["bn1_scale"], p["bn1_shift"])
    y = y.reshape(N, Hp, Wp, 8)                                  # (N,14,14,8) bf16

    # Stage 2: conv2(8->32,k3,p2) + bn2 + relu + maxpool(2) -- one fused kernel.
    # TODO(synk): patch construction (9x expansion) still happens XLA-side; an
    # in-kernel im2col would cut stage-2 input HBM bytes ~9x for large batch.
    patches, _ = im2col_pool_order(y, pad=2)                     # (4, N*8*8, 72)
    y = conv_bn_relu_pool(patches, p["conv2_wm"], p["bn2_scale"], p["bn2_shift"])

    # Flatten in (h, w, c) order (fc1 weights are pre-permuted to match), so this is
    # a contiguous reshape -- functionally identical to PyTorch's .view(-1, 2048).
    y = y.reshape(N, 32 * 8 * 8)                                 # (N, 2048) bf16

    # Fused fc1 + ReLU + (eval Dropout) + fc2; output lanes padded to 128.
    y = mlp(y, p["fc1_wm"], p["fc1_bm"], p["fc2_wm"], p["fc2_bm"])  # (N, 128) f32
    return y[:, :10]


if __name__ == "__main__":
    raw_params = init_params(jax.random.PRNGKey(42))
    params = prepare_params(raw_params)
    x = jax.random.normal(jax.random.PRNGKey(0), (2, 1, 28, 28), dtype=jnp.float32)

    fwd = jax.jit(lambda xx: cnn_forward(xx, params))
    out = jax.block_until_ready(fwd(x))

    assert out.shape == (2, 10) and out.dtype == jnp.float32
    assert bool(jnp.all(jnp.isfinite(out)))
    print("KERNEL_OK")
</pallas_src>

<mosaic_0001>
module attributes {stable_mosaic.version = 11 : i64} {
  func.func @_conv_bn_relu_pool_kernel(%arg0: i32, %arg1: memref<4x200x9xbf16, #tpu.memory_space<vmem>>, %arg2: memref<9x8xbf16, #tpu.memory_space<vmem>>, %arg3: memref<1x8xf32, #tpu.memory_space<vmem>>, %arg4: memref<1x8xf32, #tpu.memory_space<vmem>>, %arg5: memref<200x8xbf16, #tpu.memory_space<vmem>>) attributes {dimension_semantics = [#tpu.dimension_semantics<parallel>], iteration_bounds = array<i64: 2>, scalar_prefetch = 0 : i64, scratch_operands = 0 : i64, tpu.core_type = #tpu.core_type<tc>, window_params = [{transform_indices = @transform_0, window_bounds = array<i64: 4, 200, 9>}, {pipeline_mode = #tpu.pipeline_mode<synchronous>, transform_indices = @transform_1, window_bounds = array<i64: 9, 8>}, {pipeline_mode = #tpu.pipeline_mode<synchronous>, transform_indices = @transform_2, window_bounds = array<i64: 1, 8>}, {pipeline_mode = #tpu.pipeline_mode<synchronous>, transform_indices = @transform_3, window_bounds = array<i64: 1, 8>}, {transform_indices = @transform_4, window_bounds = array<i64: 200, 8>}]} {
    %c0 = arith.constant 0 : index
    %c0_0 = arith.constant 0 : index
    %c0_1 = arith.constant 0 : index
    %0 = vector.load %arg1[%c0, %c0_0, %c0_1] : memref<4x200x9xbf16, #tpu.memory_space<vmem>>, vector<1x200x9xbf16>
    %1 = vector.shape_cast %0 : vector<1x200x9xbf16> to vector<200x9xbf16>
    %c1 = arith.constant 1 : index
    %c0_2 = arith.constant 0 : index
    %c0_3 = arith.constant 0 : index
    %2 = vector.load %arg1[%c1, %c0_2, %c0_3] : memref<4x200x9xbf16, #tpu.memory_space<vmem>>, vector<1x200x9xbf16>
    %3 = vector.shape_cast %2 : vector<1x200x9xbf16> to vector<200x9xbf16>
    %c2 = arith.constant 2 : index
    %c0_4 = arith.constant 0 : index
    %c0_5 = arith.constant 0 : index
    %4 = vector.load %arg1[%c2, %c0_4, %c0_5] : memref<4x200x9xbf16, #tpu.memory_space<vmem>>, vector<1x200x9xbf16>
    %5 = vector.shape_cast %4 : vector<1x200x9xbf16> to vector<200x9xbf16>
    %c3 = arith.constant 3 : index
    %c0_6 = arith.constant 0 : index
    %c0_7 = arith.constant 0 : index
    %6 = vector.load %arg1[%c3, %c0_6, %c0_7] : memref<4x200x9xbf16, #tpu.memory_space<vmem>>, vector<1x200x9xbf16>
    %7 = vector.shape_cast %6 : vector<1x200x9xbf16> to vector<200x9xbf16>
    %8 = tpu.concatenate %1, %3, %5, %7 in 0 : vector<200x9xbf16>, vector<200x9xbf16>, vector<200x9xbf16>, vector<200x9xbf16> -> vector<800x9xbf16>
    %c0_8 = arith.constant 0 : index
    %c0_9 = arith.constant 0 : index
    %9 = vector.load %arg2[%c0_8, %c0_9] : memref<9x8xbf16, #tpu.memory_space<vmem>>, vector<9x8xbf16>
    %cst = arith.constant dense<0.000000e+00> : vector<800x8xf32>
    %10 = tpu.matmul %8, %9, %cst {dimension_numbers = #tpu.dot_dimension_numbers<[1], [0], [0], [1], [0, 0, 1, 1], [], []>} : vector<800x9xbf16>, vector<9x8xbf16>, vector<800x8xf32> -> vector<800x8xf32>
    %c0_10 = arith.constant 0 : index
    %c0_11 = arith.constant 0 : index
    %11 = vector.load %arg3[%c0_10, %c0_11] : memref<1x8xf32, #tpu.memory_space<vmem>>, vector<1x8xf32>
    %12 = vector.broadcast %11 : vector<1x8xf32> to vector<800x8xf32>
    %13 = arith.mulf %10, %12 : vector<800x8xf32>
    %c0_12 = arith.constant 0 : index
    %c0_13 = arith.constant 0 : index
    %14 = vector.load %arg4[%c0_12, %c0_13] : memref<1x8xf32, #tpu.memory_space<vmem>>, vector<1x8xf32>
    %15 = vector.broadcast %14 : vector<1x8xf32> to vector<800x8xf32>
    %16 = arith.addf %13, %15 : vector<800x8xf32>
    %cst_14 = arith.constant 0.000000e+00 : f32
    %17 = vector.broadcast %cst_14 : f32 to vector<800x8xf32>
    %18 = arith.maximumf %16, %17 : vector<800x8xf32>
    %19 = vector.extract_strided_slice %18 {offsets = [0, 0], sizes = [200, 8], strides = [1, 1]} : vector<800x8xf32> to vector<200x8xf32>
    %20 = vector.extract_strided_slice %18 {offsets = [200, 0], sizes = [200, 8], strides = [1, 1]} : vector<800x8xf32> to vector<200x8xf32>
    %21 = arith.maximumf %19, %20 : vector<200x8xf32>
    %22 = vector.extract_strided_slice %18 {offsets = [400, 0], sizes = [200, 8], strides = [1, 1]} : vector<800x8xf32> to vector<200x8xf32>
    %23 = vector.extract_strided_slice %18 {offsets = [600, 0], sizes = [200, 8], strides = [1, 1]} : vector<800x8xf32> to vector<200x8xf32>
    %24 = arith.maximumf %22, %23 : vector<200x8xf32>
    %25 = arith.maximumf %21, %24 : vector<200x8xf32>
    %26 = arith.truncf %25 : vector<200x8xf32> to vector<200x8xbf16>
    %c0_15 = arith.constant 0 : index
    %c0_16 = arith.constant 0 : index
    %27 = vector.load %arg5[%c0_15, %c0_16] : memref<200x8xbf16, #tpu.memory_space<vmem>>, vector<200x8xbf16>
    tpu.vector_store %arg5[%c0_15, %c0_16], %26 {strides = array<i32>} : memref<200x8xbf16, #tpu.memory_space<vmem>>, vector<200x8xbf16>,
    return
  }
  func.func @transform_0(%arg0: i32) -> (i32, i32, i32) {
    %c0_i32 = arith.constant 0 : i32
    %c0_i32_0 = arith.constant 0 : i32
    %c0_i32_1 = arith.constant 0 : i32
    return %c0_i32, %arg0, %c0_i32_0 : i32, i32, i32
  }
  func.func @transform_1(%arg0: i32) -> (i32, i32) {
    %c0_i32 = arith.constant 0 : i32
    %c0_i32_0 = arith.constant 0 : i32
    %c0_i32_1 = arith.constant 0 : i32
    return %c0_i32, %c0_i32_0 : i32, i32
  }
  func.func @transform_2(%arg0: i32) -> (i32, i32) {
    %c0_i32 = arith.constant 0 : i32
    %c0_i32_0 = arith.constant 0 : i32
    %c0_i32_1 = arith.constant 0 : i32
    return %c0_i32, %c0_i32_0 : i32, i32
  }
  func.func @transform_3(%arg0: i32) -> (i32, i32) {
    %c0_i32 = arith.constant 0 : i32
    %c0_i32_0 = arith.constant 0 : i32
    %c0_i32_1 = arith.constant 0 : i32
    return %c0_i32, %c0_i32_0 : i32, i32
  }
  func.func @transform_4(%arg0: i32) -> (i32, i32) {
    %c0_i32 = arith.constant 0 : i32
    %c0_i32_0 = arith.constant 0 : i32
    return %arg0, %c0_i32 : i32, i32
  }
}

module attributes {stable_mosaic.version = 11 : i64} {
  func.func @_conv_bn_relu_pool_kernel(%arg0: i32, %arg1: memref<4x64x72xbf16, #tpu.memory_space<vmem>>, %arg2: memref<72x32xbf16, #tpu.memory_space<vmem>>, %arg3: memref<1x32xf32, #tpu.memory_space<vmem>>, %arg4: memref<1x32xf32, #tpu.memory_space<vmem>>, %arg5: memref<64x32xbf16, #tpu.memory_space<vmem>>) attributes {dimension_semantics = [#tpu.dimension_semantics<parallel>], iteration_bounds = array<i64: 2>, scalar_prefetch = 0 : i64, scratch_operands = 0 : i64, tpu.core_type = #tpu.core_type<tc>, window_params = [{transform_indices = @transform_0, window_bounds = array<i64: 4, 64, 72>}, {pipeline_mode = #tpu.pipeline_mode<synchronous>, transform_indices = @transform_1, window_bounds = array<i64: 72, 32>}, {pipeline_mode = #tpu.pipeline_mode<synchronous>, transform_indices = @transform_2, window_bounds = array<i64: 1, 32>}, {pipeline_mode = #tpu.pipeline_mode<synchronous>, transform_indices = @transform_3, window_bounds = array<i64: 1, 32>}, {transform_indices = @transform_4, window_bounds = array<i64: 64, 32>}]} {
    %c0 = arith.constant 0 : index
    %c0_0 = arith.constant 0 : index
    %c0_1 = arith.constant 0 : index
    %0 = vector.load %arg1[%c0, %c0_0, %c0_1] : memref<4x64x72xbf16, #tpu.memory_space<vmem>>, vector<1x64x72xbf16>
    %1 = vector.shape_cast %0 : vector<1x64x72xbf16> to vector<64x72xbf16>
    %c1 = arith.constant 1 : index
    %c0_2 = arith.constant 0 : index
    %c0_3 = arith.constant 0 : index
    %2 = vector.load %arg1[%c1, %c0_2, %c0_3] : memref<4x64x72xbf16, #tpu.memory_space<vmem>>, vector<1x64x72xbf16>
    %3 = vector.shape_cast %2 : vector<1x64x72xbf16> to vector<64x72xbf16>
    %c2 = arith.constant 2 : index
    %c0_4 = arith.constant 0 : index
    %c0_5 = arith.constant 0 : index
    %4 = vector.load %arg1[%c2, %c0_4, %c0_5] : memref<4x64x72xbf16, #tpu.memory_space<vmem>>, vector<1x64x72xbf16>
    %5 = vector.shape_cast %4 : vector<1x64x72xbf16> to vector<64x72xbf16>
    %c3 = arith.constant 3 : index
    %c0_6 = arith.constant 0 : index
    %c0_7 = arith.constant 0 : index
    %6 = vector.load %arg1[%c3, %c0_6, %c0_7] : memref<4x64x72xbf16, #tpu.memory_space<vmem>>, vector<1x64x72xbf16>
    %7 = vector.shape_cast %6 : vector<1x64x72xbf16> to vector<64x72xbf16>
    %8 = tpu.concatenate %1, %3, %5, %7 in 0 : vector<64x72xbf16>, vector<64x72xbf16>, vector<64x72xbf16>, vector<64x72xbf16> -> vector<256x72xbf16>
    %c0_8 = arith.constant 0 : index
    %c0_9 = arith.constant 0 : index
    %9 = vector.load %arg2[%c0_8, %c0_9] : memref<72x32xbf16, #tpu.memory_space<vmem>>, vector<72x32xbf16>
    %cst = arith.constant dense<0.000000e+00> : vector<256x32xf32>
    %10 = tpu.matmul %8, %9, %cst {dimension_numbers = #tpu.dot_dimension_numbers<[1], [0], [0], [1], [0, 0, 1, 1], [], []>} : vector<256x72xbf16>, vector<72x32xbf16>, vector<256x32xf32> -> vector<256x32xf32>
    %c0_10 = arith.constant 0 : index
    %c0_11 = arith.constant 0 : index
    %11 = vector.load %arg3[%c0_10, %c0_11] : memref<1x32xf32, #tpu.memory_space<vmem>>, vector<1x32xf32>
    %12 = vector.broadcast %11 : vector<1x32xf32> to vector<256x32xf32>
    %13 = arith.mulf %10, %12 : vector<256x32xf32>
    %c0_12 = arith.constant 0 : index
    %c0_13 = arith.constant 0 : index
    %14 = vector.load %arg4[%c0_12, %c0_13] : memref<1x32xf32, #tpu.memory_space<vmem>>, vector<1x32xf32>
    %15 = vector.broadcast %14 : vector<1x32xf32> to vector<256x32xf32>
    %16 = arith.addf %13, %15 : vector<256x32xf32>
    %cst_14 = arith.constant 0.000000e+00 : f32
    %17 = vector.broadcast %cst_14 : f32 to vector<256x32xf32>
    %18 = arith.maximumf %16, %17 : vector<256x32xf32>
    %19 = vector.extract_strided_slice %18 {offsets = [0, 0], sizes = [64, 32], strides = [1, 1]} : vector<256x32xf32> to vector<64x32xf32>
    %20 = vector.extract_strided_slice %18 {offsets = [64, 0], sizes = [64, 32], strides = [1, 1]} : vector<256x32xf32> to vector<64x32xf32>
    %21 = arith.maximumf %19, %20 : vector<64x32xf32>
    %22 = vector.extract_strided_slice %18 {offsets = [128, 0], sizes = [64, 32], strides = [1, 1]} : vector<256x32xf32> to vector<64x32xf32>
    %23 = vector.extract_strided_slice %18 {offsets = [192, 0], sizes = [64, 32], strides = [1, 1]} : vector<256x32xf32> to vector<64x32xf32>
    %24 = arith.maximumf %22, %23 : vector<64x32xf32>
    %25 = arith.maximumf %21, %24 : vector<64x32xf32>
    %26 = arith.truncf %25 : vector<64x32xf32> to vector<64x32xbf16>
    %c0_15 = arith.constant 0 : index
    %c0_16 = arith.constant 0 : index
    %27 = vector.load %arg5[%c0_15, %c0_16] : memref<64x32xbf16, #tpu.memory_space<vmem>>, vector<64x32xbf16>
    tpu.vector_store %arg5[%c0_15, %c0_16], %26 {strides = array<i32>} : memref<64x32xbf16, #tpu.memory_space<vmem>>, vector<64x32xbf16>,
    return
  }
  func.func @transform_0(%arg0: i32) -> (i32, i32, i32) {
    %c0_i32 = arith.constant 0 : i32
    %c0_i32_0 = arith.constant 0 : i32
    %c0_i32_1 = arith.constant 0 : i32
    return %c0_i32, %arg0, %c0_i32_0 : i32, i32, i32
  }
  func.func @transform_1(%arg0: i32) -> (i32, i32) {
    %c0_i32 = arith.constant 0 : i32
    %c0_i32_0 = arith.constant 0 : i32
    %c0_i32_1 = arith.constant 0 : i32
    return %c0_i32, %c0_i32_0 : i32, i32
  }
  func.func @transform_2(%arg0: i32) -> (i32, i32) {
    %c0_i32 = arith.constant 0 : i32
    %c0_i32_0 = arith.constant 0 : i32
    %c0_i32_1 = arith.constant 0 : i32
    return %c0_i32, %c0_i32_0 : i32, i32
  }
  func.func @transform_3(%arg0: i32) -> (i32, i32) {
    %c0_i32 = arith.constant 0 : i32
    %c0_i32_0 = arith.constant 0 : i32
    %c0_i32_1 = arith.constant 0 : i32
    return %c0_i32, %c0_i32_0 : i32, i32
  }
  func.func @transform_4(%arg0: i32) -> (i32, i32) {
    %c0_i32 = arith.constant 0 : i32
    %c0_i32_0 = arith.constant 0 : i32
    return %arg0, %c0_i32 : i32, i32
  }
}

module attributes {stable_mosaic.version = 11 : i64} {
  func.func @_mlp_kernel(%arg0: i32, %arg1: memref<8x2048xbf16, #tpu.memory_space<vmem>>, %arg2: memref<2048x640xbf16, #tpu.memory_space<vmem>>, %arg3: memref<1x640xf32, #tpu.memory_space<vmem>>, %arg4: memref<640x128xbf16, #tpu.memory_space<vmem>>, %arg5: memref<1x128xf32, #tpu.memory_space<vmem>>, %arg6: memref<8x128xf32, #tpu.memory_space<vmem>>) attributes {dimension_semantics = [#tpu.dimension_semantics<parallel>], iteration_bounds = array<i64: 1>, scalar_prefetch = 0 : i64, scratch_operands = 0 : i64, tpu.core_type = #tpu.core_type<tc>, window_params = [{transform_indices = @transform_0, window_bounds = array<i64: 8, 2048>}, {pipeline_mode = #tpu.pipeline_mode<synchronous>, transform_indices = @transform_1, window_bounds = array<i64: 2048, 640>}, {pipeline_mode = #tpu.pipeline_mode<synchronous>, transform_indices = @transform_2, window_bounds = array<i64: 1, 640>}, {pipeline_mode = #tpu.pipeline_mode<synchronous>, transform_indices = @transform_3, window_bounds = array<i64: 640, 128>}, {pipeline_mode = #tpu.pipeline_mode<synchronous>, transform_indices = @transform_4, window_bounds = array<i64: 1, 128>}, {transform_indices = @transform_5, window_bounds = array<i64: 8, 128>}]} {
    %c0 = arith.constant 0 : index
    %c0_0 = arith.constant 0 : index
    %0 = vector.load %arg1[%c0, %c0_0] : memref<8x2048xbf16, #tpu.memory_space<vmem>>, vector<8x2048xbf16>
    %c0_1 = arith.constant 0 : index
    %c0_2 = arith.constant 0 : index
    %1 = vector.load %arg2[%c0_1, %c0_2] : memref<2048x640xbf16, #tpu.memory_space<vmem>>, vector<2048x640xbf16>
    %cst = arith.constant dense<0.000000e+00> : vector<8x640xf32>
    %2 = tpu.matmul %0, %1, %cst {dimension_numbers = #tpu.dot_dimension_numbers<[1], [0], [0], [1], [0, 0, 1, 1], [], []>} : vector<8x2048xbf16>, vector<2048x640xbf16>, vector<8x640xf32> -> vector<8x640xf32>
    %c0_3 = arith.constant 0 : index
    %c0_4 = arith.constant 0 : index
    %3 = vector.load %arg3[%c0_3, %c0_4] : memref<1x640xf32, #tpu.memory_space<vmem>>, vector<1x640xf32>
    %4 = vector.broadcast %3 : vector<1x640xf32> to vector<8x640xf32>
    %5 = arith.addf %2, %4 : vector<8x640xf32>
    %cst_5 = arith.constant 0.000000e+00 : f32
    %6 = vector.broadcast %cst_5 : f32 to vector<8x640xf32>
    %7 = arith.maximumf %5, %6 : vector<8x640xf32>
    %8 = arith.truncf %7 : vector<8x640xf32> to vector<8x640xbf16>
    %c0_6 = arith.constant 0 : index
    %c0_7 = arith.constant 0 : index
    %9 = vector.load %arg4[%c0_6, %c0_7] : memref<640x128xbf16, #tpu.memory_space<vmem>>, vector<640x128xbf16>
    %cst_8 = arith.constant dense<0.000000e+00> : vector<8x128xf32>
    %10 = tpu.matmul %8, %9, %cst_8 {dimension_numbers = #tpu.dot_dimension_numbers<[1], [0], [0], [1], [0, 0, 1, 1], [], []>} : vector<8x640xbf16>, vector<640x128xbf16>, vector<8x128xf32> -> vector<8x128xf32>
    %c0_9 = arith.constant 0 : index
    %c0_10 = arith.constant 0 : index
    %11 = vector.load %arg5[%c0_9, %c0_10] : memref<1x128xf32, #tpu.memory_space<vmem>>, vector<1x128xf32>
    %12 = vector.broadcast %11 : vector<1x128xf32> to vector<8x128xf32>
    %13 = arith.addf %10, %12 : vector<8x128xf32>
    %c0_11 = arith.constant 0 : index
    %c0_12 = arith.constant 0 : index
    %14 = vector.load %arg6[%c0_11, %c0_12] : memref<8x128xf32, #tpu.memory_space<vmem>>, vector<8x128xf32>
    tpu.vector_store %arg6[%c0_11, %c0_12], %13 {strides = array<i32>} : memref<8x128xf32, #tpu.memory_space<vmem>>, vector<8x128xf32>,
    return
  }
  func.func @transform_0(%arg0: i32) -> (i32, i32) {
    %c0_i32 = arith.constant 0 : i32
    %c0_i32_0 = arith.constant 0 : i32
    return %arg0, %c0_i32 : i32, i32
  }
  func.func @transform_1(%arg0: i32) -> (i32, i32) {
    %c0_i32 = arith.constant 0 : i32
    %c0_i32_0 = arith.constant 0 : i32
    %c0_i32_1 = arith.constant 0 : i32
    return %c0_i32, %c0_i32_0 : i32, i32
  }
  func.func @transform_2(%arg0: i32) -> (i32, i32) {
    %c0_i32 = arith.constant 0 : i32
    %c0_i32_0 = arith.constant 0 : i32
    %c0_i32_1 = arith.constant 0 : i32
    return %c0_i32, %c0_i32_0 : i32, i32
  }
  func.func @transform_3(%arg0: i32) -> (i32, i32) {
    %c0_i32 = arith.constant 0 : i32
    %c0_i32_0 = arith.constant 0 : i32
    %c0_i32_1 = arith.constant 0 : i32
    return %c0_i32, %c0_i32_0 : i32, i32
  }
  func.func @transform_4(%arg0: i32) -> (i32, i32) {
    %c0_i32 = arith.constant 0 : i32
    %c0_i32_0 = arith.constant 0 : i32
    %c0_i32_1 = arith.constant 0 : i32
    return %c0_i32, %c0_i32_0 : i32, i32
  }
  func.func @transform_5(%arg0: i32) -> (i32, i32) {
    %c0_i32 = arith.constant 0 : i32
    %c0_i32_0 = arith.constant 0 : i32
    return %arg0, %c0_i32 : i32, i32
  }
}

</mosaic_0001>

<bundles_post_ra>
// kernel: _lambda_.3
= control target key start
LH: loop header
LB: loop body
LE: loop exit
PB: predicated region body
PF: predicated region fallthrough
CT: control target
= control target key end

     0   :  { %s2699_s15 = smov 0   ;;  %s2701_s16 = smov 0   ;;  %s3513_s0 = inlined_call_operand.vmem [shape: bf16[4,400,9], index: 0, kind: input, shape index: {}]   ;;  %s3514_s1 = inlined_call_operand.vmem [shape: bf16[9,8], index: 1, kind: input, shape index: {}]   ;;  %s3515_s2 = inlined_call_operand.vmem [shape: f32[1,8], index: 2, kind: input, shape index: {}]   ;;  %s3516_s3 = inlined_call_operand.vmem [shape: f32[1,8], index: 3, kind: input, shape index: {}]   ;;  %s3517_s4 = inlined_call_operand.vmem [shape: bf16[400,8], index: 4, kind: output, shape index: {}]  }
   0x1   :  { %s2703_s17 = smov 0  }
   0x2 LB: > { %s2174_s18 = sadd.s32 4294967295, %s2671_s17   ;;  %s2716_s19 = sadd.s32 1, %s2671_s17   ;;  %s2671_s17 = sphi %s2703_s17, %s3592_s17   ;;  %s2667_s16 = sphi %s2701_s16, %s3591_s16   ;;  %s2663_s15 = sphi %s2699_s15, %s3590_s15  }
   0x3   : > { %s18_s20 = ssub.s32 %s2671_s17, %s2716_s19  ;;  %s21_s21 = sadd.s32 1, %s2667_s16 }
   0x4   : > { %p19_p0 = scmp.eq.s32.totalorder %s18_s20, 0  ;;  %p28_p1 = scmp.ne.s32.totalorder %s2667_s16, %s2663_s15 }
   0x5   : > { %p29_p2 = scmp.eq.s32.totalorder %s2671_s17, 0  ;;  %p2177_p4 = scmp.ge.s32.totalorder %s2671_s17, 2 }
   0x6   : > { %s2725_s22 = scalar_select %p19_p0, %s2667_s16, %s21_s21  }
   0x7   : > { %p30_p3 = por %p29_p2, %p28_p1  ;;  %152 = sbr.rel (%p2177_p4) target bundleno = 45 (0x2d), region = 28 }
   0xe   : > { %155 = sbr.rel (!%p30_p3) target bundleno = 45 (0x2d), region = 32  ;;  %s157_s23 = sand.u32 (%p30_p3), 1, %s2667_s16  }
   0xf   : > { %s2388_s24 = smul.u32 (%p30_p3), 100, %s2671_s17 }
  0x10   : > { %s2569_s25 = smul.u32 (%p30_p3), 400, %s157_s23 }
  0x11   : > { %s2733_s28 = scalar_lea.vmem (%p30_p3), %s3513_s0, %s2388_s24 }
  0x12   : > { %v178_v0 = vld [vmem:[%s2733_s28] sm:$0xff] (%p30_p3)   ;;  %v182_v1 = vld [vmem:[%s2733_s28 + $0x8] sm:$0xff] (%p30_p3)   ;;  %v186_v2 = vld [vmem:[%s2733_s28 + $0x10] sm:$0xff] (%p30_p3)   ;;  %s2738_s29 = scalar_lea.vmem (%p30_p3), [#allocation2], %s2569_s25 }
  0x13   : > { %179 = vst [vmem:[%s2738_s29] sm:$0xff] (%p30_p3), %v178_v0   ;;  %183 = vst [vmem:[%s2738_s29 + $0x8] sm:$0xff] (%p30_p3), %v182_v1   ;;  %v190_v3 = vld [vmem:[%s2733_s28 + $0x18] sm:$0xff] (%p30_p3)   ;;  %v194_v4 = vld [vmem:[%s2733_s28 + $0x20] sm:$0xff] (%p30_p3)  }
  0x14   : > { %187 = vst [vmem:[%s2738_s29 + $0x10] sm:$0xff] (%p30_p3), %v186_v2   ;;  %v198_v5 = vld [vmem:[%s2733_s28 + $0x28] sm:$0xff] (%p30_p3)   ;;  %191 = vst [vmem:[%s2738_s29 + $0x18] sm:$0xff] (%p30_p3), %v190_v3   ;;  %v202_v6 = vld [vmem:[%s2733_s28 + $0x30] sm:$0xff] (%p30_p3)  }
  0x15   : > { %195 = vst [vmem:[%s2738_s29 + $0x20] sm:$0xff] %v194_v4   ;;  %199 = vst [vmem:[%s2738_s29 + $0x28] sm:$0xff] %v198_v5   ;;  %v206_v7 = vld [vmem:[%s2733_s28 + $0x38] sm:$0xff]   ;;  %v210_v8 = vld [vmem:[%s2733_s28 + $0x40] sm:$0xff]  }
  0x16   : > { %203 = vst [vmem:[%s2738_s29 + $0x30] sm:$0xff] %v202_v6   ;;  %207 = vst [vmem:[%s2738_s29 + $0x38] sm:$0xff] %v206_v7   ;;  %v214_v9 = vld [vmem:[%s2733_s28 + $0x48] sm:$0xff]   ;;  %v218_v10 = vld [vmem:[%s2733_s28 + $0x50] sm:$0xff]  }
  0x17   : > { %211 = vst [vmem:[%s2738_s29 + $0x40] sm:$0xff] %v210_v8   ;;  %v222_v11 = vld [vmem:[%s2733_s28 + $0x58] sm:$0xff]   ;;  %215 = vst [vmem:[%s2738_s29 + $0x48] sm:$0xff] %v214_v9   ;;  %v226_v12 = vld [vmem:[%s2733_s28 + $0x60] sm:$0xf] }
  0x18   : > { %219 = vst [vmem:[%s2738_s29 + $0x50] sm:$0xff] %v218_v10   ;;  %223 = vst [vmem:[%s2738_s29 + $0x58] sm:$0xff] %v222_v11   ;;  %v228_v13 = vld [vmem:[%s2733_s28 + $0xc8] sm:$0xff]   ;;  %v232_v14 = vld [vmem:[%s2733_s28 + $0xd0] sm:$0xff]  }
  0x19   : > { %227 = vst [vmem:[%s2738_s29 + $0x60] sm:$0xf] %v226_v12  ;;  %229 = vst [vmem:[%s2738_s29 + $0x64] sm:$0xff] %v228_v13   ;;  %v236_v15 = vld [vmem:[%s2733_s28 + $0xd8] sm:$0xff]   ;;  %v240_v16 = vld [vmem:[%s2733_s28 + $0xe0] sm:$0xff]  }
  0x1a   : > { %233 = vst [vmem:[%s2738_s29 + $0x6c] sm:$0xff] %v232_v14   ;;  %v244_v17 = vld [vmem:[%s2733_s28 + $0xe8] sm:$0xff]   ;;  %237 = vst [vmem:[%s2738_s29 + $0x74] sm:$0xff] %v236_v15   ;;  %v248_v18 = vld [vmem:[%s2733_s28 + $0xf0] sm:$0xff]  }
  0x1b   : > { %241 = vst [vmem:[%s2738_s29 + $0x7c] sm:$0xff] %v240_v16   ;;  %245 = vst [vmem:[%s2738_s29 + $0x84] sm:$0xff] %v244_v17   ;;  %v252_v19 = vld [vmem:[%s2733_s28 + $0xf8] sm:$0xff]   ;;  %v256_v20 = vld [vmem:[%s2733_s28 + $0x100] sm:$0xff]  }
  0x1c   : > { %249 = vst [vmem:[%s2738_s29 + $0x8c] sm:$0xff] %v248_v18   ;;  %253 = vst [vmem:[%s2738_s29 + $0x94] sm:$0xff] %v252_v19   ;;  %v260_v21 = vld [vmem:[%s2733_s28 + $0x108] sm:$0xff]   ;;  %v264_v22 = vld [vmem:[%s2733_s28 + $0x110] sm:$0xff]  }
  0x1d   : > { %257 = vst [vmem:[%s2738_s29 + $0x9c] sm:$0xff] %v256_v20   ;;  %v268_v23 = vld [vmem:[%s2733_s28 + $0x118] sm:$0xff]   ;;  %261 = vst [vmem:[%s2738_s29 + $0xa4] sm:$0xff] %v260_v21   ;;  %v272_v24 = vld [vmem:[%s2733_s28 + $0x120] sm:$0xff]  }
  0x1e   : > { %265 = vst [vmem:[%s2738_s29 + $0xac] sm:$0xff] %v264_v22   ;;  %269 = vst [vmem:[%s2738_s29 + $0xb4] sm:$0xff] %v268_v23   ;;  %v276_v25 = vld [vmem:[%s2733_s28 + $0x128] sm:$0xf]  ;;  %v278_v26 = vld [vmem:[%s2733_s28 + $0x190] sm:$0xff]  }
  0x1f   : > { %273 = vst [vmem:[%s2738_s29 + $0xbc] sm:$0xff] %v272_v24   ;;  %277 = vst [vmem:[%s2738_s29 + $0xc4] sm:$0xf] %v276_v25  ;;  %v282_v27 = vld [vmem:[%s2733_s28 + $0x198] sm:$0xff]   ;;  %v286_v28 = vld [vmem:[%s2733_s28 + $0x1a0] sm:$0xff]  }
  0x20   : > { %279 = vst [vmem:[%s2738_s29 + $0xc8] sm:$0xff] %v278_v26   ;;  %v290_v29 = vld [vmem:[%s2733_s28 + $0x1a8] sm:$0xff]   ;;  %283 = vst [vmem:[%s2738_s29 + $0xd0] sm:$0xff] %v282_v27   ;;  %v294_v30 = vld [vmem:[%s2733_s28 + $0x1b0] sm:$0xff]  }
  0x21   : > { %287 = vst [vmem:[%s2738_s29 + $0xd8] sm:$0xff] %v286_v28   ;;  %291 = vst [vmem:[%s2738_s29 + $0xe0] sm:$0xff] %v290_v29   ;;  %v298_v31 = vld [vmem:[%s2733_s28 + $0x1b8] sm:$0xff]   ;;  %v302_v32 = vld [vmem:[%s2733_s28 + $0x1c0] sm:$0xff]  }
  0x22   : > { %295 = vst [vmem:[%s2738_s29 + $0xe8] sm:$0xff] %v294_v30   ;;  %299 = vst [vmem:[%s2738_s29 + $0xf0] sm:$0xff] %v298_v31   ;;  %v306_v33 = vld [vmem:[%s2733_s28 + $0x1c8] sm:$0xff]   ;;  %v310_v34 = vld [vmem:[%s2733_s28 + $0x1d0] sm:$0xff]  }
  0x23   : > { %303 = vst [vmem:[%s2738_s29 + $0xf8] sm:$0xff] %v302_v32   ;;  %v314_v35 = vld [vmem:[%s2733_s28 + $0x1d8] sm:$0xff]   ;;  %307 = vst [vmem:[%s2738_s29 + $0x100] sm:$0xff] %v306_v33   ;;  %v318_v36 = vld [vmem:[%s2733_s28 + $0x1e0] sm:$0xff]  }
  0x24   : > { %311 = vst [vmem:[%s2738_s29 + $0x108] sm:$0xff] %v310_v34   ;;  %315 = vst [vmem:[%s2738_s29 + $0x110] sm:$0xff] %v314_v35   ;;  %v322_v37 = vld [vmem:[%s2733_s28 + $0x1e8] sm:$0xff]   ;;  %v326_v38 = vld [vmem:[%s2733_s28 + $0x1f0] sm:$0xf] }
  0x25   : > { %319 = vst [vmem:[%s2738_s29 + $0x118] sm:$0xff] %v318_v36   ;;  %323 = vst [vmem:[%s2738_s29 + $0x120] sm:$0xff] %v322_v37   ;;  %v328_v39 = vld [vmem:[%s2733_s28 + $0x258] sm:$0xff]   ;;  %v332_v40 = vld [vmem:[%s2733_s28 + $0x260] sm:$0xff]  }
  0x26   : > { %327 = vst [vmem:[%s2738_s29 + $0x128] sm:$0xf] %v326_v38  ;;  %v336_v41 = vld [vmem:[%s2733_s28 + $0x268] sm:$0xff]   ;;  %329 = vst [vmem:[%s2738_s29 + $0x12c] sm:$0xff] %v328_v39   ;;  %v340_v42 = vld [vmem:[%s2733_s28 + $0x270] sm:$0xff]  }
  0x27   : > { %333 = vst [vmem:[%s2738_s29 + $0x134] sm:$0xff] %v332_v40   ;;  %337 = vst [vmem:[%s2738_s29 + $0x13c] sm:$0xff] %v336_v41   ;;  %v344_v43 = vld [vmem:[%s2733_s28 + $0x278] sm:$0xff]   ;;  %v348_v44 = vld [vmem:[%s2733_s28 + $0x280] sm:$0xff]  }
  0x28   : > { %341 = vst [vmem:[%s2738_s29 + $0x144] sm:$0xff] %v340_v42   ;;  %345 = vst [vmem:[%s2738_s29 + $0x14c] sm:$0xff] %v344_v43   ;;  %v352_v45 = vld [vmem:[%s2733_s28 + $0x288] sm:$0xff]   ;;  %v356_v46 = vld [vmem:[%s2733_s28 + $0x290] sm:$0xff]  }
  0x29   : > { %349 = vst [vmem:[%s2738_s29 + $0x154] sm:$0xff] %v348_v44   ;;  %v360_v47 = vld [vmem:[%s2733_s28 + $0x298] sm:$0xff]   ;;  %353 = vst [vmem:[%s2738_s29 + $0x15c] sm:$0xff] %v352_v45   ;;  %v364_v48 = vld [vmem:[%s2733_s28 + $0x2a0] sm:$0xff]  }
  0x2a   : > { %357 = vst [vmem:[%s2738_s29 + $0x164] sm:$0xff] %v356_v46   ;;  %361 = vst [vmem:[%s2738_s29 + $0x16c] sm:$0xff] %v360_v47   ;;  %v368_v49 = vld [vmem:[%s2733_s28 + $0x2a8] sm:$0xff]   ;;  %v372_v50 = vld [vmem:[%s2733_s28 + $0x2b0] sm:$0xff]  }
  0x2b   : > { %365 = vst [vmem:[%s2738_s29 + $0x174] sm:$0xff] %v364_v48   ;;  %369 = vst [vmem:[%s2738_s29 + $0x17c] sm:$0xff] %v368_v49   ;;  %v376_v51 = vld [vmem:[%s2733_s28 + $0x2b8] sm:$0xf] }
  0x2c   : > { %373 = vst [vmem:[%s2738_s29 + $0x184] sm:$0xff] %v372_v50   ;;  %377 = vst [vmem:[%s2738_s29 + $0x18c] sm:$0xf] %v376_v51 }
  0x2d PF: > { %p2179_p5 = scmp.ge.s32.totalorder %s2671_s17, 1  ;;  %p599_p6 = scmp.lt.s32.totalorder %s2671_s17, 3 }
  0x2f   : > { %p600_p7 = pnand %p2179_p5, %p599_p6 }
  0x31   : > { %603 = sbr.rel (%p600_p7) target bundleno = 407 (0x197), region = 73 }
  0x38   : > { %vm994_vm0 = vcmask 1043456   ;;  %vm1157_vm1 = vcmask 1044480   ;;  %v2596_v52 = vld [vmem:[%s3514_s1] sm:$0x1f]   ;;  %s606_s6 = sand.u32 1, %s2663_s15   ;;  %v2673_v53 = vmov 65535  }
  0x39   : > { %v1158_v54 = vsel %vm994_vm0, 4294967295, %v2673_v53  ;;  %s2570_s7 = smul.u32 400, %s606_s6  ;;  %vm1008_vm2 = vcmask 72704   ;;  %vm2086_vm3 = vcmask 60416  }
  0x3a   : > { %v1159_v55 = vsel %vm1157_vm1, %v1158_v54, 0  ;;  %s3186_s13 = smul.u32 25, %s2174_s18 }
  0x3b   : > { %v1161_v56 = vand.u32 %v2596_v52, %v1159_v55  ;;  %s2848_s8 = scalar_lea.vmem [#allocation2], %s2570_s7 }
  0x3c   : > { %v2597_v57 = vld [vmem:[%s2848_s8] sm:$0xff]   ;;  %v2598_v58 = vld [vmem:[%s2848_s8 + $0xd0] sm:$0xff]   ;;  %v2599_v59 = vld [vmem:[%s2848_s8 + $0x8] sm:$0xff]   ;;  %p633_p8 = scmp.lt.s32.totalorder %s3186_s13, 49 }
  0x3d   : > { %2465 = vmatprep.subr.bf16.mxu0 %v1161_v56  ;;  %2567 = vmatprep.subr.bf16.mxu1 %v1161_v56  ;;  %v2600_v60 = vld [vmem:[%s2848_s8 + $0xd8] sm:$0xff]   ;;  %v2601_v61 = vld [vmem:[%s2848_s8 + $0x10] sm:$0xff]   ;;  %v2602_v62 = vld [vmem:[%s2848_s8 + $0xe0] sm:$0xff]  }
  0x3e   : > { %2466 = vmatpush3.bf16.msra.mxu0 %v1161_v56  ;;  %2568 = vmatpush3.bf16.msra.mxu1 %v1161_v56  ;;  %v2603_v63 = vld [vmem:[%s2848_s8 + $0x18] sm:$0xff]   ;;  %v2604_v0 = vld [vmem:[%s2848_s8 + $0xe8] sm:$0xff]   ;;  %v2605_v1 = vld [vmem:[%s2848_s8 + $0x20] sm:$0xff]   ;;  %s3594_s13 = smov (!%p633_p8, %s3186_s13), 49 }
  0x3f   : > { %2467 = vmatprep.mubr.msk.bf16.mxu0 %vm1008_vm2, %v2597_v57  ;;  %2519 = vmatprep.mubr.msk.bf16.mxu1 %vm1008_vm2, %v2598_v58  ;;  %v2606_v2 = vld [vmem:[%s2848_s8 + $0xf0] sm:$0xff]   ;;  %v2607_v3 = vld [vmem:[%s2848_s8 + $0x28] sm:$0xff]   ;;  %v2608_v4 = vld [vmem:[%s2848_s8 + $0xf8] sm:$0xff]   ;;  %s2180_s14 = sshll.u32 %s3594_s13, 2 }
  0x40   : > { %v2609_v5 = vld [vmem:[%s2848_s8 + $0x30] sm:$0xff]   ;;  %v2610_v6 = vld [vmem:[%s2848_s8 + $0x100] sm:$0xff]   ;;  %v2611_v7 = vld [vmem:[%s2848_s8 + $0x38] sm:$0xff]   ;;  %s3265_s18 = scalar_lea.vmem %s3517_s4, %s2180_s14 }
  0x41   : > { %2468 = vmatmul.mubr.msk.bf16.vlgmr.msra.gmra.mrb[0].mxu0 %vm1008_vm2, %v2599_v59  ;;  %2520 = vmatmul.mubr.msk.bf16.vlgmr.msra.gmra.mrb[0].mxu1 %vm1008_vm2, %v2600_v60  ;;  %v2612_v8 = vld [vmem:[%s2848_s8 + $0x108] sm:$0xff]   ;;  %v2613_v9 = vld [vmem:[%s2848_s8 + $0x40] sm:$0xff]   ;;  %v2614_v10 = vld [vmem:[%s2848_s8 + $0x110] sm:$0xff]  }
  0x42   : > { %2471 = vmatprep.mubr.msk.bf16.mxu0 %vm1008_vm2, %v2601_v61  ;;  %2523 = vmatprep.mubr.msk.bf16.mxu1 %vm1008_vm2, %v2602_v62  ;;  %v2615_v11 = vld [vmem:[%s2848_s8 + $0x48] sm:$0xff]   ;;  %v2616_v12 = vld [vmem:[%s2848_s8 + $0x118] sm:$0xff]   ;;  %v2617_v13 = vld [vmem:[%s2848_s8 + $0x50] sm:$0xff]  }
  0x43   : > { %v2618_v14 = vld [vmem:[%s2848_s8 + $0x120] sm:$0xff]   ;;  %v2620_v15 = vld [vmem:[%s2848_s8 + $0x128] ss:$0 sps:$4 sm:$0xff]   ;;  %v2621_v16 = vld [vmem:[%s2848_s8 + $0x12c] ss:$0 sps:$4 sm:$0xff]  }
  0x44   : > { %v2622_v17 = vld [vmem:[%s2848_s8 + $0x60] ss:$0 sps:$4 sm:$0xff]   ;;  %v2623_v18 = vld [vmem:[%s2848_s8 + $0x64] ss:$0 sps:$4 sm:$0xff]   ;;  %v2619_v19 = vld [vmem:[%s2848_s8 + $0x58] sm:$0xff]   ;;  %v1000_v20 = vsel %vm994_vm0, %v2620_v15, %v2621_v16 }
  0x45   : > { %v2624_v21 = vld [vmem:[%s2848_s8 + $0x130] sm:$0xff]   ;;  %v997_v22 = vsel %vm994_vm0, %v2622_v17, %v2623_v18  ;;  %v2625_v23 = vld [vmem:[%s2848_s8 + $0x68] sm:$0xff]   ;;  %v2626_v24 = vld [vmem:[%s2848_s8 + $0x138] sm:$0xff]  }
  0x46   : > { %v2627_v25 = vld [vmem:[%s2848_s8 + $0x70] sm:$0xff]   ;;  %v2628_v26 = vld [vmem:[%s2848_s8 + $0x140] sm:$0xff]   ;;  %v2629_v27 = vld [vmem:[%s2848_s8 + $0x78] sm:$0xff]  }
  0x47   : > { %v2630_v28 = vld [vmem:[%s2848_s8 + $0x148] sm:$0xff]   ;;  %v2631_v29 = vld [vmem:[%s2848_s8 + $0x80] sm:$0xff]   ;;  %v2632_v30 = vld [vmem:[%s2848_s8 + $0x150] sm:$0xff]  }
  0x48   : > { %v2633_v31 = vld [vmem:[%s2848_s8 + $0x88] sm:$0xff]   ;;  %v2634_v32 = vld [vmem:[%s2848_s8 + $0x158] sm:$0xff]   ;;  %v2635_v33 = vld [vmem:[%s2848_s8 + $0x90] sm:$0xff]  }
  0x49   : > { %2472 = vmatmul.mubr.msk.bf16.gmra.mrb[4].mxu0 %vm1008_vm2, %v2603_v63  ;;  %2524 = vmatmul.mubr.msk.bf16.gmra.mrb[4].mxu1 %vm1008_vm2, %v2604_v0  ;;  %v2636_v34 = vld [vmem:[%s2848_s8 + $0x160] sm:$0xff]   ;;  %v2637_v35 = vld [vmem:[%s2848_s8 + $0x98] sm:$0xff]   ;;  %v2638_v36 = vld [vmem:[%s2848_s8 + $0x168] sm:$0xff]  }
  0x4a   : > { %2475 = vmatprep.mubr.msk.bf16.mxu0 %vm1008_vm2, %v2605_v1  ;;  %2527 = vmatprep.mubr.msk.bf16.mxu1 %vm1008_vm2, %v2606_v2  ;;  %v2639_v37 = vld [vmem:[%s2848_s8 + $0xa0] sm:$0xff]   ;;  %v2640_v38 = vld [vmem:[%s2848_s8 + $0x170] sm:$0xff]   ;;  %v2641_v39 = vld [vmem:[%s2848_s8 + $0xa8] sm:$0xff]  }
  0x4b   : > { %v2642_v40 = vld [vmem:[%s2848_s8 + $0x178] sm:$0xff]   ;;  %v2643_v41 = vld [vmem:[%s2848_s8 + $0xb0] sm:$0xff]   ;;  %v2644_v42 = vld [vmem:[%s2848_s8 + $0x180] sm:$0xff]  }
  0x4c   : > { %v2645_v43 = vld [vmem:[%s2848_s8 + $0xb8] sm:$0xff]   ;;  %v2646_v44 = vld [vmem:[%s2848_s8 + $0x188] sm:$0xff]   ;;  %v2647_v45 = vld [vmem:[%s2848_s8 + $0xc0] sm:$0xff]  }
  0x4d   : > { %v2648_v46 = vld [vmem:[%s2848_s8 + $0xc8] sm:$0xff]   ;;  %v2957_v59 = vld [vmem:[%s3515_s2] ss:$0 sm:$0xff] }
  0x4e   : > { %v2964_v2 = vld [vmem:[%s3516_s3] ss:$0 sm:$0xff] }
  0x51   : > { %2476 = vmatmul.mubr.msk.bf16.gmra.mrb[8].mxu0 %vm1008_vm2, %v2607_v3  ;;  %2528 = vmatmul.mubr.msk.bf16.gmra.mrb[8].mxu1 %vm1008_vm2, %v2608_v4 }
  0x52   : > { %2479 = vmatprep.mubr.msk.bf16.mxu0 %vm1008_vm2, %v2609_v5  ;;  %2531 = vmatprep.mubr.msk.bf16.mxu1 %vm1008_vm2, %v2610_v6 }
  0x59   : > { %2480 = vmatmul.mubr.msk.bf16.gmra.mrb[12].mxu0 %vm1008_vm2, %v2611_v7  ;;  %2532 = vmatmul.mubr.msk.bf16.gmra.mrb[12].mxu1 %vm1008_vm2, %v2612_v8 }
  0x5a   : > { %2483 = vmatprep.mubr.msk.bf16.mxu0 %vm1008_vm2, %v2613_v9  ;;  %2535 = vmatprep.mubr.msk.bf16.mxu1 %vm1008_vm2, %v2614_v10 }
  0x61   : > { %2484 = vmatmul.mubr.msk.bf16.gmra.mrb[16].mxu0 %vm1008_vm2, %v2615_v11  ;;  %2536 = vmatmul.mubr.msk.bf16.gmra.mrb[16].mxu1 %vm1008_vm2, %v2616_v12 }
  0x62   : > { %2487 = vmatprep.mubr.msk.bf16.mxu0 %vm1008_vm2, %v2617_v13  ;;  %2539 = vmatprep.mubr.msk.bf16.mxu1 %vm1008_vm2, %v2618_v14 }
  0x69   : > { %2488 = vmatmul.mubr.msk.bf16.gmra.mrb[20].mxu0 %vm1008_vm2, %v2619_v19  ;;  %2540 = vmatmul.mubr.msk.bf16.gmra.mrb[20].mxu1 %vm1008_vm2, %v1000_v20 }
  0x6a   : > { %2491 = vmatprep.mubr.msk.bf16.mxu0 %vm1008_vm2, %v997_v22  ;;  %2543 = vmatprep.mubr.msk.bf16.mxu1 %vm1008_vm2, %v2624_v21 }
  0x71   : > { %2492 = vmatmul.mubr.msk.bf16.gmra.mrb[24].mxu0 %vm1008_vm2, %v2625_v23  ;;  %2544 = vmatmul.mubr.msk.bf16.gmra.mrb[24].mxu1 %vm1008_vm2, %v2626_v24 }
  0x72   : > { %2495 = vmatprep.mubr.msk.bf16.mxu0 %vm1008_vm2, %v2627_v25  ;;  %2547 = vmatprep.mubr.msk.bf16.mxu1 %vm1008_vm2, %v2628_v26 }
  0x79   : > { %2496 = vmatmul.mubr.msk.bf16.gmra.mrb[28].mxu0 %vm1008_vm2, %v2629_v27  ;;  %2548 = vmatmul.mubr.msk.bf16.gmra.mrb[28].mxu1 %vm1008_vm2, %v2630_v28 }
  0x7a   : > { %2499 = vmatprep.mubr.msk.bf16.mxu0 %vm1008_vm2, %v2631_v29  ;;  %2551 = vmatprep.mubr.msk.bf16.mxu1 %vm1008_vm2, %v2632_v30 }
  0x81   : > { %2500 = vmatmul.mubr.msk.bf16.gmra.mrb[32].mxu0 %vm1008_vm2, %v2633_v31  ;;  %2552 = vmatmul.mubr.msk.bf16.gmra.mrb[32].mxu1 %vm1008_vm2, %v2634_v32 }
  0x82   : > { %2503 = vmatprep.mubr.msk.bf16.mxu0 %vm1008_vm2, %v2635_v33  ;;  %2555 = vmatprep.mubr.msk.bf16.mxu1 %vm1008_vm2, %v2636_v34 }
  0x89   : > { %2504 = vmatmul.mubr.msk.bf16.gmra.mrb[36].mxu0 %vm1008_vm2, %v2637_v35  ;;  %2556 = vmatmul.mubr.msk.bf16.gmra.mrb[36].mxu1 %vm1008_vm2, %v2638_v36 }
  0x8a   : > { %2507 = vmatprep.mubr.msk.bf16.mxu0 %vm1008_vm2, %v2639_v37  ;;  %2559 = vmatprep.mubr.msk.bf16.mxu1 %vm1008_vm2, %v2640_v38 }
  0x91   : > { %2508 = vmatmul.mubr.msk.bf16.gmra.mrb[40].mxu0 %vm1008_vm2, %v2641_v39  ;;  %2560 = vmatmul.mubr.msk.bf16.gmra.mrb[40].mxu1 %vm1008_vm2, %v2642_v40 }
  0x92   : > { %2511 = vmatprep.mubr.msk.bf16.mxu0 %vm1008_vm2, %v2643_v41  ;;  %2563 = vmatprep.mubr.msk.bf16.mxu1 %vm1008_vm2, %v2644_v42 }
  0x99   : > { %2512 = vmatmul.mubr.msk.bf16.gmra.mrb[44].mxu0 %vm1008_vm2, %v2645_v43  ;;  %2564 = vmatmul.mubr.msk.bf16.gmra.mrb[44].mxu1 %vm1008_vm2, %v2646_v44 }
  0x9a   : > { %2515 = vmatprep.mubr.msk.bf16.mxu0 %vm1008_vm2, %v2647_v45 }
  0xa1   : > { %2516 = vmatmul.mubr.msk.bf16.gmra.mrb[48].mxu0 %vm1008_vm2, %v2648_v46 }
 0x114   : > { %v2469_v47 = vpop.f32.mrb[0].mxu0  ;;  %v2521_v48 = vpop.f32.mrb[0].mxu1 }
 0x115   : > { %v1197_v49 = vpop.f32.mrb[1].mxu0  ;;  %v1405_v50 = vpop.f32.mrb[1].mxu1  ;;  %v1605_v0 = vmul.f32 %v2469_v47, %v2957_v59  ;;  %v1657_v1 = vmul.f32 %v2521_v48, %v2957_v59 }
 0x116   : > { %v2470_v51 = vpop.f32.mrb[2].mxu0  ;;  %v2522_v52 = vpop.f32.mrb[2].mxu1  ;;  %v1603_v3 = vmul.f32 %v2957_v59, %v1197_v49  ;;  %v1655_v4 = vmul.f32 %v2957_v59, %v1405_v50 }
 0x117   : > { %v1200_v53 = vpop.f32.mrb[3].mxu0  ;;  %v1408_v54 = vpop.f32.mrb[3].mxu1  ;;  %v1606_v5 = vmul.f32 %v2470_v51, %v2957_v59  ;;  %v1658_v6 = vmul.f32 %v2522_v52, %v2957_v59  ;;  %v2973_v11 = vadd.f32 %v2964_v2, %v1605_v0  ;;  %v2976_v12 = vadd.f32 %v2964_v2, %v1657_v1 }
 0x118   : > { %v1604_v7 = vmul.f32 %v2957_v59, %v1200_v53  ;;  %v1656_v8 = vmul.f32 %v2957_v59, %v1408_v54  ;;  %v2981_v17 = vadd.f32 %v2964_v2, %v1603_v3  ;;  %v2984_v18 = vadd.f32 %v2964_v2, %v1655_v4 }
 0x119   : > { %v2989_v23 = vadd.f32 %v2964_v2, %v1606_v5  ;;  %v2992_v24 = vadd.f32 %v2964_v2, %v1658_v6 }
 0x11a   : > { %v2997_v29 = vadd.f32 %v2964_v2, %v1604_v7  ;;  %v3000_v30 = vadd.f32 %v2964_v2, %v1656_v8 }
 0x11c   : > { %v2473_v55 = vpop.f32.mrb[4].mxu0  ;;  %v2525_v56 = vpop.f32.mrb[4].mxu1 }
 0x11d   : > { %v1213_v57 = vpop.f32.mrb[5].mxu0  ;;  %v1421_v58 = vpop.f32.mrb[5].mxu1  ;;  %v1609_v13 = vmul.f32 %v2473_v55, %v2957_v59  ;;  %v1661_v14 = vmul.f32 %v2525_v56, %v2957_v59 }
 0x11e   : > { %v2474_v60 = vpop.f32.mrb[6].mxu0  ;;  %v2526_v61 = vpop.f32.mrb[6].mxu1  ;;  %v1607_v19 = vmul.f32 %v2957_v59, %v1213_v57  ;;  %v1659_v20 = vmul.f32 %v2957_v59, %v1421_v58 }
 0x11f   : > { %v1216_v62 = vpop.f32.mrb[7].mxu0  ;;  %v1424_v63 = vpop.f32.mrb[7].mxu1  ;;  %v1610_v25 = vmul.f32 %v2474_v60, %v2957_v59  ;;  %v1662_v26 = vmul.f32 %v2526_v61, %v2957_v59  ;;  %v3007_v35 = vadd.f32 %v2964_v2, %v1609_v13  ;;  %v3010_v36 = vadd.f32 %v2964_v2, %v1661_v14 }
 0x120   : > { %v1608_v31 = vmul.f32 %v2957_v59, %v1216_v62  ;;  %v1660_v32 = vmul.f32 %v2957_v59, %v1424_v63  ;;  %v3015_v39 = vadd.f32 %v2964_v2, %v1607_v19  ;;  %v3018_v40 = vadd.f32 %v2964_v2, %v1659_v20 }
 0x121   : > { %v3023_v43 = vadd.f32 %v2964_v2, %v1610_v25  ;;  %v3026_v44 = vadd.f32 %v2964_v2, %v1662_v26 }
 0x122   : > { %v3031_v47 = vadd.f32 %v2964_v2, %v1608_v31  ;;  %v3034_v48 = vadd.f32 %v2964_v2, %v1660_v32 }
 0x124   : > { %v2477_v9 = vpop.f32.mrb[8].mxu0  ;;  %v2529_v10 = vpop.f32.mrb[8].mxu1 }
 0x125   : > { %v1229_v15 = vpop.f32.mrb[9].mxu0  ;;  %v1437_v16 = vpop.f32.mrb[9].mxu1  ;;  %v1613_v53 = vmul.f32 %v2477_v9, %v2957_v59  ;;  %v1665_v54 = vmul.f32 %v2529_v10, %v2957_v59 }
 0x126   : > { %v2478_v21 = vpop.f32.mrb[10].mxu0  ;;  %v2530_v22 = vpop.f32.mrb[10].mxu1  ;;  %v1611_v60 = vmul.f32 %v2957_v59, %v1229_v15  ;;  %v1663_v61 = vmul.f32 %v2957_v59, %v1437_v16 }
 0x127   : > { %v1232_v27 = vpop.f32.mrb[11].mxu0  ;;  %v1440_v28 = vpop.f32.mrb[11].mxu1  ;;  %v1614_v3 = vmul.f32 %v2478_v21, %v2957_v59  ;;  %v1666_v4 = vmul.f32 %v2530_v22, %v2957_v59  ;;  %v3053_v13 = vadd.f32 %v2964_v2, %v1613_v53  ;;  %v3056_v14 = vadd.f32 %v2964_v2, %v1665_v54 }
 0x128   : > { %v1612_v9 = vmul.f32 %v2957_v59, %v1232_v27  ;;  %v1664_v10 = vmul.f32 %v2957_v59, %v1440_v28  ;;  %v3061_v19 = vadd.f32 %v2964_v2, %v1611_v60  ;;  %v3064_v20 = vadd.f32 %v2964_v2, %v1663_v61 }
 0x129   : > { %v3069_v25 = vadd.f32 %v2964_v2, %v1614_v3  ;;  %v3072_v26 = vadd.f32 %v2964_v2, %v1666_v4 }
 0x12a   : > { %v3077_v31 = vadd.f32 %v2964_v2, %v1612_v9  ;;  %v3080_v32 = vadd.f32 %v2964_v2, %v1664_v10 }
 0x12c   : > { %v2481_v49 = vpop.f32.mrb[12].mxu0  ;;  %v2533_v50 = vpop.f32.mrb[12].mxu1 }
 0x12d   : > { %v1245_v55 = vpop.f32.mrb[13].mxu0  ;;  %v1453_v56 = vpop.f32.mrb[13].mxu1  ;;  %v1617_v15 = vmul.f32 %v2481_v49, %v2957_v59  ;;  %v1669_v16 = vmul.f32 %v2533_v50, %v2957_v59 }
 0x12e   : > { %v2482_v62 = vpop.f32.mrb[14].mxu0  ;;  %v2534_v63 = vpop.f32.mrb[14].mxu1  ;;  %v1615_v21 = vmul.f32 %v2957_v59, %v1245_v55  ;;  %v1667_v22 = vmul.f32 %v2957_v59, %v1453_v56 }
 0x12f   : > { %v1248_v5 = vpop.f32.mrb[15].mxu0  ;;  %v1456_v6 = vpop.f32.mrb[15].mxu1  ;;  %v1618_v27 = vmul.f32 %v2482_v62, %v2957_v59  ;;  %v1670_v28 = vmul.f32 %v2534_v63, %v2957_v59  ;;  %v3087_v60 = vadd.f32 %v2964_v2, %v1617_v15  ;;  %v3090_v61 = vadd.f32 %v2964_v2, %v1669_v16 }
 0x130   : > { %v1616_v49 = vmul.f32 %v2957_v59, %v1248_v5  ;;  %v1668_v53 = vmul.f32 %v2957_v59, %v1456_v6  ;;  %v3095_v5 = vadd.f32 %v2964_v2, %v1615_v21  ;;  %v3098_v6 = vadd.f32 %v2964_v2, %v1667_v22 }
 0x131   : > { %v3103_v16 = vadd.f32 %v2964_v2, %v1618_v27  ;;  %v3106_v55 = vadd.f32 %v2964_v2, %v1670_v28 }
 0x132   : > { %v3111_v22 = vadd.f32 %v2964_v2, %v1616_v49  ;;  %v3114_v0 = vadd.f32 %v2964_v2, %v1668_v53 }
 0x134   : > { %v2485_v50 = vpop.f32.mrb[16].mxu0  ;;  %v2537_v54 = vpop.f32.mrb[16].mxu1 }
 0x135   : > { %v1261_v62 = vpop.f32.mrb[17].mxu0  ;;  %v1469_v63 = vpop.f32.mrb[17].mxu1  ;;  %v1621_v15 = vmul.f32 %v2485_v50, %v2957_v59  ;;  %v1673_v28 = vmul.f32 %v2537_v54, %v2957_v59 }
 0x136   : > { %v2486_v9 = vpop.f32.mrb[18].mxu0  ;;  %v2538_v10 = vpop.f32.mrb[18].mxu1  ;;  %v1619_v1 = vmul.f32 %v2957_v59, %v1261_v62  ;;  %v1671_v49 = vmul.f32 %v2957_v59, %v1469_v63 }
 0x137   : > { %v1264_v3 = vpop.f32.mrb[19].mxu0  ;;  %v1472_v4 = vpop.f32.mrb[19].mxu1  ;;  %v1622_v56 = vmul.f32 %v2486_v9, %v2957_v59  ;;  %v1674_v27 = vmul.f32 %v2538_v10, %v2957_v59  ;;  %v3133_v63 = vadd.f32 %v2964_v2, %v1621_v15  ;;  %v3136_v57 = vadd.f32 %v2964_v2, %v1673_v28 }
 0x138   : > { %v1620_v58 = vmul.f32 %v2957_v59, %v1264_v3  ;;  %v1672_v21 = vmul.f32 %v2957_v59, %v1472_v4  ;;  %v3141_v54 = vadd.f32 %v2964_v2, %v1619_v1  ;;  %v3144_v3 = vadd.f32 %v2964_v2, %v1671_v49 }
 0x139   : > { %v3149_v28 = vadd.f32 %v2964_v2, %v1622_v56 }
 0x13a   : > { %v3157_v8 = vadd.f32 %v2964_v2, %v1620_v58 }
 0x13c   : > { %v2489_v52 = vpop.f32.mrb[20].mxu0  ;;  %v2541_v62 = vpop.f32.mrb[20].mxu1 }
 0x13d   : > { %v1625_v9 = vmul.f32 %v2489_v52, %v2957_v59  ;;  %v1277_v53 = vpop.f32.mrb[21].mxu0  ;;  %v1677_v10 = vmul.f32 %v2541_v62, %v2957_v59  ;;  %v1485_v50 = vpop.f32.mrb[21].mxu1  ;;  %v3152_v52 = vadd.f32 %v2964_v2, %v1674_v27 }
 0x13e   : > { %v1623_v4 = vmul.f32 %v2957_v59, %v1277_v53  ;;  %v2490_v51 = vpop.f32.mrb[22].mxu0  ;;  %v1675_v15 = vmul.f32 %v2957_v59, %v1485_v50  ;;  %v2542_v42 = vpop.f32.mrb[22].mxu1  ;;  %v3163_v50 = vadd.f32 %v2964_v2, %v1672_v21 }
 0x13f   : > { %v1626_v62 = vmul.f32 %v2490_v51, %v2957_v59  ;;  %v1280_v1 = vpop.f32.mrb[23].mxu0  ;;  %v1678_v41 = vmul.f32 %v2542_v42, %v2957_v59  ;;  %v1488_v49 = vpop.f32.mrb[23].mxu1  ;;  %v3160_v53 = vadd.f32 %v2964_v2, %v1625_v9  ;;  %v3166_v56 = vadd.f32 %v2964_v2, %v1677_v10 }
 0x140   : > { %v3171_v7 = vadd.f32 %v2964_v2, %v1623_v4  ;;  %v1624_v42 = vmul.f32 %v2957_v59, %v1280_v1  ;;  %v3178_v9 = vadd.f32 %v2964_v2, %v1675_v15  ;;  %v1676_v10 = vmul.f32 %v2957_v59, %v1488_v49 }
 0x141   : > { %3524 = vst [vmem:[#allocation3_spill] sm:$0xff] %v3160_v53  ;;  %3525 = vst [vmem:[#allocation4_spill] sm:$0xff] %v3166_v56  ;;  %v3175_v58 = vadd.f32 %v2964_v2, %v1626_v62  ;;  %v3181_v21 = vadd.f32 %v2964_v2, %v1678_v41 }
 0x142   : > { %3526 = vst [vmem:[#allocation5_spill] sm:$0xff] %v3171_v7  ;;  %3528 = vst [vmem:[#allocation7_spill] sm:$0xff] %v3178_v9  ;;  %v3198_v51 = vadd.f32 %v2964_v2, %v1624_v42  ;;  %v3206_v49 = vadd.f32 %v2964_v2, %v1676_v10 }
 0x143   : > { %3527 = vst [vmem:[#allocation6_spill] sm:$0xff] %v3175_v58  ;;  %3529 = vst [vmem:[#allocation8_spill] sm:$0xff] %v3181_v21 }
 0x144   : > { %v2493_v38 = vpop.f32.mrb[24].mxu0  ;;  %v2545_v37 = vpop.f32.mrb[24].mxu1 }
 0x145   : > { %v1629_v4 = vmul.f32 %v2493_v38, %v2957_v59  ;;  %v1681_v62 = vmul.f32 %v2545_v37, %v2957_v59  ;;  %v1293_v1 = vpop.f32.mrb[25].mxu0  ;;  %v1501_v27 = vpop.f32.mrb[25].mxu1 }
 0x146   : > { %v2494_v46 = vpop.f32.mrb[26].mxu0  ;;  %v2546_v34 = vpop.f32.mrb[26].mxu1  ;;  %v1627_v33 = vmul.f32 %v2957_v59, %v1293_v1  ;;  %v1679_v10 = vmul.f32 %v2957_v59, %v1501_v27  ;;  %v3530_v27 = vmax.f32 %v2997_v29, 0.0  ;;  %v3534_v29 = vmax.f32 %v2973_v11, 0.0 }
 0x147   : > { %v1736_v42 = vadd.f32 %v2964_v2, %v1629_v4  ;;  %v1788_v38 = vadd.f32 %v2964_v2, %v1681_v62  ;;  %v1630_v37 = vmul.f32 %v2494_v46, %v2957_v59  ;;  %v1682_v15 = vmul.f32 %v2546_v34, %v2957_v59  ;;  %v1296_v45 = vpop.f32.mrb[27].mxu0  ;;  %v1504_v41 = vpop.f32.mrb[27].mxu1 }
 0x148   : > { %v1628_v58 = vmul.f32 %v2957_v59, %v1296_v45  ;;  %v1680_v21 = vmul.f32 %v2957_v59, %v1504_v41  ;;  %v3532_v41 = vmax.f32 %v3000_v30, 0.0 }
 0x149   : > { %v1836_v9 = vmax.f32 %v1736_v42, 0.0  ;;  %v1888_v4 = vmax.f32 %v1788_v38, 0.0  ;;  %v1737_v62 = vadd.f32 %v2964_v2, %v1630_v37  ;;  %v1789_v46 = vadd.f32 %v2964_v2, %v1682_v15 }
 0x14a   : > { %v1735_v56 = vadd.f32 %v2964_v2, %v1628_v58  ;;  %v1787_v45 = vadd.f32 %v2964_v2, %v1680_v21  ;;  %v3235_v37 = vadd.f32 %v2964_v2, %v1627_v33  ;;  %v3238_v58 = vadd.f32 %v2964_v2, %v1679_v10 }
 0x14b   : > { %v3230_v1 = vmax.f32 %v3530_v27, %v1836_v9  ;;  %v1938_v42 = vmax.f32 %v3532_v41, %v1888_v4  ;;  %v1837_v15 = vmax.f32 %v1737_v62, 0.0  ;;  %v1889_v38 = vmax.f32 %v1789_v46, 0.0 }
 0x14c   : > { %3533 = vst [vmem:[#allocation10_spill] sm:$0xff] %v3238_v58  ;;  %v1835_v34 = vmax.f32 %v1735_v56, 0.0  ;;  %v1887_v7 = vmax.f32 %v1787_v45, 0.0  ;;  %v2497_v53 = vpop.f32.mrb[28].mxu0  ;;  %v2549_v21 = vpop.f32.mrb[28].mxu1  ;;  %v3535_v27 = vmax.f32 %v2976_v12, 0.0 }
 0x14d   : > { %3531 = vst [vmem:[#allocation9_spill] sm:$0xff] %v3230_v1  ;;  %v1912_v9 = vmax.f32 %v3534_v29, %v1837_v15  ;;  %v1633_v4 = vmul.f32 %v2497_v53, %v2957_v59  ;;  %v1685_v62 = vmul.f32 %v2549_v21, %v2957_v59  ;;  %v1309_v46 = vpop.f32.mrb[29].mxu0  ;;  %v1517_v33 = vpop.f32.mrb[29].mxu1  ;;  %v3536_v41 = vmax.f32 %v2981_v17, 0.0 }
 0x14e   : > { %v1939_v30 = vmax.f32 %v3535_v27, %v1889_v38  ;;  %v3538_v56 = vmax.f32 %v2984_v18, 0.0  ;;  %v1631_v11 = vmul.f32 %v2957_v59, %v1309_v46  ;;  %v1683_v15 = vmul.f32 %v2957_v59, %v1517_v33  ;;  %v2498_v12 = vpop.f32.mrb[30].mxu0  ;;  %v2550_v38 = vpop.f32.mrb[30].mxu1 }
 0x14f   : > { %v3248_v10 = vmax.f32 %v3536_v41, %v1835_v34  ;;  %v1740_v53 = vadd.f32 %v2964_v2, %v1633_v4  ;;  %v1792_v21 = vadd.f32 %v2964_v2, %v1685_v62  ;;  %v1634_v29 = vmul.f32 %v2498_v12, %v2957_v59  ;;  %v1312_v34 = vpop.f32.mrb[31].mxu0  ;;  %v1520_v27 = vpop.f32.mrb[31].mxu1 }
 0x150   : > { %v1937_v45 = vmax.f32 %v3538_v56, %v1887_v7  ;;  %v1686_v17 = vmul.f32 %v2550_v38, %v2957_v59  ;;  %v1738_v18 = vadd.f32 %v2964_v2, %v1631_v11  ;;  %v1790_v7 = vadd.f32 %v2964_v2, %v1683_v15 }
 0x151   : > { %3537 = vst [vmem:[#allocation11_spill] sm:$0xff] %v3248_v10  ;;  %v1632_v46 = vmul.f32 %v2957_v59, %v1312_v34  ;;  %v1840_v4 = vmax.f32 %v1740_v53, 0.0  ;;  %v1892_v62 = vmax.f32 %v1792_v21, 0.0  ;;  %v1741_v33 = vadd.f32 %v2964_v2, %v1634_v29 }
 0x152   : > { %v1962_v41 = vmax.f32 %v1912_v9, %v1937_v45  ;;  %v1793_v56 = vadd.f32 %v2964_v2, %v1686_v17  ;;  %v1838_v9 = vmax.f32 %v1738_v18, 0.0  ;;  %v1890_v45 = vmax.f32 %v1790_v7, 0.0 }
 0x153   : > { %v1739_v11 = vadd.f32 %v2964_v2, %v1632_v46  ;;  %v3539_v15 = vmax.f32 %v3031_v47, 0.0  ;;  %v3540_v34 = vmax.f32 %v3034_v48, 0.0  ;;  %v1841_v10 = vmax.f32 %v1741_v33, 0.0 }
 0x154   : > { %v2391_v12 = vpack.c.bf16 %v1962_v41, %v1962_v41  ;;  %v1893_v58 = vmax.f32 %v1793_v56, 0.0  ;;  %v3541_v53 = vmax.f32 %v2989_v23, 0.0  ;;  %v3542_v29 = vmax.f32 %v2992_v24, 0.0  ;;  %v2501_v7 = vpop.f32.mrb[32].mxu0  ;;  %v2553_v47 = vpop.f32.mrb[32].mxu1 }
 0x155   : > { %v1915_v38 = vmax.f32 %v3539_v15, %v1840_v4  ;;  %v3274_v1 = vmax.f32 %v3540_v34, %v1892_v62  ;;  %v1839_v41 = vmax.f32 %v1739_v11, 0.0  ;;  %v1684_v18 = vmul.f32 %v2957_v59, %v1520_v27  ;;  %v1325_v56 = vpop.f32.mrb[33].mxu0 }
 0x156   : > { %2089 = vst.msk [vmem:[%s3265_s18 + $0x8] sm:$0xf] %vm2086_vm3, %v2391_v12  ;;  %v1913_v21 = vmax.f32 %v3541_v53, %v1838_v9  ;;  %v1940_v17 = vmax.f32 %v3542_v29, %v1890_v45  ;;  %v3543_v46 = vmax.f32 %v3007_v35, 0.0  ;;  %v3544_v4 = vmax.f32 %v3010_v36, 0.0  ;;  %v1533_v12 = vpop.f32.mrb[33].mxu1  ;;  %v2502_v15 = vpop.f32.mrb[34].mxu0 }
 0x157   : > { %v1637_v33 = vmul.f32 %v2501_v7, %v2957_v59  ;;  %v1689_v23 = vmul.f32 %v2553_v47, %v2957_v59  ;;  %v3545_v45 = vmax.f32 %v3015_v39, 0.0  ;;  %v1791_v11 = vadd.f32 %v2964_v2, %v1684_v18  ;;  %v2554_v35 = vpop.f32.mrb[34].mxu1  ;;  %v1328_v53 = vpop.f32.mrb[35].mxu0 }
 0x158   : > { %v1916_v48 = vmax.f32 %v3543_v46, %v1841_v10  ;;  %v3287_v62 = vmax.f32 %v3544_v4, %v1893_v58  ;;  %v1963_v24 = vmax.f32 %v1913_v21, %v1938_v42  ;;  %v1965_v9 = vmax.f32 %v1915_v38, %v1940_v17  ;;  %v1536_v42 = vpop.f32.mrb[35].mxu1 }
 0x159   : > { %v1914_v27 = vmax.f32 %v3545_v45, %v1839_v41  ;;  %v1744_v36 = vadd.f32 %v2964_v2, %v1637_v33  ;;  %v1796_v58 = vadd.f32 %v2964_v2, %v1689_v23  ;;  %v1635_v10 = vmul.f32 %v2957_v59, %v1325_v56 }
 0x15a   : > { %v1687_v34 = vmul.f32 %v2957_v59, %v1533_v12  ;;  %v2392_v38 = vpack.c.bf16 %v1963_v24, %v1963_v24  ;;  %v2394_v21 = vpack.c.bf16 %v1965_v9, %v1965_v9  ;;  %v1891_v29 = vmax.f32 %v1791_v11, 0.0 }
 0x15b   : > { %v1964_v39 = vmax.f32 %v1914_v27, %v1939_v30  ;;  %v1844_v17 = vmax.f32 %v1744_v36, 0.0  ;;  %v1896_v41 = vmax.f32 %v1796_v58, 0.0  ;;  %v1742_v18 = vadd.f32 %v2964_v2, %v1635_v10 }
 0x15c   : > { %v1794_v7 = vadd.f32 %v2964_v2, %v1687_v34  ;;  %2090 = vst.msk [vmem:[%s3265_s18 + $0xc] sm:$0xf] %vm2086_vm3, %v2392_v38  ;;  %2092 = vst.msk [vmem:[%s3265_s18 + $0x14] sm:$0xf] %vm2086_vm3, %v2394_v21  ;;  %v3546_v46 = vmax.f32 %v3018_v40, 0.0  ;;  %v1638_v33 = vmul.f32 %v2502_v15, %v2957_v59  ;;  %v1690_v30 = vmul.f32 %v2554_v35, %v2957_v59  ;;  %v2505_v36 = vpop.f32.mrb[36].mxu0 }
 0x15d   : > { %v2393_v47 = vpack.c.bf16 %v1964_v39, %v1964_v39  ;;  %v3547_v23 = vmax.f32 %v3077_v31, 0.0  ;;  %v3548_v12 = vmax.f32 %v3080_v32, 0.0  ;;  %v1842_v9 = vmax.f32 %v1742_v18, 0.0  ;;  %v2557_v35 = vpop.f32.mrb[36].mxu1 }
 0x15e   : > { %v1941_v4 = vmax.f32 %v3546_v46, %v1891_v29  ;;  %v1894_v45 = vmax.f32 %v1794_v7, 0.0  ;;  %v1745_v11 = vadd.f32 %v2964_v2, %v1638_v33  ;;  %v1797_v40 = vadd.f32 %v2964_v2, %v1690_v30  ;;  %v1549_v21 = vpop.f32.mrb[37].mxu1 }
 0x15f   : > { %v1919_v56 = vmax.f32 %v3547_v23, %v1844_v17  ;;  %v3312_v24 = vmax.f32 %v3548_v12, %v1896_v41  ;;  %2091 = vst.msk [vmem:[%s3265_s18 + $0x10] sm:$0xf] %vm2086_vm3, %v2393_v47  ;;  %v1636_v15 = vmul.f32 %v2957_v59, %v1328_v53  ;;  %v3549_v31 = vmax.f32 %v3023_v43, 0.0  ;;  %v2558_v18 = vpop.f32.mrb[38].mxu1 }
 0x160   : > { %v1966_v27 = vmax.f32 %v1916_v48, %v1941_v4  ;;  %v3550_v32 = vmax.f32 %v3026_v44, 0.0  ;;  %v1688_v34 = vmul.f32 %v2957_v59, %v1536_v42  ;;  %v1641_v38 = vmul.f32 %v2505_v36, %v2957_v59  ;;  %v1341_v48 = vpop.f32.mrb[37].mxu0  ;;  %v1552_v46 = vpop.f32.mrb[39].mxu1 }
 0x161   : > { %v1917_v58 = vmax.f32 %v3549_v31, %v1842_v9  ;;  %v1845_v29 = vmax.f32 %v1745_v11, 0.0  ;;  %v1897_v17 = vmax.f32 %v1797_v40, 0.0  ;;  %v1743_v53 = vadd.f32 %v2964_v2, %v1636_v15  ;;  %v2506_v41 = vpop.f32.mrb[38].mxu0 }
 0x162   : > { %v1944_v10 = vmax.f32 %v3550_v32, %v1894_v45  ;;  %v2395_v39 = vpack.c.bf16 %v1966_v27, %v1966_v27  ;;  %v1795_v44 = vadd.f32 %v2964_v2, %v1688_v34  ;;  %v1748_v47 = vadd.f32 %v2964_v2, %v1641_v38  ;;  %v1344_v42 = vpop.f32.mrb[39].mxu0 }
 0x163   : > { %v1967_v43 = vmax.f32 %v1917_v58, %v3274_v1  ;;  %v3551_v4 = vmax.f32 %v3053_v13, 0.0  ;;  %v3552_v30 = vmax.f32 %v3056_v14, 0.0  ;;  %v1843_v12 = vmax.f32 %v1743_v53, 0.0 }
 0x164   : > { %v1969_v7 = vmax.f32 %v1919_v56, %v1944_v10  ;;  %2093 = vst.msk [vmem:[%s3265_s18 + $0x18] sm:$0xf] %vm2086_vm3, %v2395_v39  ;;  %v1693_v1 = vmul.f32 %v2557_v35, %v2957_v59  ;;  %v1895_v45 = vmax.f32 %v1795_v44, 0.0  ;;  %v1848_v27 = vmax.f32 %v1748_v47, 0.0  ;;  %v2561_v39 = vpop.f32.mrb[40].mxu1 }
 0x165   : > { %v1920_v33 = vmax.f32 %v3551_v4, %v1845_v29  ;;  %v3335_v23 = vmax.f32 %v3552_v30, %v1897_v17  ;;  %v2396_v56 = vpack.c.bf16 %v1967_v43, %v1967_v43  ;;  %v3553_v11 = vmax.f32 %v3061_v19, 0.0 }
 0x166   : > { %v2398_v9 = vpack.c.bf16 %v1969_v7, %v1969_v7  ;;  %v1800_v15 = vadd.f32 %v2964_v2, %v1693_v1  ;;  %v1639_v36 = vmul.f32 %v2957_v59, %v1341_v48  ;;  %v1691_v13 = vmul.f32 %v2957_v59, %v1549_v21  ;;  %v2509_v21 = vpop.f32.mrb[40].mxu0 }
 0x167   : > { %v1918_v40 = vmax.f32 %v3553_v11, %v1843_v12  ;;  %2094 = vst.msk [vmem:[%s3265_s18 + $0x1c] sm:$0xf] %vm2086_vm3, %v2396_v56  ;;  %v3554_v14 = vmax.f32 %v3064_v20, 0.0  ;;  %v3555_v31 = vmax.f32 %v3111_v22, 0.0  ;;  %v1642_v32 = vmul.f32 %v2506_v41, %v2957_v59  ;;  %v1357_v53 = vpop.f32.mrb[41].mxu0  ;;  %v1565_v41 = vpop.f32.mrb[41].mxu1 }
 0x168   : > { %2096 = vst.msk [vmem:[%s3265_s18 + $0x24] sm:$0xf] %vm2086_vm3, %v2398_v9  ;;  %v1694_v19 = vmul.f32 %v2558_v18, %v2957_v59  ;;  %v1900_v34 = vmax.f32 %v1800_v15, 0.0  ;;  %v1746_v38 = vadd.f32 %v2964_v2, %v1639_v36  ;;  %v1798_v48 = vadd.f32 %v2964_v2, %v1691_v13  ;;  %v2510_v47 = vpop.f32.mrb[42].mxu0  ;;  %v2562_v4 = vpop.f32.mrb[42].mxu1 }
 0x169   : > { %v1945_v35 = vmax.f32 %v3554_v14, %v1895_v45  ;;  %v1923_v58 = vmax.f32 %v3555_v31, %v1848_v27  ;;  %v1968_v10 = vmax.f32 %v1918_v40, %v3287_v62  ;;  %v1749_v20 = vadd.f32 %v2964_v2, %v1642_v32  ;;  %v1360_v56 = vpop.f32.mrb[43].mxu0  ;;  %v1568_v9 = vpop.f32.mrb[43].mxu1 }
 0x16a   : > { %v1801_v17 = vadd.f32 %v2964_v2, %v1694_v19  ;;  %v1640_v22 = vmul.f32 %v2957_v59, %v1344_v42  ;;  %v3556_v62 = vmax.f32 %v3114_v0, 0.0  ;;  %v1846_v7 = vmax.f32 %v1746_v38, 0.0 }
 0x16b   : > { %v1970_v29 = vmax.f32 %v1920_v33, %v1945_v35  ;;  %v2397_v18 = vpack.c.bf16 %v1968_v10, %v1968_v10  ;;  %v1898_v44 = vmax.f32 %v1798_v48, 0.0  ;;  %v1849_v30 = vmax.f32 %v1749_v20, 0.0 }
 0x16c   : > { %v3361_v43 = vmax.f32 %v3556_v62, %v1900_v34  ;;  %v1901_v12 = vmax.f32 %v1801_v17, 0.0  ;;  %v1747_v1 = vadd.f32 %v2964_v2, %v1640_v22  ;;  %v3557_v42 = vmax.f32 %v3069_v25, 0.0 }
 0x16d   : > { %v2399_v33 = vpack.c.bf16 %v1970_v29, %v1970_v29  ;;  %2095 = vst.msk [vmem:[%s3265_s18 + $0x20] sm:$0xf] %vm2086_vm3, %v2397_v18  ;;  %v3558_v0 = vmax.f32 %v3072_v26, 0.0  ;;  %v1692_v11 = vmul.f32 %v2957_v59, %v1552_v46  ;;  %v1645_v40 = vmul.f32 %v2509_v21, %v2957_v59 }
 0x16e   : > { %v1921_v45 = vmax.f32 %v3557_v42, %v1846_v7  ;;  %v3559_v15 = vmax.f32 %v3087_v60, 0.0  ;;  %v3560_v13 = vmax.f32 %v3090_v61, 0.0  ;;  %v1847_v35 = vmax.f32 %v1747_v1, 0.0 }
 0x16f   : > { %v1948_v27 = vmax.f32 %v3558_v0, %v1898_v44  ;;  %2097 = vst.msk [vmem:[%s3265_s18 + $0x28] sm:$0xf] %vm2086_vm3, %v2399_v33  ;;  %v1697_v25 = vmul.f32 %v2561_v39, %v2957_v59  ;;  %v1799_v32 = vadd.f32 %v2964_v2, %v1692_v11  ;;  %v1752_v46 = vadd.f32 %v2964_v2, %v1645_v40  ;;  %v2565_v39 = vpop.f32.mrb[44].mxu1 }
 0x170   : > { %v1924_v36 = vmax.f32 %v3559_v15, %v1849_v30  ;;  %v3378_v14 = vmax.f32 %v3560_v13, %v1901_v12  ;;  %v1971_v31 = vmax.f32 %v1921_v45, %v3312_v24  ;;  %v3561_v19 = vmax.f32 %v3095_v5, 0.0  ;;  %v1581_v18 = vpop.f32.mrb[45].mxu1 }
 0x171   : > { %v1973_v26 = vmax.f32 %v1923_v58, %v1948_v27  ;;  %v1804_v60 = vadd.f32 %v2964_v2, %v1697_v25  ;;  %v1643_v61 = vmul.f32 %v2957_v59, %v1357_v53  ;;  %v1695_v34 = vmul.f32 %v2957_v59, %v1565_v41  ;;  %v2513_v58 = vpop.f32.mrb[44].mxu0  ;;  %v2566_v30 = vpop.f32.mrb[46].mxu1 }
 0x172   : > { %v1922_v10 = vmax.f32 %v3561_v19, %v1847_v35  ;;  %v2400_v38 = vpack.c.bf16 %v1971_v31, %v1971_v31  ;;  %v1899_v21 = vmax.f32 %v1799_v32, 0.0  ;;  %v1852_v24 = vmax.f32 %v1752_v46, 0.0  ;;  %v1373_v22 = vpop.f32.mrb[45].mxu0 }
 0x173   : > { %v2402_v48 = vpack.c.bf16 %v1973_v26, %v1973_v26  ;;  %v1904_v20 = vmax.f32 %v1804_v60, 0.0  ;;  %v1750_v5 = vadd.f32 %v2964_v2, %v1643_v61  ;;  %v1802_v17 = vadd.f32 %v2964_v2, %v1695_v34  ;;  %v2514_v33 = vpop.f32.mrb[46].mxu0 }
 0x174   : > { %v1972_v29 = vmax.f32 %v1922_v10, %v3335_v23  ;;  %2098 = vst.msk [vmem:[%s3265_s18 + $0x2c] sm:$0xf] %vm2086_vm3, %v2400_v38  ;;  %v3562_v53 = vmax.f32 %v3098_v6, 0.0  ;;  %v3563_v62 = vmax.f32 %v3157_v8, 0.0  ;;  %v1646_v23 = vmul.f32 %v2510_v47, %v2957_v59  ;;  %v1376_v27 = vpop.f32.mrb[47].mxu0  ;;  %v1584_v6 = vpop.f32.mrb[47].mxu1 }
 0x175   : > { %2100 = vst.msk [vmem:[%s3265_s18 + $0x34] sm:$0xf] %vm2086_vm3, %v2402_v48  ;;  %v1698_v44 = vmul.f32 %v2562_v4, %v2957_v59  ;;  %v3564_v1 = vmax.f32 %v3163_v50, 0.0  ;;  %v1850_v45 = vmax.f32 %v1750_v5, 0.0  ;;  %v1902_v0 = vmax.f32 %v1802_v17, 0.0  ;;  %v2517_v38 = vpop.f32.mrb[48].mxu0 }
 0x176   : > { %v1949_v41 = vmax.f32 %v3562_v53, %v1899_v21  ;;  %v1927_v7 = vmax.f32 %v3563_v62, %v1852_v24  ;;  %v2401_v12 = vpack.c.bf16 %v1972_v29, %v1972_v29  ;;  %v1753_v8 = vadd.f32 %v2964_v2, %v1646_v23 }
 0x177   : > { %v3404_v42 = vmax.f32 %v3564_v1, %v1904_v20  ;;  %v1805_v40 = vadd.f32 %v2964_v2, %v1698_v44  ;;  %v1644_v47 = vmul.f32 %v2957_v59, %v1360_v56  ;;  %v3565_v4 = vmax.f32 %v3103_v16, 0.0 }
 0x178   : > { %v1974_v11 = vmax.f32 %v1924_v36, %v1949_v41  ;;  %2099 = vst.msk [vmem:[%s3265_s18 + $0x30] sm:$0xf] %vm2086_vm3, %v2401_v12  ;;  %v3566_v50 = vmax.f32 %v3106_v55, 0.0  ;;  %v1696_v35 = vmul.f32 %v2957_v59, %v1568_v9  ;;  %v1649_v25 = vmul.f32 %v2513_v58, %v2957_v59  ;;  %v1389_v58 = vpop.f32.mrb[49].mxu0 }
 0x179   : > { %v1925_v15 = vmax.f32 %v3565_v4, %v1850_v45  ;;  %v1853_v31 = vmax.f32 %v1753_v8, 0.0  ;;  %v1905_v26 = vmax.f32 %v1805_v40, 0.0  ;;  %v1751_v32 = vadd.f32 %v2964_v2, %v1644_v47  ;;  %v2518_v17 = vpop.f32.mrb[50].mxu0 }
 0x17a   : > { %v1952_v13 = vmax.f32 %v3566_v50, %v1902_v0  ;;  %v2403_v36 = vpack.c.bf16 %v1974_v11, %v1974_v11  ;;  %v1803_v19 = vadd.f32 %v2964_v2, %v1696_v35  ;;  %v1756_v16 = vadd.f32 %v2964_v2, %v1649_v25  ;;  %v1392_v23 = vpop.f32.mrb[51].mxu0  ;;  %v3575_v25 = vld [vmem:[#allocation3_spill] sm:$0xff] }
 0x17b   : > { %v1975_v46 = vmax.f32 %v1925_v15, %v3361_v43  ;;  %v3567_v55 = vmax.f32 %v3133_v63, 0.0  ;;  %v3568_v10 = vmax.f32 %v3136_v57, 0.0  ;;  %v1851_v61 = vmax.f32 %v1751_v32, 0.0 }
 0x17c   : > { %v1977_v56 = vmax.f32 %v1927_v7, %v1952_v13  ;;  %2101 = vst.msk [vmem:[%s3265_s18 + $0x38] sm:$0xf] %vm2086_vm3, %v2403_v36  ;;  %v1701_v34 = vmul.f32 %v2565_v39, %v2957_v59  ;;  %v1903_v21 = vmax.f32 %v1803_v19, 0.0  ;;  %v1856_v24 = vmax.f32 %v1756_v16, 0.0 }
 0x17d   : > { %v1928_v9 = vmax.f32 %v3567_v55, %v1853_v31  ;;  %v1955_v60 = vmax.f32 %v3568_v10, %v1905_v26  ;;  %v2404_v43 = vpack.c.bf16 %v1975_v46, %v1975_v46  ;;  %v3569_v29 = vmax.f32 %v3141_v54, 0.0  ;;  %v3577_v26 = vld [vmem:[#allocation4_spill] sm:$0xff]  ;;  %v3579_v55 = vld [vmem:[#allocation5_spill] sm:$0xff] }
 0x17e   : > { %v2406_v48 = vpack.c.bf16 %v1977_v56, %v1977_v56  ;;  %v1808_v63 = vadd.f32 %v2964_v2, %v1701_v34  ;;  %v1647_v5 = vmul.f32 %v2957_v59, %v1373_v22  ;;  %v1699_v57 = vmul.f32 %v2957_v59, %v1581_v18 }
 0x17f   : > { %v1926_v20 = vmax.f32 %v3569_v29, %v1851_v61  ;;  %2102 = vst.msk [vmem:[%s3265_s18 + $0x3c] sm:$0xf] %vm2086_vm3, %v2404_v43  ;;  %v3570_v39 = vmax.f32 %v3144_v3, 0.0  ;;  %v3571_v41 = vmax.f32 %v3198_v51, 0.0  ;;  %v1650_v54 = vmul.f32 %v2514_v33, %v2957_v59 }
 0x180   : > { %2104 = vst.msk [vmem:[%s3265_s18 + $0x44] sm:$0xf] %vm2086_vm3, %v2406_v48  ;;  %v1702_v7 = vmul.f32 %v2566_v30, %v2957_v59  ;;  %v1908_v18 = vmax.f32 %v1808_v63, 0.0  ;;  %v1754_v44 = vadd.f32 %v2964_v2, %v1647_v5  ;;  %v1806_v12 = vadd.f32 %v2964_v2, %v1699_v57  ;;  %v3581_v5 = vld [vmem:[#allocation10_spill] sm:$0xff] }
 0x181   : > { %v1953_v53 = vmax.f32 %v3570_v39, %v1903_v21  ;;  %v1931_v62 = vmax.f32 %v3571_v41, %v1856_v24  ;;  %v1976_v22 = vmax.f32 %v1926_v20, %v3378_v14  ;;  %v1757_v3 = vadd.f32 %v2964_v2, %v1650_v54  ;;  %v3586_v54 = vld [vmem:[#allocation6_spill] sm:$0xff] }
 0x182   : > { %v1809_v51 = vadd.f32 %v2964_v2, %v1702_v7  ;;  %v1648_v45 = vmul.f32 %v2957_v59, %v1376_v27  ;;  %v3572_v30 = vmax.f32 %v3206_v49, 0.0  ;;  %v1854_v11 = vmax.f32 %v1754_v44, 0.0 }
 0x183   : > { %v1978_v1 = vmax.f32 %v1928_v9, %v1953_v53  ;;  %v2405_v33 = vpack.c.bf16 %v1976_v22, %v1976_v22  ;;  %v1906_v14 = vmax.f32 %v1806_v12, 0.0  ;;  %v1857_v40 = vmax.f32 %v1757_v3, 0.0  ;;  %v3584_v53 = vld [vmem:[#allocation8_spill] sm:$0xff] }
 0x184   : > { %v1958_v0 = vmax.f32 %v3572_v30, %v1908_v18  ;;  %v1909_v47 = vmax.f32 %v1809_v51, 0.0  ;;  %v1755_v4 = vadd.f32 %v2964_v2, %v1648_v45  ;;  %v3573_v15 = vmax.f32 %v3149_v28, 0.0  ;;  %v3588_v18 = vld [vmem:[#allocation11_spill] sm:$0xff]  ;;  %v3589_v30 = vld [vmem:[#allocation9_spill] sm:$0xff] }
 0x185   : > { %v2407_v8 = vpack.c.bf16 %v1978_v1, %v1978_v1  ;;  %2103 = vst.msk [vmem:[%s3265_s18 + $0x40] sm:$0xf] %vm2086_vm3, %v2405_v33  ;;  %v3574_v13 = vmax.f32 %v3152_v52, 0.0  ;;  %v1700_v27 = vmul.f32 %v2957_v59, %v1584_v6  ;;  %v1653_v49 = vmul.f32 %v2517_v38, %v2957_v59 }
 0x186   : > { %v1929_v50 = vmax.f32 %v3573_v15, %v1854_v11  ;;  %v3576_v36 = vmax.f32 %v3575_v25, 0.0  ;;  %v3578_v32 = vmax.f32 %v3577_v26, 0.0  ;;  %v1855_v56 = vmax.f32 %v1755_v4, 0.0 }
 0x187   : > { %v1956_v35 = vmax.f32 %v3574_v13, %v1906_v14  ;;  %2105 = vst.msk [vmem:[%s3265_s18 + $0x48] sm:$0xf] %vm2086_vm3, %v2407_v8  ;;  %v1651_v19 = vmul.f32 %v2957_v59, %v1389_v58  ;;  %v1807_v52 = vadd.f32 %v2964_v2, %v1700_v27  ;;  %v1760_v6 = vadd.f32 %v2964_v2, %v1653_v49 }
 0x188   : > { %v1932_v31 = vmax.f32 %v3576_v36, %v1857_v40  ;;  %v1959_v46 = vmax.f32 %v3578_v32, %v1909_v47  ;;  %v1979_v28 = vmax.f32 %v1929_v50, %v3404_v42  ;;  %v3580_v9 = vmax.f32 %v3579_v55, 0.0 }
 0x189   : > { %v1981_v16 = vmax.f32 %v1931_v62, %v1956_v35  ;;  %v1758_v61 = vadd.f32 %v2964_v2, %v1651_v19  ;;  %v1654_v34 = vmul.f32 %v2518_v17, %v2957_v59  ;;  %v1652_v38 = vmul.f32 %v2957_v59, %v1392_v23  ;;  %v3582_v59 = vld [vmem:[#allocation7_spill] sm:$0xff] }
 0x18a   : > { %v1930_v10 = vmax.f32 %v3580_v9, %v1855_v56  ;;  %v2408_v43 = vpack.c.bf16 %v1979_v28, %v1979_v28  ;;  %v1907_v21 = vmax.f32 %v1807_v52, 0.0  ;;  %v1860_v42 = vmax.f32 %v1760_v6, 0.0 }
 0x18b   : > { %v2410_v48 = vpack.c.bf16 %v1981_v16, %v1981_v16  ;;  %v1858_v58 = vmax.f32 %v1758_v61, 0.0  ;;  %v1761_v29 = vadd.f32 %v2964_v2, %v1654_v34  ;;  %v1759_v20 = vadd.f32 %v2964_v2, %v1652_v38 }
 0x18c   : > { %v1980_v24 = vmax.f32 %v1930_v10, %v1955_v60  ;;  %v1834_v63 = vmax.f32 %v3235_v37, 0.0  ;;  %v1886_v57 = vmax.f32 %v3581_v5, 0.0  ;;  %2106 = vst.msk [vmem:[%s3265_s18 + $0x4c] sm:$0xf] %vm2086_vm3, %v2408_v43  ;;  %v3583_v17 = vmax.f32 %v3582_v59, 0.0 }
 0x18d   : > { %2108 = vst.msk [vmem:[%s3265_s18 + $0x54] sm:$0xf] %vm2086_vm3, %v2410_v48  ;;  %v3585_v41 = vmax.f32 %v3584_v53, 0.0  ;;  %v3587_v7 = vmax.f32 %v3586_v54, 0.0  ;;  %v1861_v37 = vmax.f32 %v1761_v29, 0.0  ;;  %v1859_v23 = vmax.f32 %v1759_v20, 0.0 }
 0x18e   : > { %v1957_v39 = vmax.f32 %v3583_v17, %v1907_v21  ;;  %v2409_v62 = vpack.c.bf16 %v1980_v24, %v1980_v24 }
 0x18f   : > { %v1935_v60 = vmax.f32 %v1860_v42, %v3585_v41  ;;  %v1933_v2 = vmax.f32 %v3587_v7, %v1858_v58  ;;  %v1936_v1 = vmax.f32 %v1861_v37, %v1886_v57  ;;  %v1934_v3 = vmax.f32 %v1834_v63, %v1859_v23 }
 0x190   : > { %v1982_v22 = vmax.f32 %v1932_v31, %v1957_v39  ;;  %2107 = vst.msk [vmem:[%s3265_s18 + $0x50] sm:$0xf] %vm2086_vm3, %v2409_v62 }
 0x191   : > { %v1960_v44 = vmax.f32 %v3588_v18, %v1935_v60  ;;  %v1983_v12 = vmax.f32 %v1933_v2, %v1958_v0  ;;  %v1961_v11 = vmax.f32 %v3589_v30, %v1936_v1  ;;  %v1984_v14 = vmax.f32 %v1934_v3, %v1959_v46 }
 0x192   : > { %v2411_v51 = vpack.c.bf16 %v1982_v22, %v1982_v22 }
 0x193   : > { %v2389_v45 = vpack.c.bf16 %v1960_v44, %v1960_v44  ;;  %v2412_v33 = vpack.c.bf16 %v1983_v12, %v1983_v12  ;;  %v2390_v8 = vpack.c.bf16 %v1961_v11, %v1961_v11  ;;  %v2413_v40 = vpack.c.bf16 %v1984_v14, %v1984_v14 }
 0x194   : > { %2109 = vst.msk [vmem:[%s3265_s18 + $0x58] sm:$0xf] %vm2086_vm3, %v2411_v51 }
 0x195   : > { %2087 = vst.msk [vmem:[%s3265_s18] sm:$0xf] %vm2086_vm3, %v2389_v45  ;;  %2110 = vst.msk [vmem:[%s3265_s18 + $0x5c] sm:$0xf] %vm2086_vm3, %v2412_v33 }
 0x196   : > { %2088 = vst.msk [vmem:[%s3265_s18 + $0x4] sm:$0xf] %vm2086_vm3, %v2390_v8  ;;  %2111 = vst.msk [vmem:[%s3265_s18 + $0x60] sm:$0xf] %vm2086_vm3, %v2413_v40 }
 0x197 PF: > { %p11_p9 = scmp.ge.s32.totalorder %s2716_s19, 4   ;;  %s3590_s15 = smov %s2667_s16 }
 0x198   : > { %s3591_s16 = smov %s2725_s22  ;;  %s3592_s17 = smov %s2716_s19 }
 0x199   :  { %13 = sbr.rel (!%p11_p9) target bundleno = 2 (0x2), region = 115 }

// kernel: _lambda_.4
= control target key start
LH: loop header
LB: loop body
LE: loop exit
PB: predicated region body
PF: predicated region fallthrough
CT: control target
= control target key end

     0   :  { %s1231_s15 = smov 0   ;;  %s1233_s16 = smov 0   ;;  %s1509_s0 = inlined_call_operand.vmem [shape: bf16[4,128,72], index: 0, kind: input, shape index: {}]   ;;  %s1510_s1 = inlined_call_operand.vmem [shape: bf16[72,32], index: 1, kind: input, shape index: {}]   ;;  %s1511_s2 = inlined_call_operand.vmem [shape: f32[1,32], index: 2, kind: input, shape index: {}]   ;;  %s1512_s3 = inlined_call_operand.vmem [shape: f32[1,32], index: 3, kind: input, shape index: {}]   ;;  %s1513_s4 = inlined_call_operand.vmem [shape: bf16[128,32], index: 4, kind: output, shape index: {}]  }
   0x1   :  { %s1235_s17 = smov 0  }
   0x2 LB: > { %s969_s18 = sadd.s32 4294967295, %s1204_s17   ;;  %s1248_s19 = sadd.s32 1, %s1204_s17   ;;  %s1204_s17 = sphi %s1235_s17, %s1516_s17   ;;  %s1200_s16 = sphi %s1233_s16, %s1515_s16   ;;  %s1196_s15 = sphi %s1231_s15, %s1514_s15  }
   0x3   : > { %s18_s20 = ssub.s32 %s1204_s17, %s1248_s19  ;;  %s21_s21 = sadd.s32 1, %s1200_s16 }
   0x4   : > { %p19_p0 = scmp.eq.s32.totalorder %s18_s20, 0  ;;  %p28_p1 = scmp.ne.s32.totalorder %s1200_s16, %s1196_s15 }
   0x5   : > { %p29_p2 = scmp.eq.s32.totalorder %s1204_s17, 0  ;;  %p972_p4 = scmp.ge.s32.totalorder %s1204_s17, 2 }
   0x6   : > { %s1257_s22 = scalar_select %p19_p0, %s1200_s16, %s21_s21  }
   0x7   : > { %p30_p3 = por %p29_p2, %p28_p1  ;;  %152 = sbr.rel (%p972_p4) target bundleno = 26 (0x1a), region = 28 }
   0xe   : > { %155 = sbr.rel (!%p30_p3) target bundleno = 26 (0x1a), region = 32  ;;  %s157_s23 = sand.u32 (%p30_p3), 1, %s1200_s16  }
   0xf   : > { %s1053_s24 = sshll.u32 (%p30_p3), %s1204_s17, 5  ;;  %s973_s25 = sshll.u32 (%p30_p3), %s157_s23, 7 }
  0x10   : > { %s1265_s28 = scalar_lea.vmem (%p30_p3), %s1509_s0, %s1053_s24  ;;  %s159_s29 = scalar_lea.vmem (%p30_p3), [#allocation2], %s973_s25 }
  0x11   : > { %v178_v0 = vld [vmem:[%s1265_s28] sm:$0xff] (%p30_p3)   ;;  %v182_v1 = vld [vmem:[%s1265_s28 + $0x8] sm:$0xff] (%p30_p3)   ;;  %v186_v2 = vld [vmem:[%s1265_s28 + $0x10] sm:$0xff] (%p30_p3)  }
  0x12   : > { %179 = vst [vmem:[%s159_s29] sm:$0xff] (%p30_p3), %v178_v0   ;;  %183 = vst [vmem:[%s159_s29 + $0x8] sm:$0xff] (%p30_p3), %v182_v1   ;;  %v190_v3 = vld [vmem:[%s1265_s28 + $0x18] sm:$0xff] (%p30_p3)   ;;  %v194_v4 = vld [vmem:[%s1265_s28 + $0x40] sm:$0xff] (%p30_p3)  }
  0x13   : > { %187 = vst [vmem:[%s159_s29 + $0x10] sm:$0xff] (%p30_p3), %v186_v2   ;;  %v198_v5 = vld [vmem:[%s1265_s28 + $0x48] sm:$0xff] (%p30_p3)   ;;  %191 = vst [vmem:[%s159_s29 + $0x18] sm:$0xff] (%p30_p3), %v190_v3   ;;  %v202_v6 = vld [vmem:[%s1265_s28 + $0x50] sm:$0xff] (%p30_p3)  }
  0x14   : > { %195 = vst [vmem:[%s159_s29 + $0x20] sm:$0xff] (%p30_p3), %v194_v4   ;;  %199 = vst [vmem:[%s159_s29 + $0x28] sm:$0xff] (%p30_p3), %v198_v5   ;;  %v206_v7 = vld [vmem:[%s1265_s28 + $0x58] sm:$0xff] (%p30_p3)   ;;  %v210_v8 = vld [vmem:[%s1265_s28 + $0x80] sm:$0xff] (%p30_p3)  }
  0x15   : > { %203 = vst [vmem:[%s159_s29 + $0x30] sm:$0xff] %v202_v6   ;;  %207 = vst [vmem:[%s159_s29 + $0x38] sm:$0xff] %v206_v7   ;;  %v214_v9 = vld [vmem:[%s1265_s28 + $0x88] sm:$0xff]   ;;  %v218_v10 = vld [vmem:[%s1265_s28 + $0x90] sm:$0xff]  }
  0x16   : > { %211 = vst [vmem:[%s159_s29 + $0x40] sm:$0xff] %v210_v8   ;;  %v222_v11 = vld [vmem:[%s1265_s28 + $0x98] sm:$0xff]   ;;  %215 = vst [vmem:[%s159_s29 + $0x48] sm:$0xff] %v214_v9   ;;  %v226_v12 = vld [vmem:[%s1265_s28 + $0xc0] sm:$0xff]  }
  0x17   : > { %219 = vst [vmem:[%s159_s29 + $0x50] sm:$0xff] %v218_v10   ;;  %223 = vst [vmem:[%s159_s29 + $0x58] sm:$0xff] %v222_v11   ;;  %v230_v13 = vld [vmem:[%s1265_s28 + $0xc8] sm:$0xff]   ;;  %v234_v14 = vld [vmem:[%s1265_s28 + $0xd0] sm:$0xff]  }
  0x18   : > { %227 = vst [vmem:[%s159_s29 + $0x60] sm:$0xff] %v226_v12   ;;  %231 = vst [vmem:[%s159_s29 + $0x68] sm:$0xff] %v230_v13   ;;  %v238_v15 = vld [vmem:[%s1265_s28 + $0xd8] sm:$0xff]  }
  0x19   : > { %235 = vst [vmem:[%s159_s29 + $0x70] sm:$0xff] %v234_v14   ;;  %239 = vst [vmem:[%s159_s29 + $0x78] sm:$0xff] %v238_v15  }
  0x1a PF: > { %p976_p5 = scmp.ge.s32.totalorder %s1204_s17, 1  ;;  %p327_p6 = scmp.lt.s32.totalorder %s1204_s17, 3 }
  0x1c   : > { %p328_p7 = pnand %p976_p5, %p327_p6 }
  0x1d   : > { %v1161_v16 = vld [vmem:[%s1510_s1] sm:$0xff] (!%p328_p7)   ;;  %v1162_v17 = vld [vmem:[%s1510_s1 + $0x8] sm:$0xff] (!%p328_p7)   ;;  %s334_s8 = sand.u32 (!%p328_p7), 1, %s1196_s15   ;;  %v1163_v18 = vld [vmem:[%s1510_s1 + $0x10] sm:$0xff] (!%p328_p7)   ;;  %vm518_vm0 = vcmask (!%p328_p7), 588800   ;;  %vm567_vm1 = vcmask (!%p328_p7), 1043456  }
  0x1e   : > { %331 = sbr.rel (%p328_p7) target bundleno = 306 (0x132), region = 73  ;;  %1083 = vmatprep.subr.bf16.mxu0 (!%p328_p7), %v1161_v16  ;;  %1125 = vmatprep.subr.bf16.mxu1 (!%p328_p7), %v1161_v16  ;;  %s977_s9 = sshll.u32 (!%p328_p7), %s334_s8, 7  ;;  %v1164_v21 = vld [vmem:[%s1510_s1 + $0x18] sm:$0xff] (!%p328_p7)   ;;  %v1165_v22 = vld [vmem:[%s1510_s1 + $0x20] ss:$0 sps:$4 sm:$0xff] (!%p328_p7)   ;;  %vm898_vm2 = vcmask (!%p328_p7), 257024  }
  0x1f   : > { %1084 = vmatpush3.bf16.msra.mxu0 (!%p328_p7), %v1161_v16  ;;  %1130 = vmatpush3.bf16.msra.mxu1 (!%p328_p7), %v1161_v16  ;;  %s1295_s12 = scalar_lea.vmem (!%p328_p7), [#allocation2], %s977_s9  ;;  %v569_v23 = vsel (!%p328_p7), %vm567_vm1, %v1165_v22, 0  ;;  %v1338_v40 = vld [vmem:[%s1511_s2] ss:$0 sm:$0xff] (!%p328_p7)  ;;  %s1394_s26 = sshll.u32 (!%p328_p7), %s969_s18, 3 }
  0x20   : > { %1085 = vmatprep.subr.bf16.mxu0 (!%p328_p7), %v1162_v17  ;;  %1126 = vmatprep.subr.bf16.mxu1 (!%p328_p7), %v1162_v17  ;;  %v1166_v19 = vld [vmem:[%s1295_s12] sm:$0xff] (!%p328_p7)   ;;  %v1168_v24 = vld [vmem:[%s1295_s12 + $0x8] sm:$0xff] (!%p328_p7)   ;;  %v1170_v26 = vld [vmem:[%s1295_s12 + $0x10] sm:$0xff] (!%p328_p7)   ;;  %p361_p8 = scmp.lt.s32.totalorder (!%p328_p7), %s1394_s26, 15 }
  0x21   : > { %v1167_v20 = vld [vmem:[%s1295_s12 + $0x40] sm:$0xff] (!%p328_p7)   ;;  %1093 = vmatprep.mubr.msk.bf16.mxu0 (!%p328_p7), %vm518_vm0, %v1166_v19  ;;  %v1169_v25 = vld [vmem:[%s1295_s12 + $0x48] sm:$0xff] (!%p328_p7)   ;;  %v1171_v27 = vld [vmem:[%s1295_s12 + $0x50] sm:$0xff] (!%p328_p7)  }
  0x22   : > { %1109 = vmatprep.mubr.msk.bf16.mxu1 (!%p328_p7), %vm518_vm0, %v1167_v20  ;;  %v1172_v28 = vld [vmem:[%s1295_s12 + $0x18] sm:$0xff] (!%p328_p7)   ;;  %v1174_v30 = vld [vmem:[%s1295_s12 + $0x20] sm:$0xff] (!%p328_p7)   ;;  %v1176_v32 = vld [vmem:[%s1295_s12 + $0x28] sm:$0xff] (!%p328_p7)  }
  0x23   : > { %1086 = vmatpush3.bf16.msra.mxu0 (!%p328_p7), %v1162_v17  ;;  %1131 = vmatpush3.bf16.msra.mxu1 (!%p328_p7), %v1162_v17  ;;  %v1173_v29 = vld [vmem:[%s1295_s12 + $0x58] sm:$0xff] (!%p328_p7)   ;;  %v1175_v31 = vld [vmem:[%s1295_s12 + $0x60] sm:$0xff] (!%p328_p7)   ;;  %v1177_v33 = vld [vmem:[%s1295_s12 + $0x68] sm:$0xff] (!%p328_p7)  }
  0x24   : > { %1087 = vmatprep.subr.bf16.mxu0 (!%p328_p7), %v1163_v18  ;;  %1127 = vmatprep.subr.bf16.mxu1 (!%p328_p7), %v1163_v18  ;;  %v1178_v34 = vld [vmem:[%s1295_s12 + $0x30] sm:$0xff] (!%p328_p7)   ;;  %v1180_v36 = vld [vmem:[%s1295_s12 + $0x38] sm:$0xff] (!%p328_p7)   ;;  %v1344_v48 = vld [vmem:[%s1512_s3] ss:$0 sm:$0xff] (!%p328_p7) }
  0x25   : > { %v1179_v35 = vld [vmem:[%s1295_s12 + $0x70] sm:$0xff]   ;;  %v1181_v37 = vld [vmem:[%s1295_s12 + $0x78] sm:$0xff]   ;;  %s1518_s26 = smov (!%p361_p8, %s1394_s26), 15 }
  0x26   : > { %s979_s17 = sshll.u32 %s1518_s26, 2 }
  0x27   : > { %1088 = vmatpush3.bf16.msra.mxu0 %v1163_v18  ;;  %1132 = vmatpush3.bf16.msra.mxu1 %v1163_v18  ;;  %s1453_s28 = scalar_lea.vmem %s1513_s4, %s979_s17 }
  0x28   : > { %1089 = vmatprep.subr.bf16.mxu0 %v1164_v21  ;;  %1128 = vmatprep.subr.bf16.mxu1 %v1164_v21 }
  0x2b   : > { %1090 = vmatpush3.bf16.msra.mxu0 %v1164_v21  ;;  %1133 = vmatpush3.bf16.msra.mxu1 %v1164_v21 }
  0x2c   : > { %1135 = vmatprep.subr.msk.bf16.mxu0 %vm567_vm1, %v1165_v22  ;;  %1136 = vmatprep.subr.msk.bf16.mxu1 %vm567_vm1, %v1165_v22 }
  0x2f   : > { %1092 = vmatpush3.bf16.msra.mxu0 %v569_v23  ;;  %1134 = vmatpush3.bf16.msra.mxu1 %v569_v23 }
  0x32   : > { %1094 = vmatmul.mubr.msk.bf16.vlgmr.msra.gmra.mrb[0].mxu0 %vm518_vm0, %v1168_v24  ;;  %1110 = vmatmul.mubr.msk.bf16.vlgmr.msra.gmra.mrb[0].mxu1 %vm518_vm0, %v1169_v25 }
  0x33   : > { %1097 = vmatprep.mubr.msk.bf16.mxu0 %vm518_vm0, %v1170_v26  ;;  %1113 = vmatprep.mubr.msk.bf16.mxu1 %vm518_vm0, %v1171_v27 }
  0x3a   : > { %1098 = vmatmul.mubr.msk.bf16.gmra.mrb[4].mxu0 %vm518_vm0, %v1172_v28  ;;  %1114 = vmatmul.mubr.msk.bf16.gmra.mrb[4].mxu1 %vm518_vm0, %v1173_v29 }
  0x3b   : > { %1101 = vmatprep.mubr.msk.bf16.mxu0 %vm518_vm0, %v1174_v30  ;;  %1117 = vmatprep.mubr.msk.bf16.mxu1 %vm518_vm0, %v1175_v31 }
  0x42   : > { %1102 = vmatmul.mubr.msk.bf16.gmra.mrb[8].mxu0 %vm518_vm0, %v1176_v32  ;;  %1118 = vmatmul.mubr.msk.bf16.gmra.mrb[8].mxu1 %vm518_vm0, %v1177_v33 }
  0x43   : > { %1105 = vmatprep.mubr.msk.bf16.mxu0 %vm518_vm0, %v1178_v34  ;;  %1121 = vmatprep.mubr.msk.bf16.mxu1 %vm518_vm0, %v1179_v35 }
  0x4a   : > { %1106 = vmatmul.mubr.msk.bf16.gmra.mrb[12].mxu0 %vm518_vm0, %v1180_v36  ;;  %1122 = vmatmul.mubr.msk.bf16.gmra.mrb[12].mxu1 %vm518_vm0, %v1181_v37 }
 0x105   : > { %v1095_v38 = vpop.f32.mrb[0].mxu0  ;;  %v1111_v39 = vpop.f32.mrb[0].mxu1 }
 0x106   : > { %v605_v41 = vpop.f32.mrb[1].mxu0  ;;  %v669_v42 = vpop.f32.mrb[1].mxu1  ;;  %v741_v47 = vmul.f32 %v1095_v38, %v1338_v40  ;;  %v757_v49 = vmul.f32 %v1111_v39, %v1338_v40 }
 0x107   : > { %v1096_v43 = vpop.f32.mrb[2].mxu0  ;;  %v1112_v44 = vpop.f32.mrb[2].mxu1  ;;  %v739_v50 = vmul.f32 %v1338_v40, %v605_v41  ;;  %v755_v51 = vmul.f32 %v1338_v40, %v669_v42 }
 0x108   : > { %v608_v45 = vpop.f32.mrb[3].mxu0  ;;  %v672_v46 = vpop.f32.mrb[3].mxu1  ;;  %v742_v52 = vmul.f32 %v1096_v43, %v1338_v40  ;;  %v758_v53 = vmul.f32 %v1112_v44, %v1338_v40  ;;  %v1354_v56 = vadd.f32 %v1344_v48, %v741_v47  ;;  %v1357_v59 = vadd.f32 %v1344_v48, %v757_v49 }
 0x109   : > { %v740_v54 = vmul.f32 %v1338_v40, %v608_v45  ;;  %v756_v55 = vmul.f32 %v1338_v40, %v672_v46  ;;  %v1360_v60 = vadd.f32 %v1344_v48, %v739_v50  ;;  %v1365_v1 = vadd.f32 %v1344_v48, %v755_v51 }
 0x10a   : > { %v1368_v2 = vadd.f32 %v1344_v48, %v742_v52  ;;  %v1373_v7 = vadd.f32 %v1344_v48, %v758_v53  ;;  %v812_v17 = vmax.f32 %v1354_v56, 0.0  ;;  %v828_v18 = vmax.f32 %v1357_v59, 0.0 }
 0x10b   : > { %v1376_v8 = vadd.f32 %v1344_v48, %v740_v54  ;;  %v1379_v9 = vadd.f32 %v1344_v48, %v756_v55  ;;  %v810_v21 = vmax.f32 %v1360_v60, 0.0  ;;  %v826_v22 = vmax.f32 %v1365_v1, 0.0 }
 0x10c   : > { %v813_v25 = vmax.f32 %v1368_v2, 0.0  ;;  %v829_v26 = vmax.f32 %v1373_v7, 0.0 }
 0x10d   : > { %v1099_v57 = vpop.f32.mrb[4].mxu0  ;;  %v1115_v58 = vpop.f32.mrb[4].mxu1  ;;  %v811_v27 = vmax.f32 %v1376_v8, 0.0  ;;  %v827_v28 = vmax.f32 %v1379_v9, 0.0 }
 0x10e   : > { %v745_v61 = vmul.f32 %v1099_v57, %v1338_v40  ;;  %v761_v62 = vmul.f32 %v1115_v58, %v1338_v40  ;;  %v621_v63 = vpop.f32.mrb[5].mxu0  ;;  %v685_v0 = vpop.f32.mrb[5].mxu1 }
 0x10f   : > { %v743_v3 = vmul.f32 %v1338_v40, %v621_v63  ;;  %v759_v4 = vmul.f32 %v1338_v40, %v685_v0  ;;  %v1100_v5 = vpop.f32.mrb[6].mxu0  ;;  %v1116_v6 = vpop.f32.mrb[6].mxu1 }
 0x110   : > { %v746_v10 = vmul.f32 %v1100_v5, %v1338_v40  ;;  %v624_v11 = vpop.f32.mrb[7].mxu0  ;;  %v688_v12 = vpop.f32.mrb[7].mxu1  ;;  %v1383_v13 = vadd.f32 %v1344_v48, %v745_v61  ;;  %v1386_v14 = vadd.f32 %v1344_v48, %v761_v62  ;;  %v762_v16 = vmul.f32 %v1116_v6, %v1338_v40 }
 0x111   : > { %v1389_v15 = vadd.f32 %v1344_v48, %v743_v3  ;;  %v1399_v19 = vadd.f32 %v1344_v48, %v759_v4  ;;  %v744_v20 = vmul.f32 %v1338_v40, %v624_v11  ;;  %v760_v24 = vmul.f32 %v1338_v40, %v688_v12 }
 0x112   : > { %v1405_v23 = vadd.f32 %v1344_v48, %v746_v10  ;;  %v816_v29 = vmax.f32 %v1383_v13, 0.0  ;;  %v832_v30 = vmax.f32 %v1386_v14, 0.0  ;;  %v1417_v32 = vadd.f32 %v1344_v48, %v762_v16 }
 0x113   : > { %v814_v31 = vmax.f32 %v1389_v15, 0.0  ;;  %v830_v35 = vmax.f32 %v1399_v19, 0.0  ;;  %v1421_v36 = vadd.f32 %v1344_v48, %v744_v20  ;;  %v1427_v43 = vadd.f32 %v1344_v48, %v760_v24 }
 0x114   : > { %v817_v42 = vmax.f32 %v1405_v23, 0.0 }
 0x115   : > { %v1103_v33 = vpop.f32.mrb[8].mxu0  ;;  %v1119_v34 = vpop.f32.mrb[8].mxu1 }
 0x116   : > { %v749_v37 = vmul.f32 %v1103_v33, %v1338_v40  ;;  %v765_v38 = vmul.f32 %v1119_v34, %v1338_v40  ;;  %v637_v39 = vpop.f32.mrb[9].mxu0  ;;  %v701_v41 = vpop.f32.mrb[9].mxu1 }
 0x117   : > { %v747_v44 = vmul.f32 %v1338_v40, %v637_v39  ;;  %v763_v45 = vmul.f32 %v1338_v40, %v701_v41  ;;  %v1104_v46 = vpop.f32.mrb[10].mxu0  ;;  %v1120_v47 = vpop.f32.mrb[10].mxu1 }
 0x118   : > { %v788_v49 = vadd.f32 %v1344_v48, %v749_v37  ;;  %v804_v50 = vadd.f32 %v1344_v48, %v765_v38  ;;  %v750_v51 = vmul.f32 %v1104_v46, %v1338_v40  ;;  %v766_v52 = vmul.f32 %v1120_v47, %v1338_v40  ;;  %v640_v53 = vpop.f32.mrb[11].mxu0  ;;  %v704_v54 = vpop.f32.mrb[11].mxu1 }
 0x119   : > { %v786_v55 = vadd.f32 %v1344_v48, %v747_v44  ;;  %v802_v56 = vadd.f32 %v1344_v48, %v763_v45  ;;  %v748_v57 = vmul.f32 %v1338_v40, %v640_v53  ;;  %v764_v58 = vmul.f32 %v1338_v40, %v704_v54 }
 0x11a   : > { %v820_v59 = vmax.f32 %v788_v49, 0.0  ;;  %v836_v60 = vmax.f32 %v804_v50, 0.0  ;;  %v789_v61 = vadd.f32 %v1344_v48, %v750_v51  ;;  %v805_v62 = vadd.f32 %v1344_v48, %v766_v52 }
 0x11b   : > { %v818_v63 = vmax.f32 %v786_v55, 0.0  ;;  %v834_v0 = vmax.f32 %v802_v56, 0.0  ;;  %v787_v1 = vadd.f32 %v1344_v48, %v748_v57  ;;  %v803_v2 = vadd.f32 %v1344_v48, %v764_v58 }
 0x11c   : > { %v844_v3 = vmax.f32 %v812_v17, %v820_v59  ;;  %v852_v4 = vmax.f32 %v828_v18, %v836_v60  ;;  %v821_v5 = vmax.f32 %v789_v61, 0.0  ;;  %v837_v6 = vmax.f32 %v805_v62, 0.0 }
 0x11d   : > { %v842_v7 = vmax.f32 %v810_v21, %v818_v63  ;;  %v850_v8 = vmax.f32 %v826_v22, %v834_v0  ;;  %v819_v9 = vmax.f32 %v787_v1, 0.0  ;;  %v835_v10 = vmax.f32 %v803_v2, 0.0  ;;  %v1107_v11 = vpop.f32.mrb[12].mxu0  ;;  %v1123_v12 = vpop.f32.mrb[12].mxu1 }
 0x11e   : > { %v860_v16 = vmax.f32 %v844_v3, %v852_v4  ;;  %v845_v20 = vmax.f32 %v813_v25, %v821_v5  ;;  %v853_v24 = vmax.f32 %v829_v26, %v837_v6  ;;  %v753_v33 = vmul.f32 %v1107_v11, %v1338_v40  ;;  %v653_v34 = vpop.f32.mrb[13].mxu0  ;;  %v717_v37 = vpop.f32.mrb[13].mxu1 }
 0x11f   : > { %v858_v17 = vmax.f32 %v842_v7, %v850_v8  ;;  %v843_v18 = vmax.f32 %v811_v27, %v819_v9  ;;  %v851_v21 = vmax.f32 %v827_v28, %v835_v10  ;;  %v769_v22 = vmul.f32 %v1123_v12, %v1338_v40  ;;  %v1108_v38 = vpop.f32.mrb[14].mxu0  ;;  %v1124_v39 = vpop.f32.mrb[14].mxu1 }
 0x120   : > { %v1056_v25 = vpack.c.bf16 %v860_v16, %v860_v16  ;;  %v861_v26 = vmax.f32 %v845_v20, %v853_v24  ;;  %v792_v41 = vadd.f32 %v1344_v48, %v753_v33  ;;  %v751_v44 = vmul.f32 %v1338_v40, %v653_v34  ;;  %v656_v45 = vpop.f32.mrb[15].mxu0  ;;  %v720_v46 = vpop.f32.mrb[15].mxu1 }
 0x121   : > { %v1054_v47 = vpack.c.bf16 %v858_v17, %v858_v17  ;;  %v859_v49 = vmax.f32 %v843_v18, %v851_v21  ;;  %v808_v50 = vadd.f32 %v1344_v48, %v769_v22  ;;  %v767_v27 = vmul.f32 %v1338_v40, %v717_v37 }
 0x122   : > { %901 = vst.msk [vmem:[%s1453_s28 + $0x8] sm:$0xf] %vm898_vm2, %v1056_v25  ;;  %v1057_v28 = vpack.c.bf16 %v861_v26, %v861_v26  ;;  %v824_v51 = vmax.f32 %v792_v41, 0.0  ;;  %v790_v52 = vadd.f32 %v1344_v48, %v751_v44  ;;  %v754_v53 = vmul.f32 %v1108_v38, %v1338_v40 }
 0x123   : > { %899 = vst.msk [vmem:[%s1453_s28] sm:$0xf] %vm898_vm2, %v1054_v47  ;;  %v1055_v54 = vpack.c.bf16 %v859_v49, %v859_v49  ;;  %v840_v55 = vmax.f32 %v808_v50, 0.0  ;;  %v806_v56 = vadd.f32 %v1344_v48, %v767_v27  ;;  %v770_v57 = vmul.f32 %v1124_v39, %v1338_v40 }
 0x124   : > { %902 = vst.msk [vmem:[%s1453_s28 + $0xc] sm:$0xf] %vm898_vm2, %v1057_v28  ;;  %v848_v58 = vmax.f32 %v816_v29, %v824_v51  ;;  %v822_v59 = vmax.f32 %v790_v52, 0.0  ;;  %v793_v60 = vadd.f32 %v1344_v48, %v754_v53  ;;  %v752_v61 = vmul.f32 %v1338_v40, %v656_v45 }
 0x125   : > { %900 = vst.msk [vmem:[%s1453_s28 + $0x4] sm:$0xf] %vm898_vm2, %v1055_v54  ;;  %v856_v62 = vmax.f32 %v832_v30, %v840_v55  ;;  %v838_v63 = vmax.f32 %v806_v56, 0.0  ;;  %v809_v0 = vadd.f32 %v1344_v48, %v770_v57  ;;  %v768_v1 = vmul.f32 %v1338_v40, %v720_v46 }
 0x126   : > { %v833_v2 = vmax.f32 %v1417_v32, 0.0  ;;  %v846_v13 = vmax.f32 %v814_v31, %v822_v59  ;;  %v825_v29 = vmax.f32 %v793_v60, 0.0  ;;  %v791_v3 = vadd.f32 %v1344_v48, %v752_v61 }
 0x127   : > { %v864_v4 = vmax.f32 %v848_v58, %v856_v62  ;;  %v854_v5 = vmax.f32 %v830_v35, %v838_v63  ;;  %v841_v14 = vmax.f32 %v809_v0, 0.0  ;;  %v807_v30 = vadd.f32 %v1344_v48, %v768_v1 }
 0x128   : > { %v815_v6 = vmax.f32 %v1421_v36, 0.0  ;;  %v831_v40 = vmax.f32 %v1427_v43, 0.0  ;;  %v849_v15 = vmax.f32 %v817_v42, %v825_v29  ;;  %v823_v31 = vmax.f32 %v791_v3, 0.0 }
 0x129   : > { %v1060_v32 = vpack.c.bf16 %v864_v4, %v864_v4  ;;  %v862_v7 = vmax.f32 %v846_v13, %v854_v5  ;;  %v857_v8 = vmax.f32 %v833_v2, %v841_v14  ;;  %v839_v9 = vmax.f32 %v807_v30, 0.0 }
 0x12a   : > { %v847_v19 = vmax.f32 %v815_v6, %v823_v31 }
 0x12b   : > { %905 = vst.msk [vmem:[%s1453_s28 + $0x18] sm:$0xf] %vm898_vm2, %v1060_v32  ;;  %v1058_v35 = vpack.c.bf16 %v862_v7, %v862_v7  ;;  %v865_v10 = vmax.f32 %v849_v15, %v857_v8  ;;  %v855_v48 = vmax.f32 %v831_v40, %v839_v9 }
 0x12d   : > { %903 = vst.msk [vmem:[%s1453_s28 + $0x10] sm:$0xf] %vm898_vm2, %v1058_v35  ;;  %v1061_v36 = vpack.c.bf16 %v865_v10, %v865_v10  ;;  %v863_v11 = vmax.f32 %v847_v19, %v855_v48 }
 0x12f   : > { %906 = vst.msk [vmem:[%s1453_s28 + $0x1c] sm:$0xf] %vm898_vm2, %v1061_v36  ;;  %v1059_v23 = vpack.c.bf16 %v863_v11, %v863_v11 }
 0x131   : > { %904 = vst.msk [vmem:[%s1453_s28 + $0x14] sm:$0xf] %vm898_vm2, %v1059_v23 }
 0x132 PF: > { %p11_p9 = scmp.ge.s32.totalorder %s1248_s19, 4   ;;  %s1514_s15 = smov %s1200_s16 }
 0x133   : > { %s1515_s16 = smov %s1257_s22  ;;  %s1516_s17 = smov %s1248_s19 }
 0x134   :  { %13 = sbr.rel (!%p11_p9) target bundleno = 2 (0x2), region = 115 }

// kernel: _lambda_.5
= control target key start
LH: loop header
LB: loop body
LE: loop exit
PB: predicated region body
PF: predicated region fallthrough
CT: control target
= control target key end

     0   :  { %vm7607_vm0 = vmmov 0   ;;  %s9842_s1 = inlined_call_operand.vmem [shape: bf16[2048,640], index: 1, kind: input, shape index: {}]   ;;  %s9843_s0 = inlined_call_operand.vmem [shape: bf16[8,2048], index: 0, kind: input, shape index: {}]   ;;  %s9844_s3 = inlined_call_operand.vmem [shape: bf16[640,128], index: 3, kind: input, shape index: {}]   ;;  %s9845_s2 = inlined_call_operand.vmem [shape: f32[1,640], index: 2, kind: input, shape index: {}]   ;;  %s9846_s4 = inlined_call_operand.vmem [shape: f32[1,128], index: 4, kind: input, shape index: {}]   ;;  %s9847_s5 = inlined_call_operand.vmem [shape: f32[8,128], index: 5, kind: output, shape index: {}]  }
   0x1   :  { %v6654_v0 = vld [vmem:[%s9842_s1 + $0x4] ss:$20 sps:$4 sm:$0xff]   ;;  %v6656_v1 = vld [vmem:[%s9842_s1 + $0xc] ss:$20 sps:$4 sm:$0xff]   ;;  %v6659_v3 = vld [vmem:[%s9842_s1 + $0x8] ss:$20 sps:$4 sm:$0xff]  }
   0x2   :  { %4208 = vmatprep.subr.bf16.mxu0 %v6654_v0  ;;  %v6658_v2 = vld [vmem:[%s9842_s1] ss:$20 sps:$4 sm:$0xff]   ;;  %4536 = vmatprep.subr.bf16.mxu1 %v6656_v1  ;;  %v6664_v6 = vld [vmem:[%s9842_s1 + $0x28] ss:$20 sps:$4 sm:$0xff]   ;;  %v6665_v7 = vld [vmem:[%s9842_s1 + $0x30] ss:$20 sps:$4 sm:$0xff]  }
   0x3   :  { %v6660_v4 = vld [vmem:[%s9842_s1 + $0x2c] ss:$20 sps:$4 sm:$0xff]   ;;  %4209 = vmatpush1.bf16.msra.mxu0 %v6658_v2  ;;  %4537 = vmatpush1.bf16.msra.mxu1 %v6659_v3  ;;  %v6662_v5 = vld [vmem:[%s9842_s1 + $0x34] ss:$20 sps:$4 sm:$0xff]   ;;  %v6668_v9 = vld [vmem:[%s9842_s1 + $0x5c] ss:$20 sps:$4 sm:$0xff]  }
   0x4   :  { %4210 = vmatprep.subr.bf16.mxu0 %v6660_v4  ;;  %4538 = vmatprep.subr.bf16.mxu1 %v6662_v5  ;;  %v6666_v8 = vld [vmem:[%s9842_s1 + $0x54] ss:$20 sps:$4 sm:$0xff]   ;;  %v6670_v10 = vld [vmem:[%s9842_s1 + $0x50] ss:$20 sps:$4 sm:$0xff]   ;;  %v6671_v11 = vld [vmem:[%s9842_s1 + $0x58] ss:$20 sps:$4 sm:$0xff]  }
   0x5   :  { %v6672_v12 = vld [vmem:[%s9842_s1 + $0x7c] ss:$20 sps:$4 sm:$0xff]   ;;  %v6674_v13 = vld [vmem:[%s9842_s1 + $0x84] ss:$20 sps:$4 sm:$0xff]   ;;  %v6677_v15 = vld [vmem:[%s9842_s1 + $0x80] ss:$20 sps:$4 sm:$0xff]  }
   0x6   :  { %v6676_v14 = vld [vmem:[%s9842_s1 + $0x78] ss:$20 sps:$4 sm:$0xff]   ;;  %v6682_v18 = vld [vmem:[%s9842_s1 + $0xa0] ss:$20 sps:$4 sm:$0xff]   ;;  %v6683_v19 = vld [vmem:[%s9842_s1 + $0xa8] ss:$20 sps:$4 sm:$0xff]  }
   0x7   :  { %4211 = vmatpush1.bf16.msra.mxu0 %v6664_v6  ;;  %4539 = vmatpush1.bf16.msra.mxu1 %v6665_v7  ;;  %v6678_v16 = vld [vmem:[%s9842_s1 + $0xa4] ss:$20 sps:$4 sm:$0xff]   ;;  %v6680_v17 = vld [vmem:[%s9842_s1 + $0xac] ss:$20 sps:$4 sm:$0xff]   ;;  %v6686_v21 = vld [vmem:[%s9842_s1 + $0xd4] ss:$20 sps:$4 sm:$0xff]  }
   0x8   :  { %4212 = vmatprep.subr.bf16.mxu0 %v6666_v8  ;;  %4540 = vmatprep.subr.bf16.mxu1 %v6668_v9  ;;  %v6684_v20 = vld [vmem:[%s9842_s1 + $0xcc] ss:$20 sps:$4 sm:$0xff]   ;;  %v6688_v22 = vld [vmem:[%s9842_s1 + $0xc8] ss:$20 sps:$4 sm:$0xff]   ;;  %v6689_v23 = vld [vmem:[%s9842_s1 + $0xd0] ss:$20 sps:$4 sm:$0xff]  }
   0x9   :  { %v6690_v24 = vld [vmem:[%s9842_s1 + $0xf4] ss:$20 sps:$4 sm:$0xff]   ;;  %v6692_v25 = vld [vmem:[%s9842_s1 + $0xfc] ss:$20 sps:$4 sm:$0xff]   ;;  %v6695_v27 = vld [vmem:[%s9842_s1 + $0xf8] ss:$20 sps:$4 sm:$0xff]  }
   0xa   :  { %v6694_v26 = vld [vmem:[%s9842_s1 + $0xf0] ss:$20 sps:$4 sm:$0xff]   ;;  %v6700_v30 = vld [vmem:[%s9842_s1 + $0x118] ss:$20 sps:$4 sm:$0xff]   ;;  %v6701_v31 = vld [vmem:[%s9842_s1 + $0x120] ss:$20 sps:$4 sm:$0xff]  }
   0xb   :  { %4213 = vmatpush1.bf16.msra.mxu0 %v6670_v10  ;;  %4541 = vmatpush1.bf16.msra.mxu1 %v6671_v11  ;;  %v6696_v28 = vld [vmem:[%s9842_s1 + $0x11c] ss:$20 sps:$4 sm:$0xff]   ;;  %v6698_v29 = vld [vmem:[%s9842_s1 + $0x124] ss:$20 sps:$4 sm:$0xff]   ;;  %v6704_v33 = vld [vmem:[%s9842_s1 + $0x14c] ss:$20 sps:$4 sm:$0xff]  }
   0xc   :  { %4214 = vmatprep.subr.bf16.mxu0 %v6672_v12  ;;  %4542 = vmatprep.subr.bf16.mxu1 %v6674_v13  ;;  %v6702_v32 = vld [vmem:[%s9842_s1 + $0x144] ss:$20 sps:$4 sm:$0xff]   ;;  %v6706_v34 = vld [vmem:[%s9842_s1 + $0x140] ss:$20 sps:$4 sm:$0xff]   ;;  %v6707_v35 = vld [vmem:[%s9842_s1 + $0x148] ss:$20 sps:$4 sm:$0xff]  }
   0xd   :  { %v6708_v36 = vld [vmem:[%s9842_s1 + $0x16c] ss:$20 sps:$4 sm:$0xff]   ;;  %v6710_v37 = vld [vmem:[%s9842_s1 + $0x174] ss:$20 sps:$4 sm:$0xff]   ;;  %v6713_v39 = vld [vmem:[%s9842_s1 + $0x170] ss:$20 sps:$4 sm:$0xff]  }
   0xe   :  { %v6712_v38 = vld [vmem:[%s9842_s1 + $0x168] ss:$20 sps:$4 sm:$0xff]   ;;  %v6718_v42 = vld [vmem:[%s9842_s1 + $0x190] ss:$20 sps:$4 sm:$0xff]   ;;  %v6719_v43 = vld [vmem:[%s9842_s1 + $0x198] ss:$20 sps:$4 sm:$0xff]  }
   0xf   :  { %4215 = vmatpush1.bf16.msra.mxu0 %v6676_v14  ;;  %4543 = vmatpush1.bf16.msra.mxu1 %v6677_v15  ;;  %v6714_v40 = vld [vmem:[%s9842_s1 + $0x194] ss:$20 sps:$4 sm:$0xff]   ;;  %v6716_v41 = vld [vmem:[%s9842_s1 + $0x19c] ss:$20 sps:$4 sm:$0xff]   ;;  %v6722_v45 = vld [vmem:[%s9842_s1 + $0x1c4] ss:$20 sps:$4 sm:$0xff]  }
  0x10   :  { %4216 = vmatprep.subr.bf16.mxu0 %v6678_v16  ;;  %4544 = vmatprep.subr.bf16.mxu1 %v6680_v17  ;;  %v6720_v44 = vld [vmem:[%s9842_s1 + $0x1bc] ss:$20 sps:$4 sm:$0xff]   ;;  %v21_v46 = vld [vmem:[%s9843_s0] sm:$0xff]  ;;  %v6724_v47 = vld [vmem:[%s9842_s1 + $0x1b8] ss:$20 sps:$4 sm:$0xff]  }
  0x11   :  { %v7782_v48 = vcombine.high %v21_v46, %v21_v46  ;;  %v6725_v49 = vld [vmem:[%s9842_s1 + $0x1c0] ss:$20 sps:$4 sm:$0xff]   ;;  %v6726_v50 = vld [vmem:[%s9842_s1 + $0x1e4] ss:$20 sps:$4 sm:$0xff]   ;;  %v6731_v53 = vld [vmem:[%s9842_s1 + $0x1e8] ss:$20 sps:$4 sm:$0xff]   ;;  %v7846_v5 = vcombine.low %v21_v46, %v21_v46 }
  0x12   :  { %v6728_v51 = vld [vmem:[%s9842_s1 + $0x1ec] ss:$20 sps:$4 sm:$0xff]   ;;  %v6734_v55 = vld [vmem:[%s9842_s1 + $0x214] ss:$20 sps:$4 sm:$0xff]   ;;  %v6737_v57 = vld [vmem:[%s9842_s1 + $0x210] ss:$20 sps:$4 sm:$0xff]  }
  0x13   :  { %4217 = vmatpush1.bf16.msra.mxu0 %v6682_v18  ;;  %4545 = vmatpush1.bf16.msra.mxu1 %v6683_v19  ;;  %v6730_v52 = vld [vmem:[%s9842_s1 + $0x1e0] ss:$20 sps:$4 sm:$0xff]   ;;  %v6736_v56 = vld [vmem:[%s9842_s1 + $0x208] ss:$20 sps:$4 sm:$0xff]   ;;  %v6742_v60 = vld [vmem:[%s9842_s1 + $0x230] ss:$20 sps:$4 sm:$0xff]  }
  0x14   :  { %4218 = vmatprep.subr.bf16.mxu0 %v6684_v20  ;;  %4546 = vmatprep.subr.bf16.mxu1 %v6686_v21  ;;  %v6732_v54 = vld [vmem:[%s9842_s1 + $0x20c] ss:$20 sps:$4 sm:$0xff]   ;;  %v6738_v58 = vld [vmem:[%s9842_s1 + $0x234] ss:$20 sps:$4 sm:$0xff]   ;;  %v6740_v59 = vld [vmem:[%s9842_s1 + $0x23c] ss:$20 sps:$4 sm:$0xff]  }
  0x15   :  { %4240 = vmatprep.mubr.bf16.mxu0 %v7782_v48  ;;  %4568 = vmatprep.mubr.bf16.mxu1 %v7782_v48  ;;  %v6743_v61 = vld [vmem:[%s9842_s1 + $0x238] ss:$20 sps:$4 sm:$0xff]   ;;  %v6744_v62 = vld [vmem:[%s9842_s1 + $0x25c] ss:$20 sps:$4 sm:$0xff]   ;;  %v6749_v1 = vld [vmem:[%s9842_s1 + $0x260] ss:$20 sps:$4 sm:$0xff]  }
  0x16   :  { %v6746_v63 = vld [vmem:[%s9842_s1 + $0x264] ss:$20 sps:$4 sm:$0xff]   ;;  %v6756_v3 = vld [vmem:[%s9842_s1 + $0x28c] ss:$20 sps:$4 sm:$0xff]   ;;  %v6754_v6 = vld [vmem:[%s9842_s1 + $0x288] ss:$20 sps:$4 sm:$0xff]  }
  0x17   :  { %4219 = vmatpush1.bf16.msra.mxu0 %v6688_v22  ;;  %4547 = vmatpush1.bf16.msra.mxu1 %v6689_v23  ;;  %v6748_v0 = vld [vmem:[%s9842_s1 + $0x258] ss:$20 sps:$4 sm:$0xff]   ;;  %v6751_v4 = vld [vmem:[%s9842_s1 + $0x280] ss:$20 sps:$4 sm:$0xff]   ;;  %v6758_v9 = vld [vmem:[%s9842_s1 + $0x2a8] ss:$20 sps:$4 sm:$0xff]  }
  0x18   :  { %4220 = vmatprep.subr.bf16.mxu0 %v6690_v24  ;;  %4548 = vmatprep.subr.bf16.mxu1 %v6692_v25  ;;  %v6753_v2 = vld [vmem:[%s9842_s1 + $0x284] ss:$20 sps:$4 sm:$0xff]   ;;  %v6760_v7 = vld [vmem:[%s9842_s1 + $0x2ac] ss:$20 sps:$4 sm:$0xff]   ;;  %v6763_v8 = vld [vmem:[%s9842_s1 + $0x2b4] ss:$20 sps:$4 sm:$0xff]  }
  0x19   :  { %v6761_v10 = vld [vmem:[%s9842_s1 + $0x2b0] ss:$20 sps:$4 sm:$0xff]   ;;  %v6766_v11 = vld [vmem:[%s9842_s1 + $0x2d4] ss:$20 sps:$4 sm:$0xff]   ;;  %v6767_v14 = vld [vmem:[%s9842_s1 + $0x2d8] ss:$20 sps:$4 sm:$0xff]  }
  0x1a   :  { %v6769_v12 = vld [vmem:[%s9842_s1 + $0x2dc] ss:$20 sps:$4 sm:$0xff]   ;;  %v6775_v16 = vld [vmem:[%s9842_s1 + $0x304] ss:$20 sps:$4 sm:$0xff]   ;;  %v6773_v18 = vld [vmem:[%s9842_s1 + $0x300] ss:$20 sps:$4 sm:$0xff]  }
  0x1b   :  { %4221 = vmatpush1.bf16.msra.mxu0 %v6694_v26  ;;  %4549 = vmatpush1.bf16.msra.mxu1 %v6695_v27  ;;  %v6764_v13 = vld [vmem:[%s9842_s1 + $0x2d0] ss:$20 sps:$4 sm:$0xff]   ;;  %v6770_v17 = vld [vmem:[%s9842_s1 + $0x2f8] ss:$20 sps:$4 sm:$0xff]   ;;  %v6776_v21 = vld [vmem:[%s9842_s1 + $0x320] ss:$20 sps:$4 sm:$0xff]  }
  0x1c   :  { %4222 = vmatprep.subr.bf16.mxu0 %v6696_v28  ;;  %4550 = vmatprep.subr.bf16.mxu1 %v6698_v29  ;;  %v6772_v15 = vld [vmem:[%s9842_s1 + $0x2fc] ss:$20 sps:$4 sm:$0xff]   ;;  %v6778_v19 = vld [vmem:[%s9842_s1 + $0x324] ss:$20 sps:$4 sm:$0xff]   ;;  %v6781_v20 = vld [vmem:[%s9842_s1 + $0x32c] ss:$20 sps:$4 sm:$0xff]  }
  0x1d   :  { %v6779_v22 = vld [vmem:[%s9842_s1 + $0x328] ss:$20 sps:$4 sm:$0xff]   ;;  %v6784_v23 = vld [vmem:[%s9842_s1 + $0x34c] ss:$20 sps:$4 sm:$0xff]   ;;  %v6785_v26 = vld [vmem:[%s9842_s1 + $0x350] ss:$20 sps:$4 sm:$0xff]  }
  0x1e   :  { %v6787_v24 = vld [vmem:[%s9842_s1 + $0x354] ss:$20 sps:$4 sm:$0xff]   ;;  %v6793_v28 = vld [vmem:[%s9842_s1 + $0x37c] ss:$20 sps:$4 sm:$0xff]  }
  0x1f   :  { %4223 = vmatpush1.bf16.msra.mxu0 %v6700_v30  ;;  %4551 = vmatpush1.bf16.msra.mxu1 %v6701_v31  ;;  %v6782_v25 = vld [vmem:[%s9842_s1 + $0x348] ss:$20 sps:$4 sm:$0xff]   ;;  %v6788_v31 = vld [vmem:[%s9842_s1 + $0x370] ss:$20 sps:$4 sm:$0xff]  }
  0x20   :  { %4224 = vmatprep.subr.bf16.mxu0 %v6702_v32  ;;  %4552 = vmatprep.subr.bf16.mxu1 %v6704_v33  ;;  %v6790_v27 = vld [vmem:[%s9842_s1 + $0x374] ss:$20 sps:$4 sm:$0xff]   ;;  %v6791_v32 = vld [vmem:[%s9842_s1 + $0x378] ss:$20 sps:$4 sm:$0xff]   ;;  %v6796_v33 = vld [vmem:[%s9842_s1 + $0x39c] ss:$20 sps:$4 sm:$0xff]  }
  0x21   :  { %v7922_v29 = vld [vmem:[%s9843_s0 + $0x8] sm:$0xff]  ;;  %v6817_v46 = vld [vmem:[%s9842_s1 + $0x41c] ss:$20 sps:$4 sm:$0xff]  }
  0x22   :  { %v7926_v30 = vcombine.high %v7922_v29, %v7922_v29 }
  0x23   :  { %4225 = vmatpush1.bf16.msra.mxu0 %v6706_v34  ;;  %4553 = vmatpush1.bf16.msra.mxu1 %v6707_v35  ;;  %v6799_v34 = vld [vmem:[%s9842_s1 + $0x3a4] ss:$20 sps:$4 sm:$0xff]  }
  0x24   :  { %4226 = vmatprep.subr.bf16.mxu0 %v6708_v36  ;;  %4554 = vmatprep.subr.bf16.mxu1 %v6710_v37  ;;  %v6794_v35 = vld [vmem:[%s9842_s1 + $0x398] ss:$20 sps:$4 sm:$0xff]   ;;  %v6797_v36 = vld [vmem:[%s9842_s1 + $0x3a0] ss:$20 sps:$4 sm:$0xff]  }
  0x25   :  { %v6802_v37 = vld [vmem:[%s9842_s1 + $0x3c4] ss:$20 sps:$4 sm:$0xff]  }
  0x27   :  { %4227 = vmatpush1.bf16.msra.mxu0 %v6712_v38  ;;  %4555 = vmatpush1.bf16.msra.mxu1 %v6713_v39  ;;  %v6805_v38 = vld [vmem:[%s9842_s1 + $0x3cc] ss:$20 sps:$4 sm:$0xff]  }
  0x28   :  { %4228 = vmatprep.subr.bf16.mxu0 %v6714_v40  ;;  %4556 = vmatprep.subr.bf16.mxu1 %v6716_v41  ;;  %v6800_v39 = vld [vmem:[%s9842_s1 + $0x3c0] ss:$20 sps:$4 sm:$0xff]   ;;  %v6803_v40 = vld [vmem:[%s9842_s1 + $0x3c8] ss:$20 sps:$4 sm:$0xff]  }
  0x29   :  { %v6808_v41 = vld [vmem:[%s9842_s1 + $0x3ec] ss:$20 sps:$4 sm:$0xff]  }
  0x2b   :  { %4229 = vmatpush1.bf16.msra.mxu0 %v6718_v42  ;;  %4557 = vmatpush1.bf16.msra.mxu1 %v6719_v43  ;;  %v6811_v42 = vld [vmem:[%s9842_s1 + $0x3f4] ss:$20 sps:$4 sm:$0xff]  }
  0x2c   :  { %4230 = vmatprep.subr.bf16.mxu0 %v6720_v44  ;;  %4558 = vmatprep.subr.bf16.mxu1 %v6722_v45  ;;  %v6806_v43 = vld [vmem:[%s9842_s1 + $0x3e8] ss:$20 sps:$4 sm:$0xff]   ;;  %v6809_v44 = vld [vmem:[%s9842_s1 + $0x3f0] ss:$20 sps:$4 sm:$0xff]  }
  0x2d   :  { %v6814_v45 = vld [vmem:[%s9842_s1 + $0x414] ss:$20 sps:$4 sm:$0xff]  }
  0x2f   :  { %4231 = vmatpush1.bf16.msra.mxu0 %v6724_v47  ;;  %4559 = vmatpush1.bf16.msra.mxu1 %v6725_v49  ;;  %v6812_v47 = vld [vmem:[%s9842_s1 + $0x410] ss:$20 sps:$4 sm:$0xff]   ;;  %v6815_v49 = vld [vmem:[%s9842_s1 + $0x418] ss:$20 sps:$4 sm:$0xff]  }
  0x30   :  { %4232 = vmatprep.subr.bf16.mxu0 %v6726_v50  ;;  %4560 = vmatprep.subr.bf16.mxu1 %v6728_v51  ;;  %v6820_v50 = vld [vmem:[%s9842_s1 + $0x43c] ss:$20 sps:$4 sm:$0xff]   ;;  %v6823_v51 = vld [vmem:[%s9842_s1 + $0x444] ss:$20 sps:$4 sm:$0xff]  }
  0x33   :  { %4233 = vmatpush1.bf16.msra.mxu0 %v6730_v52  ;;  %4561 = vmatpush1.bf16.msra.mxu1 %v6731_v53  ;;  %v6818_v52 = vld [vmem:[%s9842_s1 + $0x438] ss:$20 sps:$4 sm:$0xff]   ;;  %v6821_v53 = vld [vmem:[%s9842_s1 + $0x440] ss:$20 sps:$4 sm:$0xff]  }
  0x34   :  { %4234 = vmatprep.subr.bf16.mxu0 %v6732_v54  ;;  %4562 = vmatprep.subr.bf16.mxu1 %v6734_v55  ;;  %v6826_v54 = vld [vmem:[%s9842_s1 + $0x464] ss:$20 sps:$4 sm:$0xff]   ;;  %v6829_v55 = vld [vmem:[%s9842_s1 + $0x46c] ss:$20 sps:$4 sm:$0xff]  }
  0x37   :  { %4235 = vmatpush1.bf16.msra.mxu0 %v6736_v56  ;;  %4563 = vmatpush1.bf16.msra.mxu1 %v6737_v57  ;;  %v6824_v56 = vld [vmem:[%s9842_s1 + $0x460] ss:$20 sps:$4 sm:$0xff]   ;;  %v6827_v57 = vld [vmem:[%s9842_s1 + $0x468] ss:$20 sps:$4 sm:$0xff]  }
  0x38   :  { %4236 = vmatprep.subr.bf16.mxu0 %v6738_v58  ;;  %4564 = vmatprep.subr.bf16.mxu1 %v6740_v59  ;;  %v6832_v58 = vld [vmem:[%s9842_s1 + $0x48c] ss:$20 sps:$4 sm:$0xff]   ;;  %v6835_v59 = vld [vmem:[%s9842_s1 + $0x494] ss:$20 sps:$4 sm:$0xff]  }
  0x3b   :  { %4237 = vmatpush1.bf16.msra.mxu0 %v6742_v60  ;;  %4565 = vmatpush1.bf16.msra.mxu1 %v6743_v61  ;;  %v6830_v60 = vld [vmem:[%s9842_s1 + $0x488] ss:$20 sps:$4 sm:$0xff]   ;;  %v6833_v61 = vld [vmem:[%s9842_s1 + $0x490] ss:$20 sps:$4 sm:$0xff]  }
  0x3c   :  { %4238 = vmatprep.subr.bf16.mxu0 %v6744_v62  ;;  %4566 = vmatprep.subr.bf16.mxu1 %v6746_v63  ;;  %v6838_v62 = vld [vmem:[%s9842_s1 + $0x4b4] ss:$20 sps:$4 sm:$0xff]   ;;  %v6841_v63 = vld [vmem:[%s9842_s1 + $0x4bc] ss:$20 sps:$4 sm:$0xff]  }
  0x3f   :  { %4239 = vmatpush1.bf16.msra.mxu0 %v6748_v0  ;;  %4567 = vmatpush1.bf16.msra.mxu1 %v6749_v1  ;;  %v6836_v0 = vld [vmem:[%s9842_s1 + $0x4b0] ss:$20 sps:$4 sm:$0xff]   ;;  %v6839_v1 = vld [vmem:[%s9842_s1 + $0x4b8] ss:$20 sps:$4 sm:$0xff]  }
  0x40   :  { %4249 = vmatprep.subr.bf16.mxu0 %v6753_v2  ;;  %4577 = vmatprep.subr.bf16.mxu1 %v6756_v3  ;;  %v6844_v2 = vld [vmem:[%s9842_s1 + $0x4dc] ss:$20 sps:$4 sm:$0xff]   ;;  %v6847_v3 = vld [vmem:[%s9842_s1 + $0x4e4] ss:$20 sps:$4 sm:$0xff]  }
  0x42   :  { %4241 = vmatmul.mubr.bf16.vlgmr.msra.gmra.mrb[0].mxu0 %v7846_v5  ;;  %4569 = vmatmul.mubr.bf16.vlgmr.msra.gmra.mrb[0].mxu1 %v7846_v5 }
  0x43   :  { %4250 = vmatpush1.bf16.msra.mxu0 %v6751_v4  ;;  %4578 = vmatpush1.bf16.msra.mxu1 %v6754_v6  ;;  %v6842_v4 = vld [vmem:[%s9842_s1 + $0x4d8] ss:$20 sps:$4 sm:$0xff]   ;;  %v6845_v6 = vld [vmem:[%s9842_s1 + $0x4e0] ss:$20 sps:$4 sm:$0xff]  }
  0x44   :  { %4251 = vmatprep.subr.bf16.mxu0 %v6760_v7  ;;  %4579 = vmatprep.subr.bf16.mxu1 %v6763_v8  ;;  %v6852_v7 = vld [vmem:[%s9842_s1 + $0x504] ss:$20 sps:$4 sm:$0xff]   ;;  %v6855_v8 = vld [vmem:[%s9842_s1 + $0x50c] ss:$20 sps:$4 sm:$0xff]  }
  0x45   :  { %4281 = vmatprep.mubr.bf16.mxu0 %v7926_v30  ;;  %4609 = vmatprep.mubr.bf16.mxu1 %v7926_v30 }
  0x47   :  { %4252 = vmatpush1.bf16.msra.mxu0 %v6758_v9  ;;  %4580 = vmatpush1.bf16.msra.mxu1 %v6761_v10  ;;  %v8052_v9 = vcombine.low %v7922_v29, %v7922_v29  ;;  %v6850_v10 = vld [vmem:[%s9842_s1 + $0x500] ss:$20 sps:$4 sm:$0xff]   ;;  %v6877_v29 = vld [vmem:[%s9842_s1 + $0x5a8] ss:$20 sps:$4 sm:$0xff]  }
  0x48   :  { %4253 = vmatprep.subr.bf16.mxu0 %v6766_v11  ;;  %4581 = vmatprep.subr.bf16.mxu1 %v6769_v12  ;;  %v6853_v11 = vld [vmem:[%s9842_s1 + $0x508] ss:$20 sps:$4 sm:$0xff]   ;;  %v6858_v12 = vld [vmem:[%s9842_s1 + $0x52c] ss:$20 sps:$4 sm:$0xff]  }
  0x4b   :  { %4254 = vmatpush1.bf16.msra.mxu0 %v6764_v13  ;;  %4582 = vmatpush1.bf16.msra.mxu1 %v6767_v14  ;;  %v8066_v13 = vld [vmem:[%s9843_s0 + $0x10] sm:$0xff] }
  0x4c   :  { %4255 = vmatprep.subr.bf16.mxu0 %v6772_v15  ;;  %4583 = vmatprep.subr.bf16.mxu1 %v6775_v16  ;;  %v6861_v14 = vld [vmem:[%s9842_s1 + $0x534] ss:$20 sps:$4 sm:$0xff]   ;;  %v8073_v15 = vcombine.high %v8066_v13, %v8066_v13 }
  0x4d   :  { %v6856_v16 = vld [vmem:[%s9842_s1 + $0x528] ss:$20 sps:$4 sm:$0xff]  }
  0x4f   :  { %4256 = vmatpush1.bf16.msra.mxu0 %v6770_v17  ;;  %4584 = vmatpush1.bf16.msra.mxu1 %v6773_v18  ;;  %v6859_v17 = vld [vmem:[%s9842_s1 + $0x530] ss:$20 sps:$4 sm:$0xff]   ;;  %v6864_v18 = vld [vmem:[%s9842_s1 + $0x554] ss:$20 sps:$4 sm:$0xff]  }
  0x50   :  { %4257 = vmatprep.subr.bf16.mxu0 %v6778_v19  ;;  %4585 = vmatprep.subr.bf16.mxu1 %v6781_v20  ;;  %v6867_v19 = vld [vmem:[%s9842_s1 + $0x55c] ss:$20 sps:$4 sm:$0xff]  }
  0x51   :  { %v6862_v20 = vld [vmem:[%s9842_s1 + $0x550] ss:$20 sps:$4 sm:$0xff]  }
  0x53   :  { %4258 = vmatpush1.bf16.msra.mxu0 %v6776_v21  ;;  %4586 = vmatpush1.bf16.msra.mxu1 %v6779_v22  ;;  %v6865_v21 = vld [vmem:[%s9842_s1 + $0x558] ss:$20 sps:$4 sm:$0xff]   ;;  %v6870_v22 = vld [vmem:[%s9842_s1 + $0x57c] ss:$20 sps:$4 sm:$0xff]  }
  0x54   :  { %4259 = vmatprep.subr.bf16.mxu0 %v6784_v23  ;;  %4587 = vmatprep.subr.bf16.mxu1 %v6787_v24  ;;  %v6873_v23 = vld [vmem:[%s9842_s1 + $0x584] ss:$20 sps:$4 sm:$0xff]  }
  0x55   :  { %v6868_v24 = vld [vmem:[%s9842_s1 + $0x578] ss:$20 sps:$4 sm:$0xff]  }
  0x57   :  { %4260 = vmatpush1.bf16.msra.mxu0 %v6782_v25  ;;  %4588 = vmatpush1.bf16.msra.mxu1 %v6785_v26  ;;  %v6871_v25 = vld [vmem:[%s9842_s1 + $0x580] ss:$20 sps:$4 sm:$0xff]   ;;  %v6876_v26 = vld [vmem:[%s9842_s1 + $0x5a4] ss:$20 sps:$4 sm:$0xff]  }
  0x58   :  { %4261 = vmatprep.subr.bf16.mxu0 %v6790_v27  ;;  %4589 = vmatprep.subr.bf16.mxu1 %v6793_v28  ;;  %v6879_v27 = vld [vmem:[%s9842_s1 + $0x5ac] ss:$20 sps:$4 sm:$0xff]  }
  0x59   :  { %v6874_v28 = vld [vmem:[%s9842_s1 + $0x5a0] ss:$20 sps:$4 sm:$0xff]  }
  0x5b   :  { %4262 = vmatpush1.bf16.msra.mxu0 %v6788_v31  ;;  %4590 = vmatpush1.bf16.msra.mxu1 %v6791_v32  ;;  %v6882_v31 = vld [vmem:[%s9842_s1 + $0x5cc] ss:$20 sps:$4 sm:$0xff]   ;;  %v6885_v32 = vld [vmem:[%s9842_s1 + $0x5d4] ss:$20 sps:$4 sm:$0xff]  }
  0x5c   :  { %4263 = vmatprep.subr.bf16.mxu0 %v6796_v33  ;;  %4591 = vmatprep.subr.bf16.mxu1 %v6799_v34  ;;  %v6880_v33 = vld [vmem:[%s9842_s1 + $0x5c8] ss:$20 sps:$4 sm:$0xff]   ;;  %v6883_v34 = vld [vmem:[%s9842_s1 + $0x5d0] ss:$20 sps:$4 sm:$0xff]  }
  0x5f   :  { %4264 = vmatpush1.bf16.msra.mxu0 %v6794_v35  ;;  %4592 = vmatpush1.bf16.msra.mxu1 %v6797_v36  ;;  %v6888_v35 = vld [vmem:[%s9842_s1 + $0x5f4] ss:$20 sps:$4 sm:$0xff]   ;;  %v6891_v36 = vld [vmem:[%s9842_s1 + $0x5fc] ss:$20 sps:$4 sm:$0xff]  }
  0x60   :  { %4265 = vmatprep.subr.bf16.mxu0 %v6802_v37  ;;  %4593 = vmatprep.subr.bf16.mxu1 %v6805_v38  ;;  %v6886_v37 = vld [vmem:[%s9842_s1 + $0x5f0] ss:$20 sps:$4 sm:$0xff]   ;;  %v6889_v38 = vld [vmem:[%s9842_s1 + $0x5f8] ss:$20 sps:$4 sm:$0xff]  }
  0x63   :  { %4266 = vmatpush1.bf16.msra.mxu0 %v6800_v39  ;;  %4594 = vmatpush1.bf16.msra.mxu1 %v6803_v40  ;;  %v6894_v39 = vld [vmem:[%s9842_s1 + $0x61c] ss:$20 sps:$4 sm:$0xff]   ;;  %v6897_v40 = vld [vmem:[%s9842_s1 + $0x624] ss:$20 sps:$4 sm:$0xff]  }
  0x64   :  { %4267 = vmatprep.subr.bf16.mxu0 %v6808_v41  ;;  %4595 = vmatprep.subr.bf16.mxu1 %v6811_v42  ;;  %v6892_v41 = vld [vmem:[%s9842_s1 + $0x618] ss:$20 sps:$4 sm:$0xff]   ;;  %v6895_v42 = vld [vmem:[%s9842_s1 + $0x620] ss:$20 sps:$4 sm:$0xff]  }
  0x67   :  { %4268 = vmatpush1.bf16.msra.mxu0 %v6806_v43  ;;  %4596 = vmatpush1.bf16.msra.mxu1 %v6809_v44  ;;  %v6900_v43 = vld [vmem:[%s9842_s1 + $0x644] ss:$20 sps:$4 sm:$0xff]   ;;  %v6903_v44 = vld [vmem:[%s9842_s1 + $0x64c] ss:$20 sps:$4 sm:$0xff]  }
  0x68   :  { %4269 = vmatprep.subr.bf16.mxu0 %v6814_v45  ;;  %4597 = vmatprep.subr.bf16.mxu1 %v6817_v46  ;;  %v6898_v45 = vld [vmem:[%s9842_s1 + $0x640] ss:$20 sps:$4 sm:$0xff]   ;;  %v6901_v46 = vld [vmem:[%s9842_s1 + $0x648] ss:$20 sps:$4 sm:$0xff]  }
  0x6b   :  { %4270 = vmatpush1.bf16.msra.mxu0 %v6812_v47  ;;  %4598 = vmatpush1.bf16.msra.mxu1 %v6815_v49  ;;  %v6906_v47 = vld [vmem:[%s9842_s1 + $0x66c] ss:$20 sps:$4 sm:$0xff]   ;;  %v6909_v49 = vld [vmem:[%s9842_s1 + $0x674] ss:$20 sps:$4 sm:$0xff]  }
  0x6c   :  { %4271 = vmatprep.subr.bf16.mxu0 %v6820_v50  ;;  %4599 = vmatprep.subr.bf16.mxu1 %v6823_v51  ;;  %v6904_v50 = vld [vmem:[%s9842_s1 + $0x668] ss:$20 sps:$4 sm:$0xff]   ;;  %v6907_v51 = vld [vmem:[%s9842_s1 + $0x670] ss:$20 sps:$4 sm:$0xff]  }
  0x6f   :  { %4272 = vmatpush1.bf16.msra.mxu0 %v6818_v52  ;;  %4600 = vmatpush1.bf16.msra.mxu1 %v6821_v53  ;;  %v6912_v52 = vld [vmem:[%s9842_s1 + $0x694] ss:$20 sps:$4 sm:$0xff]   ;;  %v6915_v53 = vld [vmem:[%s9842_s1 + $0x69c] ss:$20 sps:$4 sm:$0xff]  }
  0x70   :  { %4273 = vmatprep.subr.bf16.mxu0 %v6826_v54  ;;  %4601 = vmatprep.subr.bf16.mxu1 %v6829_v55  ;;  %v6910_v54 = vld [vmem:[%s9842_s1 + $0x690] ss:$20 sps:$4 sm:$0xff]   ;;  %v6913_v55 = vld [vmem:[%s9842_s1 + $0x698] ss:$20 sps:$4 sm:$0xff]  }
  0x73   :  { %4274 = vmatpush1.bf16.msra.mxu0 %v6824_v56  ;;  %4602 = vmatpush1.bf16.msra.mxu1 %v6827_v57  ;;  %v6918_v56 = vld [vmem:[%s9842_s1 + $0x6bc] ss:$20 sps:$4 sm:$0xff]   ;;  %v6921_v57 = vld [vmem:[%s9842_s1 + $0x6c4] ss:$20 sps:$4 sm:$0xff]  }
  0x74   :  { %4275 = vmatprep.subr.bf16.mxu0 %v6832_v58  ;;  %4603 = vmatprep.subr.bf16.mxu1 %v6835_v59  ;;  %v6916_v58 = vld [vmem:[%s9842_s1 + $0x6b8] ss:$20 sps:$4 sm:$0xff]   ;;  %v6919_v59 = vld [vmem:[%s9842_s1 + $0x6c0] ss:$20 sps:$4 sm:$0xff]  }
  0x77   :  { %4276 = vmatpush1.bf16.msra.mxu0 %v6830_v60  ;;  %4604 = vmatpush1.bf16.msra.mxu1 %v6833_v61  ;;  %v6924_v60 = vld [vmem:[%s9842_s1 + $0x6e4] ss:$20 sps:$4 sm:$0xff]   ;;  %v6927_v61 = vld [vmem:[%s9842_s1 + $0x6ec] ss:$20 sps:$4 sm:$0xff]  }
  0x78   :  { %4277 = vmatprep.subr.bf16.mxu0 %v6838_v62  ;;  %4605 = vmatprep.subr.bf16.mxu1 %v6841_v63  ;;  %v6922_v62 = vld [vmem:[%s9842_s1 + $0x6e0] ss:$20 sps:$4 sm:$0xff]   ;;  %v6925_v63 = vld [vmem:[%s9842_s1 + $0x6e8] ss:$20 sps:$4 sm:$0xff]  }
  0x7b   :  { %4278 = vmatpush1.bf16.msra.mxu0 %v6836_v0  ;;  %4606 = vmatpush1.bf16.msra.mxu1 %v6839_v1  ;;  %v6930_v0 = vld [vmem:[%s9842_s1 + $0x70c] ss:$20 sps:$4 sm:$0xff]   ;;  %v6933_v1 = vld [vmem:[%s9842_s1 + $0x714] ss:$20 sps:$4 sm:$0xff]  }
  0x7c   :  { %4279 = vmatprep.subr.bf16.mxu0 %v6844_v2  ;;  %4607 = vmatprep.subr.bf16.mxu1 %v6847_v3  ;;  %v6928_v2 = vld [vmem:[%s9842_s1 + $0x708] ss:$20 sps:$4 sm:$0xff]   ;;  %v6931_v3 = vld [vmem:[%s9842_s1 + $0x710] ss:$20 sps:$4 sm:$0xff]  }
  0x7f   :  { %4280 = vmatpush1.bf16.msra.mxu0 %v6842_v4  ;;  %4608 = vmatpush1.bf16.msra.mxu1 %v6845_v6  ;;  %v6936_v4 = vld [vmem:[%s9842_s1 + $0x734] ss:$20 sps:$4 sm:$0xff]   ;;  %v6939_v6 = vld [vmem:[%s9842_s1 + $0x73c] ss:$20 sps:$4 sm:$0xff]  }
  0x80   :  { %4290 = vmatprep.subr.bf16.mxu0 %v6852_v7  ;;  %4618 = vmatprep.subr.bf16.mxu1 %v6855_v8  ;;  %v6934_v7 = vld [vmem:[%s9842_s1 + $0x730] ss:$20 sps:$4 sm:$0xff]   ;;  %v6937_v8 = vld [vmem:[%s9842_s1 + $0x738] ss:$20 sps:$4 sm:$0xff]  }
  0x82   :  { %4282 = vmatmul.mubr.bf16.vlgmr.msra.gmra.mrb[0].mxu0 %v8052_v9  ;;  %4610 = vmatmul.mubr.bf16.vlgmr.msra.gmra.mrb[0].mxu1 %v8052_v9 }
  0x83   :  { %4291 = vmatpush1.bf16.msra.mxu0 %v6850_v10  ;;  %4619 = vmatpush1.bf16.msra.mxu1 %v6853_v11  ;;  %v6942_v10 = vld [vmem:[%s9842_s1 + $0x75c] ss:$20 sps:$4 sm:$0xff]   ;;  %v6945_v11 = vld [vmem:[%s9842_s1 + $0x764] ss:$20 sps:$4 sm:$0xff]  }
  0x84   :  { %4292 = vmatprep.subr.bf16.mxu0 %v6858_v12  ;;  %4620 = vmatprep.subr.bf16.mxu1 %v6861_v14  ;;  %v6940_v12 = vld [vmem:[%s9842_s1 + $0x758] ss:$20 sps:$4 sm:$0xff]   ;;  %v6943_v14 = vld [vmem:[%s9842_s1 + $0x760] ss:$20 sps:$4 sm:$0xff]  }
  0x85   :  { %4322 = vmatprep.mubr.bf16.mxu0 %v8073_v15  ;;  %4650 = vmatprep.mubr.bf16.mxu1 %v8073_v15 }
  0x87   :  { %4293 = vmatpush1.bf16.msra.mxu0 %v6856_v16  ;;  %4621 = vmatpush1.bf16.msra.mxu1 %v6859_v17  ;;  %v6950_v16 = vld [vmem:[%s9842_s1 + $0x784] ss:$20 sps:$4 sm:$0xff]   ;;  %v6953_v17 = vld [vmem:[%s9842_s1 + $0x78c] ss:$20 sps:$4 sm:$0xff]  }
  0x88   :  { %4294 = vmatprep.subr.bf16.mxu0 %v6864_v18  ;;  %4622 = vmatprep.subr.bf16.mxu1 %v6867_v19  ;;  %v6948_v18 = vld [vmem:[%s9842_s1 + $0x780] ss:$20 sps:$4 sm:$0xff]   ;;  %v8264_v19 = vcombine.low %v8066_v13, %v8066_v13 }
  0x89   :  { %v6959_v13 = vld [vmem:[%s9842_s1 + $0x7b4] ss:$20 sps:$4 sm:$0xff]  }
  0x8b   :  { %4295 = vmatpush1.bf16.msra.mxu0 %v6862_v20  ;;  %4623 = vmatpush1.bf16.msra.mxu1 %v6865_v21  ;;  %v6951_v20 = vld [vmem:[%s9842_s1 + $0x788] ss:$20 sps:$4 sm:$0xff]  }
  0x8c   :  { %4296 = vmatprep.subr.bf16.mxu0 %v6870_v22  ;;  %4624 = vmatprep.subr.bf16.mxu1 %v6873_v23  ;;  %v8272_v21 = vld [vmem:[%s9843_s0 + $0x18] sm:$0xff]  ;;  %v6956_v22 = vld [vmem:[%s9842_s1 + $0x7ac] ss:$20 sps:$4 sm:$0xff]  }
  0x8d   :  { %v8282_v23 = vcombine.high %v8272_v21, %v8272_v21 }
  0x8f   :  { %4297 = vmatpush1.bf16.msra.mxu0 %v6868_v24  ;;  %4625 = vmatpush1.bf16.msra.mxu1 %v6871_v25  ;;  %v6954_v24 = vld [vmem:[%s9842_s1 + $0x7a8] ss:$20 sps:$4 sm:$0xff]   ;;  %v6957_v25 = vld [vmem:[%s9842_s1 + $0x7b0] ss:$20 sps:$4 sm:$0xff]  }
  0x90   :  { %4298 = vmatprep.subr.bf16.mxu0 %v6876_v26  ;;  %4626 = vmatprep.subr.bf16.mxu1 %v6879_v27  ;;  %v6962_v26 = vld [vmem:[%s9842_s1 + $0x7d4] ss:$20 sps:$4 sm:$0xff]   ;;  %v6965_v27 = vld [vmem:[%s9842_s1 + $0x7dc] ss:$20 sps:$4 sm:$0xff]  }
  0x93   :  { %4299 = vmatpush1.bf16.msra.mxu0 %v6874_v28  ;;  %4627 = vmatpush1.bf16.msra.mxu1 %v6877_v29  ;;  %v6960_v28 = vld [vmem:[%s9842_s1 + $0x7d0] ss:$20 sps:$4 sm:$0xff]   ;;  %v6963_v29 = vld [vmem:[%s9842_s1 + $0x7d8] ss:$20 sps:$4 sm:$0xff]  }
  0x94   :  { %4300 = vmatprep.subr.bf16.mxu0 %v6882_v31  ;;  %4628 = vmatprep.subr.bf16.mxu1 %v6885_v32  ;;  %v6968_v31 = vld [vmem:[%s9842_s1 + $0x7fc] ss:$20 sps:$4 sm:$0xff]   ;;  %v6971_v32 = vld [vmem:[%s9842_s1 + $0x804] ss:$20 sps:$4 sm:$0xff]  }
  0x97   :  { %4301 = vmatpush1.bf16.msra.mxu0 %v6880_v33  ;;  %4629 = vmatpush1.bf16.msra.mxu1 %v6883_v34  ;;  %v6966_v33 = vld [vmem:[%s9842_s1 + $0x7f8] ss:$20 sps:$4 sm:$0xff]   ;;  %v6969_v34 = vld [vmem:[%s9842_s1 + $0x800] ss:$20 sps:$4 sm:$0xff]  }
  0x98   :  { %4302 = vmatprep.subr.bf16.mxu0 %v6888_v35  ;;  %4630 = vmatprep.subr.bf16.mxu1 %v6891_v36  ;;  %v6974_v35 = vld [vmem:[%s9842_s1 + $0x824] ss:$20 sps:$4 sm:$0xff]   ;;  %v6977_v36 = vld [vmem:[%s9842_s1 + $0x82c] ss:$20 sps:$4 sm:$0xff]  }
  0x9b   :  { %4303 = vmatpush1.bf16.msra.mxu0 %v6886_v37  ;;  %4631 = vmatpush1.bf16.msra.mxu1 %v6889_v38  ;;  %v6972_v37 = vld [vmem:[%s9842_s1 + $0x820] ss:$20 sps:$4 sm:$0xff]   ;;  %v6975_v38 = vld [vmem:[%s9842_s1 + $0x828] ss:$20 sps:$4 sm:$0xff]  }
  0x9c   :  { %4304 = vmatprep.subr.bf16.mxu0 %v6894_v39  ;;  %4632 = vmatprep.subr.bf16.mxu1 %v6897_v40  ;;  %v6980_v39 = vld [vmem:[%s9842_s1 + $0x84c] ss:$20 sps:$4 sm:$0xff]   ;;  %v6983_v40 = vld [vmem:[%s9842_s1 + $0x854] ss:$20 sps:$4 sm:$0xff]  }
  0x9f   :  { %4305 = vmatpush1.bf16.msra.mxu0 %v6892_v41  ;;  %4633 = vmatpush1.bf16.msra.mxu1 %v6895_v42  ;;  %v6978_v41 = vld [vmem:[%s9842_s1 + $0x848] ss:$20 sps:$4 sm:$0xff]   ;;  %v6981_v42 = vld [vmem:[%s9842_s1 + $0x850] ss:$20 sps:$4 sm:$0xff]  }
  0xa0   :  { %4306 = vmatprep.subr.bf16.mxu0 %v6900_v43  ;;  %4634 = vmatprep.subr.bf16.mxu1 %v6903_v44  ;;  %v6986_v43 = vld [vmem:[%s9842_s1 + $0x874] ss:$20 sps:$4 sm:$0xff]   ;;  %v6989_v44 = vld [vmem:[%s9842_s1 + $0x87c] ss:$20 sps:$4 sm:$0xff]  }
  0xa3   :  { %4307 = vmatpush1.bf16.msra.mxu0 %v6898_v45  ;;  %4635 = vmatpush1.bf16.msra.mxu1 %v6901_v46  ;;  %v6984_v45 = vld [vmem:[%s9842_s1 + $0x870] ss:$20 sps:$4 sm:$0xff]   ;;  %v6987_v46 = vld [vmem:[%s9842_s1 + $0x878] ss:$20 sps:$4 sm:$0xff]  }
  0xa4   :  { %4308 = vmatprep.subr.bf16.mxu0 %v6906_v47  ;;  %4636 = vmatprep.subr.bf16.mxu1 %v6909_v49  ;;  %v6992_v47 = vld [vmem:[%s9842_s1 + $0x89c] ss:$20 sps:$4 sm:$0xff]   ;;  %v6995_v49 = vld [vmem:[%s9842_s1 + $0x8a4] ss:$20 sps:$4 sm:$0xff]  }
  0xa7   :  { %4309 = vmatpush1.bf16.msra.mxu0 %v6904_v50  ;;  %4637 = vmatpush1.bf16.msra.mxu1 %v6907_v51  ;;  %v6990_v50 = vld [vmem:[%s9842_s1 + $0x898] ss:$20 sps:$4 sm:$0xff]   ;;  %v6993_v51 = vld [vmem:[%s9842_s1 + $0x8a0] ss:$20 sps:$4 sm:$0xff]  }
  0xa8   :  { %4310 = vmatprep.subr.bf16.mxu0 %v6912_v52  ;;  %4638 = vmatprep.subr.bf16.mxu1 %v6915_v53  ;;  %v6998_v52 = vld [vmem:[%s9842_s1 + $0x8c4] ss:$20 sps:$4 sm:$0xff]   ;;  %v7001_v53 = vld [vmem:[%s9842_s1 + $0x8cc] ss:$20 sps:$4 sm:$0xff]  }
  0xab   :  { %4311 = vmatpush1.bf16.msra.mxu0 %v6910_v54  ;;  %4639 = vmatpush1.bf16.msra.mxu1 %v6913_v55  ;;  %v6996_v54 = vld [vmem:[%s9842_s1 + $0x8c0] ss:$20 sps:$4 sm:$0xff]   ;;  %v6999_v55 = vld [vmem:[%s9842_s1 + $0x8c8] ss:$20 sps:$4 sm:$0xff]  }
  0xac   :  { %4312 = vmatprep.subr.bf16.mxu0 %v6918_v56  ;;  %4640 = vmatprep.subr.bf16.mxu1 %v6921_v57  ;;  %v7004_v56 = vld [vmem:[%s9842_s1 + $0x8ec] ss:$20 sps:$4 sm:$0xff]   ;;  %v7007_v57 = vld [vmem:[%s9842_s1 + $0x8f4] ss:$20 sps:$4 sm:$0xff]  }
  0xaf   :  { %4313 = vmatpush1.bf16.msra.mxu0 %v6916_v58  ;;  %4641 = vmatpush1.bf16.msra.mxu1 %v6919_v59  ;;  %v7002_v58 = vld [vmem:[%s9842_s1 + $0x8e8] ss:$20 sps:$4 sm:$0xff]   ;;  %v7005_v59 = vld [vmem:[%s9842_s1 + $0x8f0] ss:$20 sps:$4 sm:$0xff]  }
  0xb0   :  { %4314 = vmatprep.subr.bf16.mxu0 %v6924_v60  ;;  %4642 = vmatprep.subr.bf16.mxu1 %v6927_v61  ;;  %v7010_v60 = vld [vmem:[%s9842_s1 + $0x914] ss:$20 sps:$4 sm:$0xff]   ;;  %v7013_v61 = vld [vmem:[%s9842_s1 + $0x91c] ss:$20 sps:$4 sm:$0xff]  }
  0xb3   :  { %4315 = vmatpush1.bf16.msra.mxu0 %v6922_v62  ;;  %4643 = vmatpush1.bf16.msra.mxu1 %v6925_v63  ;;  %v7008_v62 = vld [vmem:[%s9842_s1 + $0x910] ss:$20 sps:$4 sm:$0xff]   ;;  %v7011_v63 = vld [vmem:[%s9842_s1 + $0x918] ss:$20 sps:$4 sm:$0xff]  }
  0xb4   :  { %4316 = vmatprep.subr.bf16.mxu0 %v6930_v0  ;;  %4644 = vmatprep.subr.bf16.mxu1 %v6933_v1  ;;  %v7016_v0 = vld [vmem:[%s9842_s1 + $0x93c] ss:$20 sps:$4 sm:$0xff]   ;;  %v7019_v1 = vld [vmem:[%s9842_s1 + $0x944] ss:$20 sps:$4 sm:$0xff]  }
  0xb7   :  { %4317 = vmatpush1.bf16.msra.mxu0 %v6928_v2  ;;  %4645 = vmatpush1.bf16.msra.mxu1 %v6931_v3  ;;  %v7014_v2 = vld [vmem:[%s9842_s1 + $0x938] ss:$20 sps:$4 sm:$0xff]   ;;  %v7017_v3 = vld [vmem:[%s9842_s1 + $0x940] ss:$20 sps:$4 sm:$0xff]  }
  0xb8   :  { %4318 = vmatprep.subr.bf16.mxu0 %v6936_v4  ;;  %4646 = vmatprep.subr.bf16.mxu1 %v6939_v6  ;;  %v7022_v4 = vld [vmem:[%s9842_s1 + $0x964] ss:$20 sps:$4 sm:$0xff]   ;;  %v7025_v6 = vld [vmem:[%s9842_s1 + $0x96c] ss:$20 sps:$4 sm:$0xff]  }
  0xbb   :  { %4319 = vmatpush1.bf16.msra.mxu0 %v6934_v7  ;;  %4647 = vmatpush1.bf16.msra.mxu1 %v6937_v8  ;;  %v7020_v7 = vld [vmem:[%s9842_s1 + $0x960] ss:$20 sps:$4 sm:$0xff]   ;;  %v7023_v8 = vld [vmem:[%s9842_s1 + $0x968] ss:$20 sps:$4 sm:$0xff]  }
  0xbc   :  { %4320 = vmatprep.subr.bf16.mxu0 %v6942_v10  ;;  %4648 = vmatprep.subr.bf16.mxu1 %v6945_v11  ;;  %v7028_v10 = vld [vmem:[%s9842_s1 + $0x98c] ss:$20 sps:$4 sm:$0xff]   ;;  %v7031_v11 = vld [vmem:[%s9842_s1 + $0x994] ss:$20 sps:$4 sm:$0xff]  }
  0xbf   :  { %4321 = vmatpush1.bf16.msra.mxu0 %v6940_v12  ;;  %4649 = vmatpush1.bf16.msra.mxu1 %v6943_v14  ;;  %v7026_v12 = vld [vmem:[%s9842_s1 + $0x988] ss:$20 sps:$4 sm:$0xff]   ;;  %v7029_v14 = vld [vmem:[%s9842_s1 + $0x990] ss:$20 sps:$4 sm:$0xff]  }
  0xc0   :  { %4331 = vmatprep.subr.bf16.mxu0 %v6950_v16  ;;  %4659 = vmatprep.subr.bf16.mxu1 %v6953_v17  ;;  %v7034_v16 = vld [vmem:[%s9842_s1 + $0x9b4] ss:$20 sps:$4 sm:$0xff]   ;;  %v7037_v17 = vld [vmem:[%s9842_s1 + $0x9bc] ss:$20 sps:$4 sm:$0xff]  }
  0xc2   :  { %4323 = vmatmul.mubr.bf16.vlgmr.msra.gmra.mrb[0].mxu0 %v8264_v19  ;;  %4651 = vmatmul.mubr.bf16.vlgmr.msra.gmra.mrb[0].mxu1 %v8264_v19 }
  0xc3   :  { %4332 = vmatpush1.bf16.msra.mxu0 %v6948_v18  ;;  %4660 = vmatpush1.bf16.msra.mxu1 %v6951_v20  ;;  %v7032_v18 = vld [vmem:[%s9842_s1 + $0x9b0] ss:$20 sps:$4 sm:$0xff]   ;;  %v7035_v20 = vld [vmem:[%s9842_s1 + $0x9b8] ss:$20 sps:$4 sm:$0xff]  }
  0xc4   :  { %4333 = vmatprep.subr.bf16.mxu0 %v6956_v22  ;;  %4661 = vmatprep.subr.bf16.mxu1 %v6959_v13  ;;  %v7040_v22 = vld [vmem:[%s9842_s1 + $0x9dc] ss:$20 sps:$4 sm:$0xff]   ;;  %v7043_v13 = vld [vmem:[%s9842_s1 + $0x9e4] ss:$20 sps:$4 sm:$0xff]  }
  0xc5   :  { %4363 = vmatprep.mubr.bf16.mxu0 %v8282_v23  ;;  %4691 = vmatprep.mubr.bf16.mxu1 %v8282_v23 }
  0xc7   :  { %4334 = vmatpush1.bf16.msra.mxu0 %v6954_v24  ;;  %4662 = vmatpush1.bf16.msra.mxu1 %v6957_v25  ;;  %v7038_v24 = vld [vmem:[%s9842_s1 + $0x9d8] ss:$20 sps:$4 sm:$0xff]   ;;  %v7041_v25 = vld [vmem:[%s9842_s1 + $0x9e0] ss:$20 sps:$4 sm:$0xff]  }
  0xc8   :  { %4335 = vmatprep.subr.bf16.mxu0 %v6962_v26  ;;  %4663 = vmatprep.subr.bf16.mxu1 %v6965_v27  ;;  %v7048_v26 = vld [vmem:[%s9842_s1 + $0xa04] ss:$20 sps:$4 sm:$0xff]   ;;  %v7051_v27 = vld [vmem:[%s9842_s1 + $0xa0c] ss:$20 sps:$4 sm:$0xff]  }
  0xcb   :  { %4336 = vmatpush1.bf16.msra.mxu0 %v6960_v28  ;;  %4664 = vmatpush1.bf16.msra.mxu1 %v6963_v29  ;;  %v7046_v28 = vld [vmem:[%s9842_s1 + $0xa00] ss:$20 sps:$4 sm:$0xff]   ;;  %v8473_v29 = vcombine.low %v8272_v21, %v8272_v21 }
  0xcc   :  { %4337 = vmatprep.subr.bf16.mxu0 %v6968_v31  ;;  %4665 = vmatprep.subr.bf16.mxu1 %v6971_v32  ;;  %v8478_v31 = vld [vmem:[%s9843_s0 + $0x20] sm:$0xff]  ;;  %v7049_v32 = vld [vmem:[%s9842_s1 + $0xa08] ss:$20 sps:$4 sm:$0xff]  }
  0xcd   :  { %v7057_v21 = vld [vmem:[%s9842_s1 + $0xa34] ss:$20 sps:$4 sm:$0xff]  }
  0xcf   :  { %4338 = vmatpush1.bf16.msra.mxu0 %v6966_v33  ;;  %4666 = vmatpush1.bf16.msra.mxu1 %v6969_v34  ;;  %v7054_v33 = vld [vmem:[%s9842_s1 + $0xa2c] ss:$20 sps:$4 sm:$0xff]   ;;  %v8491_v34 = vcombine.high %v8478_v31, %v8478_v31 }
  0xd0   :  { %4339 = vmatprep.subr.bf16.mxu0 %v6974_v35  ;;  %4667 = vmatprep.subr.bf16.mxu1 %v6977_v36  ;;  %v7052_v35 = vld [vmem:[%s9842_s1 + $0xa28] ss:$20 sps:$4 sm:$0xff]   ;;  %v7055_v36 = vld [vmem:[%s9842_s1 + $0xa30] ss:$20 sps:$4 sm:$0xff]  }
  0xd3   :  { %4340 = vmatpush1.bf16.msra.mxu0 %v6972_v37  ;;  %4668 = vmatpush1.bf16.msra.mxu1 %v6975_v38  ;;  %v7060_v37 = vld [vmem:[%s9842_s1 + $0xa54] ss:$20 sps:$4 sm:$0xff]   ;;  %v7063_v38 = vld [vmem:[%s9842_s1 + $0xa5c] ss:$20 sps:$4 sm:$0xff]  }
  0xd4   :  { %4341 = vmatprep.subr.bf16.mxu0 %v6980_v39  ;;  %4669 = vmatprep.subr.bf16.mxu1 %v6983_v40  ;;  %v7058_v39 = vld [vmem:[%s9842_s1 + $0xa50] ss:$20 sps:$4 sm:$0xff]   ;;  %v7061_v40 = vld [vmem:[%s9842_s1 + $0xa58] ss:$20 sps:$4 sm:$0xff]  }
  0xd7   :  { %4342 = vmatpush1.bf16.msra.mxu0 %v6978_v41  ;;  %4670 = vmatpush1.bf16.msra.mxu1 %v6981_v42  ;;  %v7066_v41 = vld [vmem:[%s9842_s1 + $0xa7c] ss:$20 sps:$4 sm:$0xff]   ;;  %v7069_v42 = vld [vmem:[%s9842_s1 + $0xa84] ss:$20 sps:$4 sm:$0xff]  }
  0xd8   :  { %4343 = vmatprep.subr.bf16.mxu0 %v6986_v43  ;;  %4671 = vmatprep.subr.bf16.mxu1 %v6989_v44  ;;  %v7064_v43 = vld [vmem:[%s9842_s1 + $0xa78] ss:$20 sps:$4 sm:$0xff]   ;;  %v7067_v44 = vld [vmem:[%s9842_s1 + $0xa80] ss:$20 sps:$4 sm:$0xff]  }
  0xdb   :  { %4344 = vmatpush1.bf16.msra.mxu0 %v6984_v45  ;;  %4672 = vmatpush1.bf16.msra.mxu1 %v6987_v46  ;;  %v7072_v45 = vld [vmem:[%s9842_s1 + $0xaa4] ss:$20 sps:$4 sm:$0xff]   ;;  %v7075_v46 = vld [vmem:[%s9842_s1 + $0xaac] ss:$20 sps:$4 sm:$0xff]  }
  0xdc   :  { %4345 = vmatprep.subr.bf16.mxu0 %v6992_v47  ;;  %4673 = vmatprep.subr.bf16.mxu1 %v6995_v49  ;;  %v7070_v47 = vld [vmem:[%s9842_s1 + $0xaa0] ss:$20 sps:$4 sm:$0xff]   ;;  %v7073_v49 = vld [vmem:[%s9842_s1 + $0xaa8] ss:$20 sps:$4 sm:$0xff]  }
  0xdf   :  { %4346 = vmatpush1.bf16.msra.mxu0 %v6990_v50  ;;  %4674 = vmatpush1.bf16.msra.mxu1 %v6993_v51  ;;  %v7078_v50 = vld [vmem:[%s9842_s1 + $0xacc] ss:$20 sps:$4 sm:$0xff]   ;;  %v7081_v51 = vld [vmem:[%s9842_s1 + $0xad4] ss:$20 sps:$4 sm:$0xff]  }
  0xe0   :  { %4347 = vmatprep.subr.bf16.mxu0 %v6998_v52  ;;  %4675 = vmatprep.subr.bf16.mxu1 %v7001_v53  ;;  %v7076_v52 = vld [vmem:[%s9842_s1 + $0xac8] ss:$20 sps:$4 sm:$0xff]   ;;  %v7079_v53 = vld [vmem:[%s9842_s1 + $0xad0] ss:$20 sps:$4 sm:$0xff]  }
  0xe3   :  { %4348 = vmatpush1.bf16.msra.mxu0 %v6996_v54  ;;  %4676 = vmatpush1.bf16.msra.mxu1 %v6999_v55  ;;  %v7084_v54 = vld [vmem:[%s9842_s1 + $0xaf4] ss:$20 sps:$4 sm:$0xff]   ;;  %v7087_v55 = vld [vmem:[%s9842_s1 + $0xafc] ss:$20 sps:$4 sm:$0xff]  }
  0xe4   :  { %4349 = vmatprep.subr.bf16.mxu0 %v7004_v56  ;;  %4677 = vmatprep.subr.bf16.mxu1 %v7007_v57  ;;  %v7082_v56 = vld [vmem:[%s9842_s1 + $0xaf0] ss:$20 sps:$4 sm:$0xff]   ;;  %v7085_v57 = vld [vmem:[%s9842_s1 + $0xaf8] ss:$20 sps:$4 sm:$0xff]  }
  0xe7   :  { %4350 = vmatpush1.bf16.msra.mxu0 %v7002_v58  ;;  %4678 = vmatpush1.bf16.msra.mxu1 %v7005_v59  ;;  %v7090_v58 = vld [vmem:[%s9842_s1 + $0xb1c] ss:$20 sps:$4 sm:$0xff]   ;;  %v7093_v59 = vld [vmem:[%s9842_s1 + $0xb24] ss:$20 sps:$4 sm:$0xff]  }
  0xe8   :  { %4351 = vmatprep.subr.bf16.mxu0 %v7010_v60  ;;  %4679 = vmatprep.subr.bf16.mxu1 %v7013_v61  ;;  %v7088_v60 = vld [vmem:[%s9842_s1 + $0xb18] ss:$20 sps:$4 sm:$0xff]   ;;  %v7091_v61 = vld [vmem:[%s9842_s1 + $0xb20] ss:$20 sps:$4 sm:$0xff]  }
  0xeb   :  { %4352 = vmatpush1.bf16.msra.mxu0 %v7008_v62  ;;  %4680 = vmatpush1.bf16.msra.mxu1 %v7011_v63  ;;  %v7096_v62 = vld [vmem:[%s9842_s1 + $0xb44] ss:$20 sps:$4 sm:$0xff]   ;;  %v7099_v63 = vld [vmem:[%s9842_s1 + $0xb4c] ss:$20 sps:$4 sm:$0xff]  }
  0xec   :  { %4353 = vmatprep.subr.bf16.mxu0 %v7016_v0  ;;  %4681 = vmatprep.subr.bf16.mxu1 %v7019_v1  ;;  %v7094_v0 = vld [vmem:[%s9842_s1 + $0xb40] ss:$20 sps:$4 sm:$0xff]   ;;  %v7097_v1 = vld [vmem:[%s9842_s1 + $0xb48] ss:$20 sps:$4 sm:$0xff]  }
  0xef   :  { %4354 = vmatpush1.bf16.msra.mxu0 %v7014_v2  ;;  %4682 = vmatpush1.bf16.msra.mxu1 %v7017_v3  ;;  %v7102_v2 = vld [vmem:[%s9842_s1 + $0xb6c] ss:$20 sps:$4 sm:$0xff]   ;;  %v7105_v3 = vld [vmem:[%s9842_s1 + $0xb74] ss:$20 sps:$4 sm:$0xff]  }
  0xf0   :  { %4355 = vmatprep.subr.bf16.mxu0 %v7022_v4  ;;  %4683 = vmatprep.subr.bf16.mxu1 %v7025_v6  ;;  %v7100_v4 = vld [vmem:[%s9842_s1 + $0xb68] ss:$20 sps:$4 sm:$0xff]   ;;  %v7103_v6 = vld [vmem:[%s9842_s1 + $0xb70] ss:$20 sps:$4 sm:$0xff]  }
  0xf3   :  { %4356 = vmatpush1.bf16.msra.mxu0 %v7020_v7  ;;  %4684 = vmatpush1.bf16.msra.mxu1 %v7023_v8  ;;  %v7108_v7 = vld [vmem:[%s9842_s1 + $0xb94] ss:$20 sps:$4 sm:$0xff]   ;;  %v7111_v8 = vld [vmem:[%s9842_s1 + $0xb9c] ss:$20 sps:$4 sm:$0xff]  }
  0xf4   :  { %4357 = vmatprep.subr.bf16.mxu0 %v7028_v10  ;;  %4685 = vmatprep.subr.bf16.mxu1 %v7031_v11  ;;  %v7106_v10 = vld [vmem:[%s9842_s1 + $0xb90] ss:$20 sps:$4 sm:$0xff]   ;;  %v7109_v11 = vld [vmem:[%s9842_s1 + $0xb98] ss:$20 sps:$4 sm:$0xff]  }
  0xf7   :  { %4358 = vmatpush1.bf16.msra.mxu0 %v7026_v12  ;;  %4686 = vmatpush1.bf16.msra.mxu1 %v7029_v14  ;;  %v7114_v12 = vld [vmem:[%s9842_s1 + $0xbbc] ss:$20 sps:$4 sm:$0xff]   ;;  %v7117_v14 = vld [vmem:[%s9842_s1 + $0xbc4] ss:$20 sps:$4 sm:$0xff]  }
  0xf8   :  { %4359 = vmatprep.subr.bf16.mxu0 %v7034_v16  ;;  %4687 = vmatprep.subr.bf16.mxu1 %v7037_v17  ;;  %v7112_v16 = vld [vmem:[%s9842_s1 + $0xbb8] ss:$20 sps:$4 sm:$0xff]   ;;  %v7115_v17 = vld [vmem:[%s9842_s1 + $0xbc0] ss:$20 sps:$4 sm:$0xff]  }
  0xfb   :  { %4360 = vmatpush1.bf16.msra.mxu0 %v7032_v18  ;;  %4688 = vmatpush1.bf16.msra.mxu1 %v7035_v20  ;;  %v7120_v18 = vld [vmem:[%s9842_s1 + $0xbe4] ss:$20 sps:$4 sm:$0xff]   ;;  %v7123_v20 = vld [vmem:[%s9842_s1 + $0xbec] ss:$20 sps:$4 sm:$0xff]  }
  0xfc   :  { %4361 = vmatprep.subr.bf16.mxu0 %v7040_v22  ;;  %4689 = vmatprep.subr.bf16.mxu1 %v7043_v13  ;;  %v7118_v22 = vld [vmem:[%s9842_s1 + $0xbe0] ss:$20 sps:$4 sm:$0xff]   ;;  %v7121_v13 = vld [vmem:[%s9842_s1 + $0xbe8] ss:$20 sps:$4 sm:$0xff]  }
  0xff   :  { %4362 = vmatpush1.bf16.msra.mxu0 %v7038_v24  ;;  %4690 = vmatpush1.bf16.msra.mxu1 %v7041_v25  ;;  %v7126_v24 = vld [vmem:[%s9842_s1 + $0xc0c] ss:$20 sps:$4 sm:$0xff]   ;;  %v7129_v25 = vld [vmem:[%s9842_s1 + $0xc14] ss:$20 sps:$4 sm:$0xff]  }
 0x100   :  { %4372 = vmatprep.subr.bf16.mxu0 %v7048_v26  ;;  %4700 = vmatprep.subr.bf16.mxu1 %v7051_v27  ;;  %v7124_v26 = vld [vmem:[%s9842_s1 + $0xc08] ss:$20 sps:$4 sm:$0xff]   ;;  %v7127_v27 = vld [vmem:[%s9842_s1 + $0xc10] ss:$20 sps:$4 sm:$0xff]  }
 0x102   :  { %4364 = vmatmul.mubr.bf16.vlgmr.msra.gmra.mrb[0].mxu0 %v8473_v29  ;;  %4692 = vmatmul.mubr.bf16.vlgmr.msra.gmra.mrb[0].mxu1 %v8473_v29 }
 0x103   :  { %4373 = vmatpush1.bf16.msra.mxu0 %v7046_v28  ;;  %4701 = vmatpush1.bf16.msra.mxu1 %v7049_v32  ;;  %v7132_v28 = vld [vmem:[%s9842_s1 + $0xc34] ss:$20 sps:$4 sm:$0xff]   ;;  %v7135_v32 = vld [vmem:[%s9842_s1 + $0xc3c] ss:$20 sps:$4 sm:$0xff]  }
 0x104   :  { %4374 = vmatprep.subr.bf16.mxu0 %v7054_v33  ;;  %4702 = vmatprep.subr.bf16.mxu1 %v7057_v21  ;;  %v7130_v33 = vld [vmem:[%s9842_s1 + $0xc30] ss:$20 sps:$4 sm:$0xff]   ;;  %v7133_v21 = vld [vmem:[%s9842_s1 + $0xc38] ss:$20 sps:$4 sm:$0xff]  }
 0x105   :  { %4404 = vmatprep.mubr.bf16.mxu0 %v8491_v34  ;;  %4732 = vmatprep.mubr.bf16.mxu1 %v8491_v34 }
 0x107   :  { %4375 = vmatpush1.bf16.msra.mxu0 %v7052_v35  ;;  %4703 = vmatpush1.bf16.msra.mxu1 %v7055_v36  ;;  %v7138_v35 = vld [vmem:[%s9842_s1 + $0xc5c] ss:$20 sps:$4 sm:$0xff]   ;;  %v7141_v36 = vld [vmem:[%s9842_s1 + $0xc64] ss:$20 sps:$4 sm:$0xff]  }
 0x108   :  { %4376 = vmatprep.subr.bf16.mxu0 %v7060_v37  ;;  %4704 = vmatprep.subr.bf16.mxu1 %v7063_v38  ;;  %v7136_v37 = vld [vmem:[%s9842_s1 + $0xc58] ss:$20 sps:$4 sm:$0xff]   ;;  %v7139_v38 = vld [vmem:[%s9842_s1 + $0xc60] ss:$20 sps:$4 sm:$0xff]  }
 0x10b   :  { %4377 = vmatpush1.bf16.msra.mxu0 %v7058_v39  ;;  %4705 = vmatpush1.bf16.msra.mxu1 %v7061_v40  ;;  %v7146_v39 = vld [vmem:[%s9842_s1 + $0xc84] ss:$20 sps:$4 sm:$0xff]   ;;  %v7149_v40 = vld [vmem:[%s9842_s1 + $0xc8c] ss:$20 sps:$4 sm:$0xff]  }
 0x10c   :  { %4378 = vmatprep.subr.bf16.mxu0 %v7066_v41  ;;  %4706 = vmatprep.subr.bf16.mxu1 %v7069_v42  ;;  %v8680_v41 = vld [vmem:[%s9843_s0 + $0x28] sm:$0xff]  ;;  %v8684_v42 = vcombine.low %v8478_v31, %v8478_v31 }
 0x10d   :  { %v7155_v31 = vld [vmem:[%s9842_s1 + $0xcb4] ss:$20 sps:$4 sm:$0xff]  }
 0x10f   :  { %4379 = vmatpush1.bf16.msra.mxu0 %v7064_v43  ;;  %4707 = vmatpush1.bf16.msra.mxu1 %v7067_v44  ;;  %v7144_v43 = vld [vmem:[%s9842_s1 + $0xc80] ss:$20 sps:$4 sm:$0xff]   ;;  %v7147_v44 = vld [vmem:[%s9842_s1 + $0xc88] ss:$20 sps:$4 sm:$0xff]  }
 0x110   :  { %4380 = vmatprep.subr.bf16.mxu0 %v7072_v45  ;;  %4708 = vmatprep.subr.bf16.mxu1 %v7075_v46  ;;  %v7152_v45 = vld [vmem:[%s9842_s1 + $0xcac] ss:$20 sps:$4 sm:$0xff]   ;;  %v8700_v46 = vcombine.high %v8680_v41, %v8680_v41 }
 0x113   :  { %4381 = vmatpush1.bf16.msra.mxu0 %v7070_v47  ;;  %4709 = vmatpush1.bf16.msra.mxu1 %v7073_v49  ;;  %v7150_v47 = vld [vmem:[%s9842_s1 + $0xca8] ss:$20 sps:$4 sm:$0xff]   ;;  %v7153_v49 = vld [vmem:[%s9842_s1 + $0xcb0] ss:$20 sps:$4 sm:$0xff]  }
 0x114   :  { %4382 = vmatprep.subr.bf16.mxu0 %v7078_v50  ;;  %4710 = vmatprep.subr.bf16.mxu1 %v7081_v51  ;;  %v7158_v50 = vld [vmem:[%s9842_s1 + $0xcd4] ss:$20 sps:$4 sm:$0xff]   ;;  %v7161_v51 = vld [vmem:[%s9842_s1 + $0xcdc] ss:$20 sps:$4 sm:$0xff]  }
 0x117   :  { %4383 = vmatpush1.bf16.msra.mxu0 %v7076_v52  ;;  %4711 = vmatpush1.bf16.msra.mxu1 %v7079_v53  ;;  %v7156_v52 = vld [vmem:[%s9842_s1 + $0xcd0] ss:$20 sps:$4 sm:$0xff]   ;;  %v7159_v53 = vld [vmem:[%s9842_s1 + $0xcd8] ss:$20 sps:$4 sm:$0xff]  }
 0x118   :  { %4384 = vmatprep.subr.bf16.mxu0 %v7084_v54  ;;  %4712 = vmatprep.subr.bf16.mxu1 %v7087_v55  ;;  %v7164_v54 = vld [vmem:[%s9842_s1 + $0xcfc] ss:$20 sps:$4 sm:$0xff]   ;;  %v7167_v55 = vld [vmem:[%s9842_s1 + $0xd04] ss:$20 sps:$4 sm:$0xff]  }
 0x11b   :  { %4385 = vmatpush1.bf16.msra.mxu0 %v7082_v56  ;;  %4713 = vmatpush1.bf16.msra.mxu1 %v7085_v57  ;;  %v7162_v56 = vld [vmem:[%s9842_s1 + $0xcf8] ss:$20 sps:$4 sm:$0xff]   ;;  %v7165_v57 = vld [vmem:[%s9842_s1 + $0xd00] ss:$20 sps:$4 sm:$0xff]  }
 0x11c   :  { %4386 = vmatprep.subr.bf16.mxu0 %v7090_v58  ;;  %4714 = vmatprep.subr.bf16.mxu1 %v7093_v59  ;;  %v7170_v58 = vld [vmem:[%s9842_s1 + $0xd24] ss:$20 sps:$4 sm:$0xff]   ;;  %v7173_v59 = vld [vmem:[%s9842_s1 + $0xd2c] ss:$20 sps:$4 sm:$0xff]  }
 0x11f   :  { %4387 = vmatpush1.bf16.msra.mxu0 %v7088_v60  ;;  %4715 = vmatpush1.bf16.msra.mxu1 %v7091_v61  ;;  %v7168_v60 = vld [vmem:[%s9842_s1 + $0xd20] ss:$20 sps:$4 sm:$0xff]   ;;  %v7171_v61 = vld [vmem:[%s9842_s1 + $0xd28] ss:$20 sps:$4 sm:$0xff]  }
 0x120   :  { %4388 = vmatprep.subr.bf16.mxu0 %v7096_v62  ;;  %4716 = vmatprep.subr.bf16.mxu1 %v7099_v63  ;;  %v7176_v62 = vld [vmem:[%s9842_s1 + $0xd4c] ss:$20 sps:$4 sm:$0xff]   ;;  %v7179_v63 = vld [vmem:[%s9842_s1 + $0xd54] ss:$20 sps:$4 sm:$0xff]  }
 0x123   :  { %4389 = vmatpush1.bf16.msra.mxu0 %v7094_v0  ;;  %4717 = vmatpush1.bf16.msra.mxu1 %v7097_v1  ;;  %v7174_v0 = vld [vmem:[%s9842_s1 + $0xd48] ss:$20 sps:$4 sm:$0xff]   ;;  %v7177_v1 = vld [vmem:[%s9842_s1 + $0xd50] ss:$20 sps:$4 sm:$0xff]  }
 0x124   :  { %4390 = vmatprep.subr.bf16.mxu0 %v7102_v2  ;;  %4718 = vmatprep.subr.bf16.mxu1 %v7105_v3  ;;  %v7182_v2 = vld [vmem:[%s9842_s1 + $0xd74] ss:$20 sps:$4 sm:$0xff]   ;;  %v7185_v3 = vld [vmem:[%s9842_s1 + $0xd7c] ss:$20 sps:$4 sm:$0xff]  }
 0x127   :  { %4391 = vmatpush1.bf16.msra.mxu0 %v7100_v4  ;;  %4719 = vmatpush1.bf16.msra.mxu1 %v7103_v6  ;;  %v7180_v4 = vld [vmem:[%s9842_s1 + $0xd70] ss:$20 sps:$4 sm:$0xff]   ;;  %v7183_v6 = vld [vmem:[%s9842_s1 + $0xd78] ss:$20 sps:$4 sm:$0xff]  }
 0x128   :  { %4392 = vmatprep.subr.bf16.mxu0 %v7108_v7  ;;  %4720 = vmatprep.subr.bf16.mxu1 %v7111_v8  ;;  %v7188_v7 = vld [vmem:[%s9842_s1 + $0xd9c] ss:$20 sps:$4 sm:$0xff]   ;;  %v7191_v8 = vld [vmem:[%s9842_s1 + $0xda4] ss:$20 sps:$4 sm:$0xff]  }
 0x12b   :  { %4393 = vmatpush1.bf16.msra.mxu0 %v7106_v10  ;;  %4721 = vmatpush1.bf16.msra.mxu1 %v7109_v11  ;;  %v7186_v10 = vld [vmem:[%s9842_s1 + $0xd98] ss:$20 sps:$4 sm:$0xff]   ;;  %v7189_v11 = vld [vmem:[%s9842_s1 + $0xda0] ss:$20 sps:$4 sm:$0xff]  }
 0x12c   :  { %4394 = vmatprep.subr.bf16.mxu0 %v7114_v12  ;;  %4722 = vmatprep.subr.bf16.mxu1 %v7117_v14  ;;  %v7194_v12 = vld [vmem:[%s9842_s1 + $0xdc4] ss:$20 sps:$4 sm:$0xff]   ;;  %v7197_v14 = vld [vmem:[%s9842_s1 + $0xdcc] ss:$20 sps:$4 sm:$0xff]  }
 0x12f   :  { %4395 = vmatpush1.bf16.msra.mxu0 %v7112_v16  ;;  %4723 = vmatpush1.bf16.msra.mxu1 %v7115_v17  ;;  %v7192_v16 = vld [vmem:[%s9842_s1 + $0xdc0] ss:$20 sps:$4 sm:$0xff]   ;;  %v7195_v17 = vld [vmem:[%s9842_s1 + $0xdc8] ss:$20 sps:$4 sm:$0xff]  }
 0x130   :  { %4396 = vmatprep.subr.bf16.mxu0 %v7120_v18  ;;  %4724 = vmatprep.subr.bf16.mxu1 %v7123_v20  ;;  %v7200_v18 = vld [vmem:[%s9842_s1 + $0xdec] ss:$20 sps:$4 sm:$0xff]   ;;  %v7203_v20 = vld [vmem:[%s9842_s1 + $0xdf4] ss:$20 sps:$4 sm:$0xff]  }
 0x133   :  { %4397 = vmatpush1.bf16.msra.mxu0 %v7118_v22  ;;  %4725 = vmatpush1.bf16.msra.mxu1 %v7121_v13  ;;  %v7198_v22 = vld [vmem:[%s9842_s1 + $0xde8] ss:$20 sps:$4 sm:$0xff]   ;;  %v7201_v13 = vld [vmem:[%s9842_s1 + $0xdf0] ss:$20 sps:$4 sm:$0xff]  }
 0x134   :  { %4398 = vmatprep.subr.bf16.mxu0 %v7126_v24  ;;  %4726 = vmatprep.subr.bf16.mxu1 %v7129_v25  ;;  %v7206_v24 = vld [vmem:[%s9842_s1 + $0xe14] ss:$20 sps:$4 sm:$0xff]   ;;  %v7209_v25 = vld [vmem:[%s9842_s1 + $0xe1c] ss:$20 sps:$4 sm:$0xff]  }
 0x137   :  { %4399 = vmatpush1.bf16.msra.mxu0 %v7124_v26  ;;  %4727 = vmatpush1.bf16.msra.mxu1 %v7127_v27  ;;  %v7204_v26 = vld [vmem:[%s9842_s1 + $0xe10] ss:$20 sps:$4 sm:$0xff]   ;;  %v7207_v27 = vld [vmem:[%s9842_s1 + $0xe18] ss:$20 sps:$4 sm:$0xff]  }
 0x138   :  { %4400 = vmatprep.subr.bf16.mxu0 %v7132_v28  ;;  %4728 = vmatprep.subr.bf16.mxu1 %v7135_v32  ;;  %v7212_v28 = vld [vmem:[%s9842_s1 + $0xe3c] ss:$20 sps:$4 sm:$0xff]   ;;  %v7215_v32 = vld [vmem:[%s9842_s1 + $0xe44] ss:$20 sps:$4 sm:$0xff]  }
 0x13b   :  { %4401 = vmatpush1.bf16.msra.mxu0 %v7130_v33  ;;  %4729 = vmatpush1.bf16.msra.mxu1 %v7133_v21  ;;  %v7210_v33 = vld [vmem:[%s9842_s1 + $0xe38] ss:$20 sps:$4 sm:$0xff]   ;;  %v7213_v21 = vld [vmem:[%s9842_s1 + $0xe40] ss:$20 sps:$4 sm:$0xff]  }
 0x13c   :  { %4402 = vmatprep.subr.bf16.mxu0 %v7138_v35  ;;  %4730 = vmatprep.subr.bf16.mxu1 %v7141_v36  ;;  %v7218_v35 = vld [vmem:[%s9842_s1 + $0xe64] ss:$20 sps:$4 sm:$0xff]   ;;  %v7221_v36 = vld [vmem:[%s9842_s1 + $0xe6c] ss:$20 sps:$4 sm:$0xff]  }
 0x13f   :  { %4403 = vmatpush1.bf16.msra.mxu0 %v7136_v37  ;;  %4731 = vmatpush1.bf16.msra.mxu1 %v7139_v38  ;;  %v7216_v37 = vld [vmem:[%s9842_s1 + $0xe60] ss:$20 sps:$4 sm:$0xff]   ;;  %v7219_v38 = vld [vmem:[%s9842_s1 + $0xe68] ss:$20 sps:$4 sm:$0xff]  }
 0x140   :  { %4413 = vmatprep.subr.bf16.mxu0 %v7146_v39  ;;  %4741 = vmatprep.subr.bf16.mxu1 %v7149_v40  ;;  %v7224_v39 = vld [vmem:[%s9842_s1 + $0xe8c] ss:$20 sps:$4 sm:$0xff]   ;;  %v7227_v40 = vld [vmem:[%s9842_s1 + $0xe94] ss:$20 sps:$4 sm:$0xff]  }
 0x142   :  { %4405 = vmatmul.mubr.bf16.vlgmr.msra.gmra.mrb[0].mxu0 %v8684_v42  ;;  %4733 = vmatmul.mubr.bf16.vlgmr.msra.gmra.mrb[0].mxu1 %v8684_v42 }
 0x143   :  { %4414 = vmatpush1.bf16.msra.mxu0 %v7144_v43  ;;  %4742 = vmatpush1.bf16.msra.mxu1 %v7147_v44  ;;  %v7222_v43 = vld [vmem:[%s9842_s1 + $0xe88] ss:$20 sps:$4 sm:$0xff]   ;;  %v7225_v44 = vld [vmem:[%s9842_s1 + $0xe90] ss:$20 sps:$4 sm:$0xff]  }
 0x144   :  { %4415 = vmatprep.subr.bf16.mxu0 %v7152_v45  ;;  %4743 = vmatprep.subr.bf16.mxu1 %v7155_v31  ;;  %v7230_v45 = vld [vmem:[%s9842_s1 + $0xeb4] ss:$20 sps:$4 sm:$0xff]   ;;  %v7233_v31 = vld [vmem:[%s9842_s1 + $0xebc] ss:$20 sps:$4 sm:$0xff]  }
 0x145   :  { %4445 = vmatprep.mubr.bf16.mxu0 %v8700_v46  ;;  %4773 = vmatprep.mubr.bf16.mxu1 %v8700_v46 }
 0x147   :  { %4416 = vmatpush1.bf16.msra.mxu0 %v7150_v47  ;;  %4744 = vmatpush1.bf16.msra.mxu1 %v7153_v49  ;;  %v7228_v47 = vld [vmem:[%s9842_s1 + $0xeb0] ss:$20 sps:$4 sm:$0xff]   ;;  %v7231_v49 = vld [vmem:[%s9842_s1 + $0xeb8] ss:$20 sps:$4 sm:$0xff]  }
 0x148   :  { %4417 = vmatprep.subr.bf16.mxu0 %v7158_v50  ;;  %4745 = vmatprep.subr.bf16.mxu1 %v7161_v51  ;;  %v7236_v50 = vld [vmem:[%s9842_s1 + $0xedc] ss:$20 sps:$4 sm:$0xff]   ;;  %v7239_v51 = vld [vmem:[%s9842_s1 + $0xee4] ss:$20 sps:$4 sm:$0xff]  }
 0x14b   :  { %4418 = vmatpush1.bf16.msra.mxu0 %v7156_v52  ;;  %4746 = vmatpush1.bf16.msra.mxu1 %v7159_v53  ;;  %v7234_v52 = vld [vmem:[%s9842_s1 + $0xed8] ss:$20 sps:$4 sm:$0xff]   ;;  %v7237_v53 = vld [vmem:[%s9842_s1 + $0xee0] ss:$20 sps:$4 sm:$0xff]  }
 0x14c   :  { %4419 = vmatprep.subr.bf16.mxu0 %v7164_v54  ;;  %4747 = vmatprep.subr.bf16.mxu1 %v7167_v55  ;;  %v7244_v54 = vld [vmem:[%s9842_s1 + $0xf04] ss:$20 sps:$4 sm:$0xff]   ;;  %v7247_v55 = vld [vmem:[%s9842_s1 + $0xf0c] ss:$20 sps:$4 sm:$0xff]  }
 0x14f   :  { %4420 = vmatpush1.bf16.msra.mxu0 %v7162_v56  ;;  %4748 = vmatpush1.bf16.msra.mxu1 %v7165_v57  ;;  %v7242_v56 = vld [vmem:[%s9842_s1 + $0xf00] ss:$20 sps:$4 sm:$0xff]   ;;  %v7245_v57 = vld [vmem:[%s9842_s1 + $0xf08] ss:$20 sps:$4 sm:$0xff]  }
 0x150   :  { %4421 = vmatprep.subr.bf16.mxu0 %v7170_v58  ;;  %4749 = vmatprep.subr.bf16.mxu1 %v7173_v59  ;;  %v8894_v58 = vcombine.low %v8680_v41, %v8680_v41  ;;  %v8899_v59 = vld [vmem:[%s9843_s0 + $0x30] sm:$0xff]  ;;  %v7248_v41 = vld [vmem:[%s9842_s1 + $0xf28] ss:$20 sps:$4 sm:$0xff]  }
 0x153   :  { %4422 = vmatpush1.bf16.msra.mxu0 %v7168_v60  ;;  %4750 = vmatpush1.bf16.msra.mxu1 %v7171_v61  ;;  %v7250_v60 = vld [vmem:[%s9842_s1 + $0xf2c] ss:$20 sps:$4 sm:$0xff]   ;;  %v7253_v61 = vld [vmem:[%s9842_s1 + $0xf34] ss:$20 sps:$4 sm:$0xff]  }
 0x154   :  { %4423 = vmatprep.subr.bf16.mxu0 %v7176_v62  ;;  %4751 = vmatprep.subr.bf16.mxu1 %v7179_v63  ;;  %v8912_v62 = vcombine.high %v8899_v59, %v8899_v59  ;;  %v7251_v63 = vld [vmem:[%s9842_s1 + $0xf30] ss:$20 sps:$4 sm:$0xff]  }
 0x157   :  { %4424 = vmatpush1.bf16.msra.mxu0 %v7174_v0  ;;  %4752 = vmatpush1.bf16.msra.mxu1 %v7177_v1  ;;  %v7256_v0 = vld [vmem:[%s9842_s1 + $0xf54] ss:$20 sps:$4 sm:$0xff]   ;;  %v7259_v1 = vld [vmem:[%s9842_s1 + $0xf5c] ss:$20 sps:$4 sm:$0xff]  }
 0x158   :  { %4425 = vmatprep.subr.bf16.mxu0 %v7182_v2  ;;  %4753 = vmatprep.subr.bf16.mxu1 %v7185_v3  ;;  %v7254_v2 = vld [vmem:[%s9842_s1 + $0xf50] ss:$20 sps:$4 sm:$0xff]   ;;  %v7257_v3 = vld [vmem:[%s9842_s1 + $0xf58] ss:$20 sps:$4 sm:$0xff]  }
 0x15b   :  { %4426 = vmatpush1.bf16.msra.mxu0 %v7180_v4  ;;  %4754 = vmatpush1.bf16.msra.mxu1 %v7183_v6  ;;  %v7262_v4 = vld [vmem:[%s9842_s1 + $0xf7c] ss:$20 sps:$4 sm:$0xff]   ;;  %v7265_v6 = vld [vmem:[%s9842_s1 + $0xf84] ss:$20 sps:$4 sm:$0xff]  }
 0x15c   :  { %4427 = vmatprep.subr.bf16.mxu0 %v7188_v7  ;;  %4755 = vmatprep.subr.bf16.mxu1 %v7191_v8  ;;  %v7260_v7 = vld [vmem:[%s9842_s1 + $0xf78] ss:$20 sps:$4 sm:$0xff]   ;;  %v7263_v8 = vld [vmem:[%s9842_s1 + $0xf80] ss:$20 sps:$4 sm:$0xff]  }
 0x15f   :  { %4428 = vmatpush1.bf16.msra.mxu0 %v7186_v10  ;;  %4756 = vmatpush1.bf16.msra.mxu1 %v7189_v11  ;;  %v7268_v10 = vld [vmem:[%s9842_s1 + $0xfa4] ss:$20 sps:$4 sm:$0xff]   ;;  %v7271_v11 = vld [vmem:[%s9842_s1 + $0xfac] ss:$20 sps:$4 sm:$0xff]  }
 0x160   :  { %4429 = vmatprep.subr.bf16.mxu0 %v7194_v12  ;;  %4757 = vmatprep.subr.bf16.mxu1 %v7197_v14  ;;  %v7266_v12 = vld [vmem:[%s9842_s1 + $0xfa0] ss:$20 sps:$4 sm:$0xff]   ;;  %v7269_v14 = vld [vmem:[%s9842_s1 + $0xfa8] ss:$20 sps:$4 sm:$0xff]  }
 0x163   :  { %4430 = vmatpush1.bf16.msra.mxu0 %v7192_v16  ;;  %4758 = vmatpush1.bf16.msra.mxu1 %v7195_v17  ;;  %v7274_v16 = vld [vmem:[%s9842_s1 + $0xfcc] ss:$20 sps:$4 sm:$0xff]   ;;  %v7277_v17 = vld [vmem:[%s9842_s1 + $0xfd4] ss:$20 sps:$4 sm:$0xff]  }
 0x164   :  { %4431 = vmatprep.subr.bf16.mxu0 %v7200_v18  ;;  %4759 = vmatprep.subr.bf16.mxu1 %v7203_v20  ;;  %v7272_v18 = vld [vmem:[%s9842_s1 + $0xfc8] ss:$20 sps:$4 sm:$0xff]   ;;  %v7275_v20 = vld [vmem:[%s9842_s1 + $0xfd0] ss:$20 sps:$4 sm:$0xff]  }
 0x167   :  { %4432 = vmatpush1.bf16.msra.mxu0 %v7198_v22  ;;  %4760 = vmatpush1.bf16.msra.mxu1 %v7201_v13  ;;  %v7280_v22 = vld [vmem:[%s9842_s1 + $0xff4] ss:$20 sps:$4 sm:$0xff]   ;;  %v7283_v13 = vld [vmem:[%s9842_s1 + $0xffc] ss:$20 sps:$4 sm:$0xff]  }
 0x168   :  { %4433 = vmatprep.subr.bf16.mxu0 %v7206_v24  ;;  %4761 = vmatprep.subr.bf16.mxu1 %v7209_v25  ;;  %v7278_v24 = vld [vmem:[%s9842_s1 + $0xff0] ss:$20 sps:$4 sm:$0xff]   ;;  %v7281_v25 = vld [vmem:[%s9842_s1 + $0xff8] ss:$20 sps:$4 sm:$0xff]  }
 0x16b   :  { %4434 = vmatpush1.bf16.msra.mxu0 %v7204_v26  ;;  %4762 = vmatpush1.bf16.msra.mxu1 %v7207_v27  ;;  %v7286_v26 = vld [vmem:[%s9842_s1 + $0x101c] ss:$20 sps:$4 sm:$0xff]   ;;  %v7289_v27 = vld [vmem:[%s9842_s1 + $0x1024] ss:$20 sps:$4 sm:$0xff]  }
 0x16c   :  { %4435 = vmatprep.subr.bf16.mxu0 %v7212_v28  ;;  %4763 = vmatprep.subr.bf16.mxu1 %v7215_v32  ;;  %v7284_v28 = vld [vmem:[%s9842_s1 + $0x1018] ss:$20 sps:$4 sm:$0xff]   ;;  %v7287_v32 = vld [vmem:[%s9842_s1 + $0x1020] ss:$20 sps:$4 sm:$0xff]  }
 0x16f   :  { %4436 = vmatpush1.bf16.msra.mxu0 %v7210_v33  ;;  %4764 = vmatpush1.bf16.msra.mxu1 %v7213_v21  ;;  %v7292_v33 = vld [vmem:[%s9842_s1 + $0x1044] ss:$20 sps:$4 sm:$0xff]   ;;  %v7295_v21 = vld [vmem:[%s9842_s1 + $0x104c] ss:$20 sps:$4 sm:$0xff]  }
 0x170   :  { %4437 = vmatprep.subr.bf16.mxu0 %v7218_v35  ;;  %4765 = vmatprep.subr.bf16.mxu1 %v7221_v36  ;;  %v7290_v35 = vld [vmem:[%s9842_s1 + $0x1040] ss:$20 sps:$4 sm:$0xff]   ;;  %v7293_v36 = vld [vmem:[%s9842_s1 + $0x1048] ss:$20 sps:$4 sm:$0xff]  }
 0x173   :  { %4438 = vmatpush1.bf16.msra.mxu0 %v7216_v37  ;;  %4766 = vmatpush1.bf16.msra.mxu1 %v7219_v38  ;;  %v7298_v37 = vld [vmem:[%s9842_s1 + $0x106c] ss:$20 sps:$4 sm:$0xff]   ;;  %v7301_v38 = vld [vmem:[%s9842_s1 + $0x1074] ss:$20 sps:$4 sm:$0xff]  }
 0x174   :  { %4439 = vmatprep.subr.bf16.mxu0 %v7224_v39  ;;  %4767 = vmatprep.subr.bf16.mxu1 %v7227_v40  ;;  %v7296_v39 = vld [vmem:[%s9842_s1 + $0x1068] ss:$20 sps:$4 sm:$0xff]   ;;  %v7299_v40 = vld [vmem:[%s9842_s1 + $0x1070] ss:$20 sps:$4 sm:$0xff]  }
 0x177   :  { %4440 = vmatpush1.bf16.msra.mxu0 %v7222_v43  ;;  %4768 = vmatpush1.bf16.msra.mxu1 %v7225_v44  ;;  %v7304_v43 = vld [vmem:[%s9842_s1 + $0x1094] ss:$20 sps:$4 sm:$0xff]   ;;  %v7307_v44 = vld [vmem:[%s9842_s1 + $0x109c] ss:$20 sps:$4 sm:$0xff]  }
 0x178   :  { %4441 = vmatprep.subr.bf16.mxu0 %v7230_v45  ;;  %4769 = vmatprep.subr.bf16.mxu1 %v7233_v31  ;;  %v7302_v45 = vld [vmem:[%s9842_s1 + $0x1090] ss:$20 sps:$4 sm:$0xff]   ;;  %v7305_v31 = vld [vmem:[%s9842_s1 + $0x1098] ss:$20 sps:$4 sm:$0xff]  }
 0x17b   :  { %4442 = vmatpush1.bf16.msra.mxu0 %v7228_v47  ;;  %4770 = vmatpush1.bf16.msra.mxu1 %v7231_v49  ;;  %v7310_v47 = vld [vmem:[%s9842_s1 + $0x10bc] ss:$20 sps:$4 sm:$0xff]   ;;  %v7313_v49 = vld [vmem:[%s9842_s1 + $0x10c4] ss:$20 sps:$4 sm:$0xff]  }
 0x17c   :  { %4443 = vmatprep.subr.bf16.mxu0 %v7236_v50  ;;  %4771 = vmatprep.subr.bf16.mxu1 %v7239_v51  ;;  %v7308_v50 = vld [vmem:[%s9842_s1 + $0x10b8] ss:$20 sps:$4 sm:$0xff]   ;;  %v7311_v51 = vld [vmem:[%s9842_s1 + $0x10c0] ss:$20 sps:$4 sm:$0xff]  }
 0x17f   :  { %4444 = vmatpush1.bf16.msra.mxu0 %v7234_v52  ;;  %4772 = vmatpush1.bf16.msra.mxu1 %v7237_v53  ;;  %v7316_v52 = vld [vmem:[%s9842_s1 + $0x10e4] ss:$20 sps:$4 sm:$0xff]   ;;  %v7319_v53 = vld [vmem:[%s9842_s1 + $0x10ec] ss:$20 sps:$4 sm:$0xff]  }
 0x180   :  { %4454 = vmatprep.subr.bf16.mxu0 %v7244_v54  ;;  %4782 = vmatprep.subr.bf16.mxu1 %v7247_v55  ;;  %v7314_v54 = vld [vmem:[%s9842_s1 + $0x10e0] ss:$20 sps:$4 sm:$0xff]   ;;  %v7317_v55 = vld [vmem:[%s9842_s1 + $0x10e8] ss:$20 sps:$4 sm:$0xff]  }
 0x182   :  { %4446 = vmatmul.mubr.bf16.vlgmr.msra.gmra.mrb[0].mxu0 %v8894_v58  ;;  %4774 = vmatmul.mubr.bf16.vlgmr.msra.gmra.mrb[0].mxu1 %v8894_v58 }
 0x183   :  { %4455 = vmatpush1.bf16.msra.mxu0 %v7242_v56  ;;  %4783 = vmatpush1.bf16.msra.mxu1 %v7245_v57  ;;  %v7322_v56 = vld [vmem:[%s9842_s1 + $0x110c] ss:$20 sps:$4 sm:$0xff]   ;;  %v7325_v57 = vld [vmem:[%s9842_s1 + $0x1114] ss:$20 sps:$4 sm:$0xff]  }
 0x184   :  { %4456 = vmatprep.subr.bf16.mxu0 %v7250_v60  ;;  %4784 = vmatprep.subr.bf16.mxu1 %v7253_v61  ;;  %v7320_v60 = vld [vmem:[%s9842_s1 + $0x1108] ss:$20 sps:$4 sm:$0xff]   ;;  %v7323_v61 = vld [vmem:[%s9842_s1 + $0x1110] ss:$20 sps:$4 sm:$0xff]  }
 0x185   :  { %4486 = vmatprep.mubr.bf16.mxu0 %v8912_v62  ;;  %4814 = vmatprep.mubr.bf16.mxu1 %v8912_v62 }
 0x187   :  { %4457 = vmatpush1.bf16.msra.mxu0 %v7248_v41  ;;  %4785 = vmatpush1.bf16.msra.mxu1 %v7251_v63  ;;  %v7328_v41 = vld [vmem:[%s9842_s1 + $0x1134] ss:$20 sps:$4 sm:$0xff]   ;;  %v7331_v63 = vld [vmem:[%s9842_s1 + $0x113c] ss:$20 sps:$4 sm:$0xff]  }
 0x188   :  { %4458 = vmatprep.subr.bf16.mxu0 %v7256_v0  ;;  %4786 = vmatprep.subr.bf16.mxu1 %v7259_v1  ;;  %v7326_v0 = vld [vmem:[%s9842_s1 + $0x1130] ss:$20 sps:$4 sm:$0xff]   ;;  %v7329_v1 = vld [vmem:[%s9842_s1 + $0x1138] ss:$20 sps:$4 sm:$0xff]  }
 0x18b   :  { %4459 = vmatpush1.bf16.msra.mxu0 %v7254_v2  ;;  %4787 = vmatpush1.bf16.msra.mxu1 %v7257_v3  ;;  %v7334_v2 = vld [vmem:[%s9842_s1 + $0x115c] ss:$20 sps:$4 sm:$0xff]   ;;  %v7337_v3 = vld [vmem:[%s9842_s1 + $0x1164] ss:$20 sps:$4 sm:$0xff]  }
 0x18c   :  { %4460 = vmatprep.subr.bf16.mxu0 %v7262_v4  ;;  %4788 = vmatprep.subr.bf16.mxu1 %v7265_v6  ;;  %v7332_v4 = vld [vmem:[%s9842_s1 + $0x1158] ss:$20 sps:$4 sm:$0xff]   ;;  %v7335_v6 = vld [vmem:[%s9842_s1 + $0x1160] ss:$20 sps:$4 sm:$0xff]  }
 0x18f   :  { %4461 = vmatpush1.bf16.msra.mxu0 %v7260_v7  ;;  %4789 = vmatpush1.bf16.msra.mxu1 %v7263_v8  ;;  %v7342_v7 = vld [vmem:[%s9842_s1 + $0x1184] ss:$20 sps:$4 sm:$0xff]   ;;  %v7345_v8 = vld [vmem:[%s9842_s1 + $0x118c] ss:$20 sps:$4 sm:$0xff]  }
 0x190   :  { %4462 = vmatprep.subr.bf16.mxu0 %v7268_v10  ;;  %4790 = vmatprep.subr.bf16.mxu1 %v7271_v11  ;;  %v7340_v10 = vld [vmem:[%s9842_s1 + $0x1180] ss:$20 sps:$4 sm:$0xff]   ;;  %v7343_v11 = vld [vmem:[%s9842_s1 + $0x1188] ss:$20 sps:$4 sm:$0xff]  }
 0x193   :  { %4463 = vmatpush1.bf16.msra.mxu0 %v7266_v12  ;;  %4791 = vmatpush1.bf16.msra.mxu1 %v7269_v14  ;;  %v9104_v12 = vld [vmem:[%s9843_s0 + $0x38] sm:$0xff]  ;;  %v9108_v14 = vcombine.low %v8899_v59, %v8899_v59 }
 0x194   :  { %4464 = vmatprep.subr.bf16.mxu0 %v7274_v16  ;;  %4792 = vmatprep.subr.bf16.mxu1 %v7277_v17  ;;  %v7348_v16 = vld [vmem:[%s9842_s1 + $0x11ac] ss:$20 sps:$4 sm:$0xff]   ;;  %v7351_v17 = vld [vmem:[%s9842_s1 + $0x11b4] ss:$20 sps:$4 sm:$0xff]  }
 0x195   :  { %v7346_v59 = vld [vmem:[%s9842_s1 + $0x11a8] ss:$20 sps:$4 sm:$0xff]  }
 0x197   :  { %4465 = vmatpush1.bf16.msra.mxu0 %v7272_v18  ;;  %4793 = vmatpush1.bf16.msra.mxu1 %v7275_v20  ;;  %v9118_v18 = vcombine.high %v9104_v12, %v9104_v12  ;;  %v7349_v20 = vld [vmem:[%s9842_s1 + $0x11b0] ss:$20 sps:$4 sm:$0xff]  }
 0x198   :  { %4466 = vmatprep.subr.bf16.mxu0 %v7280_v22  ;;  %4794 = vmatprep.subr.bf16.mxu1 %v7283_v13  ;;  %v7354_v22 = vld [vmem:[%s9842_s1 + $0x11d4] ss:$20 sps:$4 sm:$0xff]   ;;  %v7357_v13 = vld [vmem:[%s9842_s1 + $0x11dc] ss:$20 sps:$4 sm:$0xff]  }
 0x19b   :  { %4467 = vmatpush1.bf16.msra.mxu0 %v7278_v24  ;;  %4795 = vmatpush1.bf16.msra.mxu1 %v7281_v25  ;;  %v7352_v24 = vld [vmem:[%s9842_s1 + $0x11d0] ss:$20 sps:$4 sm:$0xff]   ;;  %v7355_v25 = vld [vmem:[%s9842_s1 + $0x11d8] ss:$20 sps:$4 sm:$0xff]  }
 0x19c   :  { %4468 = vmatprep.subr.bf16.mxu0 %v7286_v26  ;;  %4796 = vmatprep.subr.bf16.mxu1 %v7289_v27  ;;  %v7360_v26 = vld [vmem:[%s9842_s1 + $0x11fc] ss:$20 sps:$4 sm:$0xff]   ;;  %v7363_v27 = vld [vmem:[%s9842_s1 + $0x1204] ss:$20 sps:$4 sm:$0xff]  }
 0x19f   :  { %4469 = vmatpush1.bf16.msra.mxu0 %v7284_v28  ;;  %4797 = vmatpush1.bf16.msra.mxu1 %v7287_v32  ;;  %v7358_v28 = vld [vmem:[%s9842_s1 + $0x11f8] ss:$20 sps:$4 sm:$0xff]   ;;  %v7361_v32 = vld [vmem:[%s9842_s1 + $0x1200] ss:$20 sps:$4 sm:$0xff]  }
 0x1a0   :  { %4470 = vmatprep.subr.bf16.mxu0 %v7292_v33  ;;  %4798 = vmatprep.subr.bf16.mxu1 %v7295_v21  ;;  %v7366_v33 = vld [vmem:[%s9842_s1 + $0x1224] ss:$20 sps:$4 sm:$0xff]   ;;  %v7369_v21 = vld [vmem:[%s9842_s1 + $0x122c] ss:$20 sps:$4 sm:$0xff]  }
 0x1a3   :  { %4471 = vmatpush1.bf16.msra.mxu0 %v7290_v35  ;;  %4799 = vmatpush1.bf16.msra.mxu1 %v7293_v36  ;;  %v7364_v35 = vld [vmem:[%s9842_s1 + $0x1220] ss:$20 sps:$4 sm:$0xff]   ;;  %v7367_v36 = vld [vmem:[%s9842_s1 + $0x1228] ss:$20 sps:$4 sm:$0xff]  }
 0x1a4   :  { %4472 = vmatprep.subr.bf16.mxu0 %v7298_v37  ;;  %4800 = vmatprep.subr.bf16.mxu1 %v7301_v38  ;;  %v7372_v37 = vld [vmem:[%s9842_s1 + $0x124c] ss:$20 sps:$4 sm:$0xff]   ;;  %v7375_v38 = vld [vmem:[%s9842_s1 + $0x1254] ss:$20 sps:$4 sm:$0xff]  }
 0x1a7   :  { %4473 = vmatpush1.bf16.msra.mxu0 %v7296_v39  ;;  %4801 = vmatpush1.bf16.msra.mxu1 %v7299_v40  ;;  %v7370_v39 = vld [vmem:[%s9842_s1 + $0x1248] ss:$20 sps:$4 sm:$0xff]   ;;  %v7373_v40 = vld [vmem:[%s9842_s1 + $0x1250] ss:$20 sps:$4 sm:$0xff]  }
 0x1a8   :  { %4474 = vmatprep.subr.bf16.mxu0 %v7304_v43  ;;  %4802 = vmatprep.subr.bf16.mxu1 %v7307_v44  ;;  %v7378_v43 = vld [vmem:[%s9842_s1 + $0x1274] ss:$20 sps:$4 sm:$0xff]   ;;  %v7381_v44 = vld [vmem:[%s9842_s1 + $0x127c] ss:$20 sps:$4 sm:$0xff]  }
 0x1ab   :  { %4475 = vmatpush1.bf16.msra.mxu0 %v7302_v45  ;;  %4803 = vmatpush1.bf16.msra.mxu1 %v7305_v31  ;;  %v7376_v45 = vld [vmem:[%s9842_s1 + $0x1270] ss:$20 sps:$4 sm:$0xff]   ;;  %v7379_v31 = vld [vmem:[%s9842_s1 + $0x1278] ss:$20 sps:$4 sm:$0xff]  }
 0x1ac   :  { %4476 = vmatprep.subr.bf16.mxu0 %v7310_v47  ;;  %4804 = vmatprep.subr.bf16.mxu1 %v7313_v49  ;;  %v7384_v47 = vld [vmem:[%s9842_s1 + $0x129c] ss:$20 sps:$4 sm:$0xff]   ;;  %v7387_v49 = vld [vmem:[%s9842_s1 + $0x12a4] ss:$20 sps:$4 sm:$0xff]  }
 0x1af   :  { %4477 = vmatpush1.bf16.msra.mxu0 %v7308_v50  ;;  %4805 = vmatpush1.bf16.msra.mxu1 %v7311_v51  ;;  %v7382_v50 = vld [vmem:[%s9842_s1 + $0x1298] ss:$20 sps:$4 sm:$0xff]   ;;  %v7385_v51 = vld [vmem:[%s9842_s1 + $0x12a0] ss:$20 sps:$4 sm:$0xff]  }
 0x1b0   :  { %4478 = vmatprep.subr.bf16.mxu0 %v7316_v52  ;;  %4806 = vmatprep.subr.bf16.mxu1 %v7319_v53  ;;  %v7390_v52 = vld [vmem:[%s9842_s1 + $0x12c4] ss:$20 sps:$4 sm:$0xff]   ;;  %v7393_v53 = vld [vmem:[%s9842_s1 + $0x12cc] ss:$20 sps:$4 sm:$0xff]  }
 0x1b3   :  { %4479 = vmatpush1.bf16.msra.mxu0 %v7314_v54  ;;  %4807 = vmatpush1.bf16.msra.mxu1 %v7317_v55  ;;  %v7388_v54 = vld [vmem:[%s9842_s1 + $0x12c0] ss:$20 sps:$4 sm:$0xff]   ;;  %v7391_v55 = vld [vmem:[%s9842_s1 + $0x12c8] ss:$20 sps:$4 sm:$0xff]  }
 0x1b4   :  { %4480 = vmatprep.subr.bf16.mxu0 %v7322_v56  ;;  %4808 = vmatprep.subr.bf16.mxu1 %v7325_v57  ;;  %v7396_v56 = vld [vmem:[%s9842_s1 + $0x12ec] ss:$20 sps:$4 sm:$0xff]   ;;  %v7399_v57 = vld [vmem:[%s9842_s1 + $0x12f4] ss:$20 sps:$4 sm:$0xff]  }
 0x1b7   :  { %4481 = vmatpush1.bf16.msra.mxu0 %v7320_v60  ;;  %4809 = vmatpush1.bf16.msra.mxu1 %v7323_v61  ;;  %v7394_v60 = vld [vmem:[%s9842_s1 + $0x12e8] ss:$20 sps:$4 sm:$0xff]   ;;  %v7397_v61 = vld [vmem:[%s9842_s1 + $0x12f0] ss:$20 sps:$4 sm:$0xff]  }
 0x1b8   :  { %4482 = vmatprep.subr.bf16.mxu0 %v7328_v41  ;;  %4810 = vmatprep.subr.bf16.mxu1 %v7331_v63  ;;  %v7402_v41 = vld [vmem:[%s9842_s1 + $0x1314] ss:$20 sps:$4 sm:$0xff]   ;;  %v7405_v63 = vld [vmem:[%s9842_s1 + $0x131c] ss:$20 sps:$4 sm:$0xff]  }
 0x1bb   :  { %4483 = vmatpush1.bf16.msra.mxu0 %v7326_v0  ;;  %4811 = vmatpush1.bf16.msra.mxu1 %v7329_v1  ;;  %v7400_v0 = vld [vmem:[%s9842_s1 + $0x1310] ss:$20 sps:$4 sm:$0xff]   ;;  %v7403_v1 = vld [vmem:[%s9842_s1 + $0x1318] ss:$20 sps:$4 sm:$0xff]  }
 0x1bc   :  { %4484 = vmatprep.subr.bf16.mxu0 %v7334_v2  ;;  %4812 = vmatprep.subr.bf16.mxu1 %v7337_v3  ;;  %v7408_v2 = vld [vmem:[%s9842_s1 + $0x133c] ss:$20 sps:$4 sm:$0xff]   ;;  %v7411_v3 = vld [vmem:[%s9842_s1 + $0x1344] ss:$20 sps:$4 sm:$0xff]  }
 0x1bf   :  { %4485 = vmatpush1.bf16.msra.mxu0 %v7332_v4  ;;  %4813 = vmatpush1.bf16.msra.mxu1 %v7335_v6  ;;  %v7406_v4 = vld [vmem:[%s9842_s1 + $0x1338] ss:$20 sps:$4 sm:$0xff]   ;;  %v7409_v6 = vld [vmem:[%s9842_s1 + $0x1340] ss:$20 sps:$4 sm:$0xff]  }
 0x1c0   :  { %4495 = vmatprep.subr.bf16.mxu0 %v7342_v7  ;;  %4823 = vmatprep.subr.bf16.mxu1 %v7345_v8  ;;  %v7414_v7 = vld [vmem:[%s9842_s1 + $0x1364] ss:$20 sps:$4 sm:$0xff]   ;;  %v7417_v8 = vld [vmem:[%s9842_s1 + $0x136c] ss:$20 sps:$4 sm:$0xff]  }
 0x1c2   :  { %4487 = vmatmul.mubr.bf16.vlgmr.msra.gmra.mrb[0].mxu0 %v9108_v14  ;;  %4815 = vmatmul.mubr.bf16.vlgmr.msra.gmra.mrb[0].mxu1 %v9108_v14 }
 0x1c3   :  { %4496 = vmatpush1.bf16.msra.mxu0 %v7340_v10  ;;  %4824 = vmatpush1.bf16.msra.mxu1 %v7343_v11  ;;  %v7412_v10 = vld [vmem:[%s9842_s1 + $0x1360] ss:$20 sps:$4 sm:$0xff]   ;;  %v7415_v11 = vld [vmem:[%s9842_s1 + $0x1368] ss:$20 sps:$4 sm:$0xff]  }
 0x1c4   :  { %4497 = vmatprep.subr.bf16.mxu0 %v7348_v16  ;;  %4825 = vmatprep.subr.bf16.mxu1 %v7351_v17  ;;  %v7420_v16 = vld [vmem:[%s9842_s1 + $0x138c] ss:$20 sps:$4 sm:$0xff]   ;;  %v7423_v17 = vld [vmem:[%s9842_s1 + $0x1394] ss:$20 sps:$4 sm:$0xff]  }
 0x1c5   :  { %4527 = vmatprep.mubr.bf16.mxu0 %v9118_v18  ;;  %4855 = vmatprep.mubr.bf16.mxu1 %v9118_v18 }
 0x1c7   :  { %4498 = vmatpush1.bf16.msra.mxu0 %v7346_v59  ;;  %4826 = vmatpush1.bf16.msra.mxu1 %v7349_v20  ;;  %v7418_v59 = vld [vmem:[%s9842_s1 + $0x1388] ss:$20 sps:$4 sm:$0xff]   ;;  %v7421_v20 = vld [vmem:[%s9842_s1 + $0x1390] ss:$20 sps:$4 sm:$0xff]  }
 0x1c8   :  { %4499 = vmatprep.subr.bf16.mxu0 %v7354_v22  ;;  %4827 = vmatprep.subr.bf16.mxu1 %v7357_v13  ;;  %v7426_v22 = vld [vmem:[%s9842_s1 + $0x13b4] ss:$20 sps:$4 sm:$0xff]   ;;  %v7429_v13 = vld [vmem:[%s9842_s1 + $0x13bc] ss:$20 sps:$4 sm:$0xff]  }
 0x1cb   :  { %4500 = vmatpush1.bf16.msra.mxu0 %v7352_v24  ;;  %4828 = vmatpush1.bf16.msra.mxu1 %v7355_v25  ;;  %v7424_v24 = vld [vmem:[%s9842_s1 + $0x13b0] ss:$20 sps:$4 sm:$0xff]   ;;  %v7427_v25 = vld [vmem:[%s9842_s1 + $0x13b8] ss:$20 sps:$4 sm:$0xff]  }
 0x1cc   :  { %4501 = vmatprep.subr.bf16.mxu0 %v7360_v26  ;;  %4829 = vmatprep.subr.bf16.mxu1 %v7363_v27  ;;  %v7432_v26 = vld [vmem:[%s9842_s1 + $0x13dc] ss:$20 sps:$4 sm:$0xff]   ;;  %v7435_v27 = vld [vmem:[%s9842_s1 + $0x13e4] ss:$20 sps:$4 sm:$0xff]  }
 0x1cf   :  { %4502 = vmatpush1.bf16.msra.mxu0 %v7358_v28  ;;  %4830 = vmatpush1.bf16.msra.mxu1 %v7361_v32  ;;  %v7430_v28 = vld [vmem:[%s9842_s1 + $0x13d8] ss:$20 sps:$4 sm:$0xff]   ;;  %v7433_v32 = vld [vmem:[%s9842_s1 + $0x13e0] ss:$20 sps:$4 sm:$0xff]  }
 0x1d0   :  { %4503 = vmatprep.subr.bf16.mxu0 %v7366_v33  ;;  %4831 = vmatprep.subr.bf16.mxu1 %v7369_v21  ;;  %v7438_v33 = vld [vmem:[%s9842_s1 + $0x150] ss:$20 sps:$4 sm:$0xff]  }
 0x1d1   :  { %v7439_v21 = vld [vmem:[%s9842_s1 + $0x3d0] ss:$20 sps:$4 sm:$0xff]  }
 0x1d3   :  { %4504 = vmatpush1.bf16.msra.mxu0 %v7364_v35  ;;  %4832 = vmatpush1.bf16.msra.mxu1 %v7367_v36  ;;  %v9306_v35 = vcombine.low %v9104_v12, %v9104_v12  ;;  %v7440_v36 = vld [vmem:[%s9842_s1 + $0x10] ss:$20 sps:$4 sm:$0xff]   ;;  %v7443_v12 = vld [vmem:[%s9842_s1 + $0x3f8] ss:$20 sps:$4 sm:$0xff]  }
 0x1d4   :  { %4505 = vmatprep.subr.bf16.mxu0 %v7372_v37  ;;  %4833 = vmatprep.subr.bf16.mxu1 %v7375_v38  ;;  %v7441_v37 = vld [vmem:[%s9842_s1 + $0x290] ss:$20 sps:$4 sm:$0xff]   ;;  %v7442_v38 = vld [vmem:[%s9842_s1 + $0x178] ss:$20 sps:$4 sm:$0xff]  }
 0x1d7   :  { %4506 = vmatpush1.bf16.msra.mxu0 %v7370_v39  ;;  %4834 = vmatpush1.bf16.msra.mxu1 %v7373_v40  ;;  %v7444_v39 = vld [vmem:[%s9842_s1 + $0x38] ss:$20 sps:$4 sm:$0xff]  }
 0x1d8   :  { %4507 = vmatprep.subr.bf16.mxu0 %v7378_v43  ;;  %4835 = vmatprep.subr.bf16.mxu1 %v7381_v44  ;;  %v7445_v40 = vld [vmem:[%s9842_s1 + $0x2b8] ss:$20 sps:$4 sm:$0xff]   ;;  %v7446_v43 = vld [vmem:[%s9842_s1 + $0x1a0] ss:$20 sps:$4 sm:$0xff]  }
 0x1d9   :  { %v7447_v44 = vld [vmem:[%s9842_s1 + $0x420] ss:$20 sps:$4 sm:$0xff]  }
 0x1db   :  { %4508 = vmatpush1.bf16.msra.mxu0 %v7376_v45  ;;  %4836 = vmatpush1.bf16.msra.mxu1 %v7379_v31  ;;  %v7448_v45 = vld [vmem:[%s9842_s1 + $0x60] ss:$20 sps:$4 sm:$0xff]  }
 0x1dc   :  { %4509 = vmatprep.subr.bf16.mxu0 %v7384_v47  ;;  %4837 = vmatprep.subr.bf16.mxu1 %v7387_v49  ;;  %v7449_v31 = vld [vmem:[%s9842_s1 + $0x2e0] ss:$20 sps:$4 sm:$0xff]   ;;  %v7450_v47 = vld [vmem:[%s9842_s1 + $0x1c8] ss:$20 sps:$4 sm:$0xff]  }
 0x1dd   :  { %v7451_v49 = vld [vmem:[%s9842_s1 + $0x448] ss:$20 sps:$4 sm:$0xff]  }
 0x1df   :  { %4510 = vmatpush1.bf16.msra.mxu0 %v7382_v50  ;;  %4838 = vmatpush1.bf16.msra.mxu1 %v7385_v51  ;;  %v7454_v50 = vld [vmem:[%s9842_s1 + $0x1f0] ss:$20 sps:$4 sm:$0xff]  }
 0x1e0   :  { %4511 = vmatprep.subr.bf16.mxu0 %v7390_v52  ;;  %4839 = vmatprep.subr.bf16.mxu1 %v7393_v53  ;;  %v7455_v51 = vld [vmem:[%s9842_s1 + $0x470] ss:$20 sps:$4 sm:$0xff]  }
 0x1e1   :  { %v7456_v52 = vld [vmem:[%s9842_s1 + $0xb0] ss:$20 sps:$4 sm:$0xff]  }
 0x1e2   :  { %v7457_v53 = vld [vmem:[%s9842_s1 + $0x330] ss:$20 sps:$4 sm:$0xff]  }
 0x1e3   :  { %4512 = vmatpush1.bf16.msra.mxu0 %v7388_v54  ;;  %4840 = vmatpush1.bf16.msra.mxu1 %v7391_v55  ;;  %v7458_v54 = vld [vmem:[%s9842_s1 + $0x218] ss:$20 sps:$4 sm:$0xff]  }
 0x1e4   :  { %4513 = vmatprep.subr.bf16.mxu0 %v7396_v56  ;;  %4841 = vmatprep.subr.bf16.mxu1 %v7399_v57  ;;  %v7459_v55 = vld [vmem:[%s9842_s1 + $0x498] ss:$20 sps:$4 sm:$0xff]  }
 0x1e5   :  { %v7460_v56 = vld [vmem:[%s9842_s1 + $0xd8] ss:$20 sps:$4 sm:$0xff]  }
 0x1e6   :  { %v7461_v57 = vld [vmem:[%s9842_s1 + $0x358] ss:$20 sps:$4 sm:$0xff]  }
 0x1e7   :  { %4514 = vmatpush1.bf16.msra.mxu0 %v7394_v60  ;;  %4842 = vmatpush1.bf16.msra.mxu1 %v7397_v61  ;;  %v7462_v60 = vld [vmem:[%s9842_s1 + $0x240] ss:$20 sps:$4 sm:$0xff]  }
 0x1e8   :  { %4515 = vmatprep.subr.bf16.mxu0 %v7402_v41  ;;  %4843 = vmatprep.subr.bf16.mxu1 %v7405_v63  ;;  %v7463_v61 = vld [vmem:[%s9842_s1 + $0x4c0] ss:$20 sps:$4 sm:$0xff]  }
 0x1e9   :  { %v7464_v41 = vld [vmem:[%s9842_s1 + $0x100] ss:$20 sps:$4 sm:$0xff]  }
 0x1ea   :  { %v7465_v63 = vld [vmem:[%s9842_s1 + $0x380] ss:$20 sps:$4 sm:$0xff]  }
 0x1eb   :  { %4516 = vmatpush1.bf16.msra.mxu0 %v7400_v0  ;;  %4844 = vmatpush1.bf16.msra.mxu1 %v7403_v1  ;;  %v7466_v0 = vld [vmem:[%s9842_s1 + $0x268] ss:$20 sps:$4 sm:$0xff]  }
 0x1ec   :  { %4517 = vmatprep.subr.bf16.mxu0 %v7408_v2  ;;  %4845 = vmatprep.subr.bf16.mxu1 %v7411_v3  ;;  %v7467_v1 = vld [vmem:[%s9842_s1 + $0x4e8] ss:$20 sps:$4 sm:$0xff]  }
 0x1ed   :  { %v7468_v2 = vld [vmem:[%s9842_s1 + $0x128] ss:$20 sps:$4 sm:$0xff]  }
 0x1ee   :  { %v7469_v3 = vld [vmem:[%s9842_s1 + $0x3a8] ss:$20 sps:$4 sm:$0xff]  }
 0x1ef   :  { %4518 = vmatpush1.bf16.msra.mxu0 %v7406_v4  ;;  %4846 = vmatpush1.bf16.msra.mxu1 %v7409_v6  ;;  %v7470_v4 = vld [vmem:[%s9842_s1 + $0x650] ss:$20 sps:$4 sm:$0xff]  }
 0x1f0   :  { %4519 = vmatprep.subr.bf16.mxu0 %v7414_v7  ;;  %4847 = vmatprep.subr.bf16.mxu1 %v7417_v8  ;;  %v7471_v6 = vld [vmem:[%s9842_s1 + $0x8d0] ss:$20 sps:$4 sm:$0xff]  }
 0x1f1   :  { %v7472_v7 = vld [vmem:[%s9842_s1 + $0x510] ss:$20 sps:$4 sm:$0xff]  }
 0x1f2   :  { %v7473_v8 = vld [vmem:[%s9842_s1 + $0x790] ss:$20 sps:$4 sm:$0xff]  }
 0x1f3   :  { %4520 = vmatpush1.bf16.msra.mxu0 %v7412_v10  ;;  %4848 = vmatpush1.bf16.msra.mxu1 %v7415_v11  ;;  %v7474_v10 = vld [vmem:[%s9842_s1 + $0x678] ss:$20 sps:$4 sm:$0xff]  }
 0x1f4   :  { %4521 = vmatprep.subr.bf16.mxu0 %v7420_v16  ;;  %4849 = vmatprep.subr.bf16.mxu1 %v7423_v17  ;;  %v7475_v11 = vld [vmem:[%s9842_s1 + $0x8f8] ss:$20 sps:$4 sm:$0xff]  }
 0x1f5   :  { %v7476_v16 = vld [vmem:[%s9842_s1 + $0x538] ss:$20 sps:$4 sm:$0xff]  }
 0x1f6   :  { %v7477_v17 = vld [vmem:[%s9842_s1 + $0x7b8] ss:$20 sps:$4 sm:$0xff]  }
 0x1f7   :  { %4522 = vmatpush1.bf16.msra.mxu0 %v7418_v59  ;;  %4850 = vmatpush1.bf16.msra.mxu1 %v7421_v20  ;;  %v7478_v59 = vld [vmem:[%s9842_s1 + $0x6a0] ss:$20 sps:$4 sm:$0xff]  }
 0x1f8   :  { %4523 = vmatprep.subr.bf16.mxu0 %v7426_v22  ;;  %4851 = vmatprep.subr.bf16.mxu1 %v7429_v13  ;;  %v7479_v20 = vld [vmem:[%s9842_s1 + $0x920] ss:$20 sps:$4 sm:$0xff]   ;;  %v7482_v22 = vld [vmem:[%s9842_s1 + $0x6c8] ss:$20 sps:$4 sm:$0xff]  }
 0x1f9   :  { %v7485_v13 = vld [vmem:[%s9842_s1 + $0x808] ss:$20 sps:$4 sm:$0xff]  }
 0x1fb   :  { %4524 = vmatpush1.bf16.msra.mxu0 %v7424_v24  ;;  %4852 = vmatpush1.bf16.msra.mxu1 %v7427_v25  ;;  %v7486_v24 = vld [vmem:[%s9842_s1 + $0x6f0] ss:$20 sps:$4 sm:$0xff]  }
 0x1fc   :  { %4525 = vmatprep.subr.bf16.mxu0 %v7432_v26  ;;  %4853 = vmatprep.subr.bf16.mxu1 %v7435_v27  ;;  %v7487_v25 = vld [vmem:[%s9842_s1 + $0x970] ss:$20 sps:$4 sm:$0xff]  }
 0x1fd   :  { %v7488_v26 = vld [vmem:[%s9842_s1 + $0x5b0] ss:$20 sps:$4 sm:$0xff]  }
 0x1fe   :  { %v7489_v27 = vld [vmem:[%s9842_s1 + $0x830] ss:$20 sps:$4 sm:$0xff]  }
 0x1ff   :  { %4526 = vmatpush1.bf16.msra.mxu0 %v7430_v28  ;;  %4854 = vmatpush1.bf16.msra.mxu1 %v7433_v32  ;;  %v7490_v28 = vld [vmem:[%s9842_s1 + $0x718] ss:$20 sps:$4 sm:$0xff]  }
 0x200   :  { %6343 = vmatprep.subr.bf16.mxu0 %v7438_v33  ;;  %6365 = vmatprep.subr.bf16.mxu1 %v7439_v21  ;;  %v7491_v32 = vld [vmem:[%s9842_s1 + $0x998] ss:$20 sps:$4 sm:$0xff]  }
 0x201   :  { %v7492_v33 = vld [vmem:[%s9842_s1 + $0x5d8] ss:$20 sps:$4 sm:$0xff]  }
 0x202   :  { %4528 = vmatmul.mubr.bf16.vlgmr.msra.gmra.mrb[0].mxu0 %v9306_v35  ;;  %4856 = vmatmul.mubr.bf16.vlgmr.msra.gmra.mrb[0].mxu1 %v9306_v35  ;;  %v7493_v21 = vld [vmem:[%s9842_s1 + $0x858] ss:$20 sps:$4 sm:$0xff]  }
 0x203   :  { %6344 = vmatpush3.bf16.msra.mxu0 %v7440_v36  ;;  %6366 = vmatpush3.bf16.msra.mxu1 %v7441_v37  ;;  %v7494_v36 = vld [vmem:[%s9842_s1 + $0x740] ss:$20 sps:$4 sm:$0xff]  }
 0x204   :  { %6345 = vmatprep.subr.bf16.mxu0 %v7442_v38  ;;  %6367 = vmatprep.subr.bf16.mxu1 %v7443_v12  ;;  %v7495_v37 = vld [vmem:[%s9842_s1 + $0x9c0] ss:$20 sps:$4 sm:$0xff]  }
 0x205   :  { %4896 = vmatprep.mubr.bf16.mxu0 %v7782_v48  ;;  %4936 = vmatprep.mubr.bf16.mxu1 %v7926_v30  ;;  %v7452_v48 = vld [vmem:[%s9842_s1 + $0x88] ss:$20 sps:$4 sm:$0xff]   ;;  %v7496_v38 = vld [vmem:[%s9842_s1 + $0x600] ss:$20 sps:$4 sm:$0xff]  }
 0x206   :  { %v7453_v30 = vld [vmem:[%s9842_s1 + $0x308] ss:$20 sps:$4 sm:$0xff]   ;;  %v7497_v12 = vld [vmem:[%s9842_s1 + $0x880] ss:$20 sps:$4 sm:$0xff]  }
 0x207   :  { %6346 = vmatpush3.bf16.msra.mxu0 %v7444_v39  ;;  %6368 = vmatpush3.bf16.msra.mxu1 %v7445_v40  ;;  %v7498_v39 = vld [vmem:[%s9842_s1 + $0x768] ss:$20 sps:$4 sm:$0xff]  }
 0x208   :  { %6347 = vmatprep.subr.bf16.mxu0 %v7446_v43  ;;  %6369 = vmatprep.subr.bf16.mxu1 %v7447_v44  ;;  %v7499_v40 = vld [vmem:[%s9842_s1 + $0x9e8] ss:$20 sps:$4 sm:$0xff]  }
 0x209   :  { %v7500_v43 = vld [vmem:[%s9842_s1 + $0x628] ss:$20 sps:$4 sm:$0xff]  }
 0x20a   :  { %v7501_v44 = vld [vmem:[%s9842_s1 + $0x8a8] ss:$20 sps:$4 sm:$0xff]  }
 0x20b   :  { %6348 = vmatpush3.bf16.msra.mxu0 %v7448_v45  ;;  %6370 = vmatpush3.bf16.msra.mxu1 %v7449_v31  ;;  %v7502_v45 = vld [vmem:[%s9842_s1 + $0xb50] ss:$20 sps:$4 sm:$0xff]  }
 0x20c   :  { %6349 = vmatprep.subr.bf16.mxu0 %v7450_v47  ;;  %6371 = vmatprep.subr.bf16.mxu1 %v7451_v49  ;;  %v7503_v31 = vld [vmem:[%s9842_s1 + $0xdd0] ss:$20 sps:$4 sm:$0xff]  }
 0x20d   :  { %v7504_v47 = vld [vmem:[%s9842_s1 + $0xa10] ss:$20 sps:$4 sm:$0xff]  }
 0x20e   :  { %v7505_v49 = vld [vmem:[%s9842_s1 + $0xc90] ss:$20 sps:$4 sm:$0xff]  }
 0x20f   :  { %6350 = vmatpush3.bf16.msra.mxu0 %v7452_v48  ;;  %6372 = vmatpush3.bf16.msra.mxu1 %v7453_v30  ;;  %v7506_v48 = vld [vmem:[%s9842_s1 + $0xb78] ss:$20 sps:$4 sm:$0xff]  }
 0x210   :  { %6351 = vmatprep.subr.bf16.mxu0 %v7454_v50  ;;  %6373 = vmatprep.subr.bf16.mxu1 %v7455_v51  ;;  %v7507_v30 = vld [vmem:[%s9842_s1 + $0xdf8] ss:$20 sps:$4 sm:$0xff]  }
 0x211   :  { %v7508_v50 = vld [vmem:[%s9842_s1 + $0xa38] ss:$20 sps:$4 sm:$0xff]  }
 0x212   :  { %v7509_v51 = vld [vmem:[%s9842_s1 + $0xcb8] ss:$20 sps:$4 sm:$0xff]  }
 0x213   :  { %6352 = vmatpush3.bf16.msra.mxu0 %v7456_v52  ;;  %6374 = vmatpush3.bf16.msra.mxu1 %v7457_v53  ;;  %v7510_v52 = vld [vmem:[%s9842_s1 + $0xba0] ss:$20 sps:$4 sm:$0xff]  }
 0x214   :  { %6353 = vmatprep.subr.bf16.mxu0 %v7458_v54  ;;  %6375 = vmatprep.subr.bf16.mxu1 %v7459_v55  ;;  %v7513_v53 = vld [vmem:[%s9842_s1 + $0xce0] ss:$20 sps:$4 sm:$0xff]   ;;  %v7514_v54 = vld [vmem:[%s9842_s1 + $0xbc8] ss:$20 sps:$4 sm:$0xff]  }
 0x215   :  { %v7517_v55 = vld [vmem:[%s9842_s1 + $0xd08] ss:$20 sps:$4 sm:$0xff]  }
 0x217   :  { %6354 = vmatpush3.bf16.msra.mxu0 %v7460_v56  ;;  %6376 = vmatpush3.bf16.msra.mxu1 %v7461_v57  ;;  %v7518_v56 = vld [vmem:[%s9842_s1 + $0xbf0] ss:$20 sps:$4 sm:$0xff]  }
 0x218   :  { %6355 = vmatprep.subr.bf16.mxu0 %v7462_v60  ;;  %6377 = vmatprep.subr.bf16.mxu1 %v7463_v61  ;;  %v7519_v57 = vld [vmem:[%s9842_s1 + $0xe70] ss:$20 sps:$4 sm:$0xff]  }
 0x219   :  { %v7520_v60 = vld [vmem:[%s9842_s1 + $0xab0] ss:$20 sps:$4 sm:$0xff]  }
 0x21a   :  { %v7521_v61 = vld [vmem:[%s9842_s1 + $0xd30] ss:$20 sps:$4 sm:$0xff]  }
 0x21b   :  { %6356 = vmatpush3.bf16.msra.mxu0 %v7464_v41  ;;  %6378 = vmatpush3.bf16.msra.mxu1 %v7465_v63  ;;  %v7522_v41 = vld [vmem:[%s9842_s1 + $0xc18] ss:$20 sps:$4 sm:$0xff]  }
 0x21c   :  { %6357 = vmatprep.subr.bf16.mxu0 %v7466_v0  ;;  %6379 = vmatprep.subr.bf16.mxu1 %v7467_v1  ;;  %v7523_v63 = vld [vmem:[%s9842_s1 + $0xe98] ss:$20 sps:$4 sm:$0xff]  }
 0x21d   :  { %v7524_v0 = vld [vmem:[%s9842_s1 + $0xad8] ss:$20 sps:$4 sm:$0xff]  }
 0x21e   :  { %v7525_v1 = vld [vmem:[%s9842_s1 + $0xd58] ss:$20 sps:$4 sm:$0xff]  }
 0x21f   :  { %6358 = vmatpush3.bf16.msra.mxu0 %v7468_v2  ;;  %6380 = vmatpush3.bf16.msra.mxu1 %v7469_v3  ;;  %v7526_v2 = vld [vmem:[%s9842_s1 + $0xc40] ss:$20 sps:$4 sm:$0xff]  }
 0x220   :  { %6387 = vmatprep.subr.bf16.mxu0 %v7470_v4  ;;  %6409 = vmatprep.subr.bf16.mxu1 %v7471_v6  ;;  %v7527_v3 = vld [vmem:[%s9842_s1 + $0xec0] ss:$20 sps:$4 sm:$0xff]  }
 0x221   :  { %v7528_v4 = vld [vmem:[%s9842_s1 + $0xb00] ss:$20 sps:$4 sm:$0xff]  }
 0x222   :  { %4897 = vmatmul.mubr.bf16.vlgmr.msra.gmra.mrb[4].mxu0 %v7846_v5  ;;  %4937 = vmatmul.mubr.bf16.vlgmr.msra.gmra.mrb[4].mxu1 %v8052_v9  ;;  %v7480_v5 = vld [vmem:[%s9842_s1 + $0x560] ss:$20 sps:$4 sm:$0xff]  }
 0x223   :  { %6388 = vmatpush3.bf16.msra.mxu0 %v7472_v7  ;;  %6410 = vmatpush3.bf16.msra.mxu1 %v7473_v8  ;;  %v7481_v9 = vld [vmem:[%s9842_s1 + $0x7e0] ss:$20 sps:$4 sm:$0xff]   ;;  %v7530_v7 = vld [vmem:[%s9842_s1 + $0xc68] ss:$20 sps:$4 sm:$0xff]  }
 0x224   :  { %6389 = vmatprep.subr.bf16.mxu0 %v7474_v10  ;;  %6411 = vmatprep.subr.bf16.mxu1 %v7475_v11  ;;  %v7529_v6 = vld [vmem:[%s9842_s1 + $0xd80] ss:$20 sps:$4 sm:$0xff]   ;;  %v7531_v8 = vld [vmem:[%s9842_s1 + $0xee8] ss:$20 sps:$4 sm:$0xff]  }
 0x225   :  { %4976 = vmatprep.mubr.bf16.mxu0 %v8073_v15  ;;  %5016 = vmatprep.mubr.bf16.mxu1 %v8282_v23  ;;  %v7483_v15 = vld [vmem:[%s9842_s1 + $0x948] ss:$20 sps:$4 sm:$0xff]  }
 0x226   :  { %v7484_v23 = vld [vmem:[%s9842_s1 + $0x588] ss:$20 sps:$4 sm:$0xff]  }
 0x227   :  { %6390 = vmatpush3.bf16.msra.mxu0 %v7476_v16  ;;  %6412 = vmatpush3.bf16.msra.mxu1 %v7477_v17  ;;  %v7532_v10 = vld [vmem:[%s9842_s1 + $0xb28] ss:$20 sps:$4 sm:$0xff]   ;;  %v7534_v16 = vld [vmem:[%s9842_s1 + $0x1050] ss:$20 sps:$4 sm:$0xff]  }
 0x228   :  { %6391 = vmatprep.subr.bf16.mxu0 %v7478_v59  ;;  %6413 = vmatprep.subr.bf16.mxu1 %v7479_v20  ;;  %v7533_v11 = vld [vmem:[%s9842_s1 + $0xda8] ss:$20 sps:$4 sm:$0xff]   ;;  %v7535_v17 = vld [vmem:[%s9842_s1 + $0x12d0] ss:$20 sps:$4 sm:$0xff]  }
 0x229   :  { %v7536_v59 = vld [vmem:[%s9842_s1 + $0xf10] ss:$20 sps:$4 sm:$0xff]  }
 0x22a   :  { %v7537_v20 = vld [vmem:[%s9842_s1 + $0x1190] ss:$20 sps:$4 sm:$0xff]  }
 0x22b   :  { %6392 = vmatpush3.bf16.msra.mxu0 %v7480_v5  ;;  %6414 = vmatpush3.bf16.msra.mxu1 %v7481_v9  ;;  %v7538_v5 = vld [vmem:[%s9842_s1 + $0x1078] ss:$20 sps:$4 sm:$0xff]  }
 0x22c   :  { %6393 = vmatprep.subr.bf16.mxu0 %v7482_v22  ;;  %6415 = vmatprep.subr.bf16.mxu1 %v7483_v15  ;;  %v7539_v9 = vld [vmem:[%s9842_s1 + $0x12f8] ss:$20 sps:$4 sm:$0xff]  }
 0x22d   :  { %v7540_v22 = vld [vmem:[%s9842_s1 + $0xf38] ss:$20 sps:$4 sm:$0xff]  }
 0x22e   :  { %v7541_v15 = vld [vmem:[%s9842_s1 + $0x11b8] ss:$20 sps:$4 sm:$0xff]  }
 0x22f   :  { %6394 = vmatpush3.bf16.msra.mxu0 %v7484_v23  ;;  %6416 = vmatpush3.bf16.msra.mxu1 %v7485_v13  ;;  %v7542_v23 = vld [vmem:[%s9842_s1 + $0x10a0] ss:$20 sps:$4 sm:$0xff]  }
 0x230   :  { %6395 = vmatprep.subr.bf16.mxu0 %v7486_v24  ;;  %6417 = vmatprep.subr.bf16.mxu1 %v7487_v25  ;;  %v7545_v13 = vld [vmem:[%s9842_s1 + $0x11e0] ss:$20 sps:$4 sm:$0xff]   ;;  %v7546_v24 = vld [vmem:[%s9842_s1 + $0x10c8] ss:$20 sps:$4 sm:$0xff]  }
 0x231   :  { %v7549_v25 = vld [vmem:[%s9842_s1 + $0x1208] ss:$20 sps:$4 sm:$0xff]  }
 0x233   :  { %6396 = vmatpush3.bf16.msra.mxu0 %v7488_v26  ;;  %6418 = vmatpush3.bf16.msra.mxu1 %v7489_v27  ;;  %v7550_v26 = vld [vmem:[%s9842_s1 + $0x10f0] ss:$20 sps:$4 sm:$0xff]  }
 0x234   :  { %6397 = vmatprep.subr.bf16.mxu0 %v7490_v28  ;;  %6419 = vmatprep.subr.bf16.mxu1 %v7491_v32  ;;  %v7551_v27 = vld [vmem:[%s9842_s1 + $0x1370] ss:$20 sps:$4 sm:$0xff]  }
 0x235   :  { %v7552_v28 = vld [vmem:[%s9842_s1 + $0xfb0] ss:$20 sps:$4 sm:$0xff]  }
 0x236   :  { %v7553_v32 = vld [vmem:[%s9842_s1 + $0x1230] ss:$20 sps:$4 sm:$0xff]  }
 0x237   :  { %6398 = vmatpush3.bf16.msra.mxu0 %v7492_v33  ;;  %6420 = vmatpush3.bf16.msra.mxu1 %v7493_v21  ;;  %v7554_v33 = vld [vmem:[%s9842_s1 + $0x1118] ss:$20 sps:$4 sm:$0xff]  }
 0x238   :  { %6399 = vmatprep.subr.bf16.mxu0 %v7494_v36  ;;  %6421 = vmatprep.subr.bf16.mxu1 %v7495_v37  ;;  %v7555_v21 = vld [vmem:[%s9842_s1 + $0x1398] ss:$20 sps:$4 sm:$0xff]  }
 0x239   :  { %v7556_v36 = vld [vmem:[%s9842_s1 + $0xfd8] ss:$20 sps:$4 sm:$0xff]  }
 0x23a   :  { %v7557_v37 = vld [vmem:[%s9842_s1 + $0x1258] ss:$20 sps:$4 sm:$0xff]  }
 0x23b   :  { %6400 = vmatpush3.bf16.msra.mxu0 %v7496_v38  ;;  %6422 = vmatpush3.bf16.msra.mxu1 %v7497_v12  ;;  %v7558_v38 = vld [vmem:[%s9842_s1 + $0x1140] ss:$20 sps:$4 sm:$0xff]  }
 0x23c   :  { %6401 = vmatprep.subr.bf16.mxu0 %v7498_v39  ;;  %6423 = vmatprep.subr.bf16.mxu1 %v7499_v40  ;;  %v7559_v12 = vld [vmem:[%s9842_s1 + $0x13c0] ss:$20 sps:$4 sm:$0xff]  }
 0x23d   :  { %v7560_v39 = vld [vmem:[%s9842_s1 + $0x1000] ss:$20 sps:$4 sm:$0xff]  }
 0x23e   :  { %v7561_v40 = vld [vmem:[%s9842_s1 + $0x1280] ss:$20 sps:$4 sm:$0xff]  }
 0x23f   :  { %6402 = vmatpush3.bf16.msra.mxu0 %v7500_v43  ;;  %6424 = vmatpush3.bf16.msra.mxu1 %v7501_v44  ;;  %v7562_v43 = vld [vmem:[%s9842_s1 + $0x1168] ss:$20 sps:$4 sm:$0xff]  }
 0x240   :  { %6431 = vmatprep.subr.bf16.mxu0 %v7502_v45  ;;  %6453 = vmatprep.subr.bf16.mxu1 %v7503_v31  ;;  %v7563_v44 = vld [vmem:[%s9842_s1 + $0x13e8] ss:$20 sps:$4 sm:$0xff]  }
 0x241   :  { %v7564_v45 = vld [vmem:[%s9842_s1 + $0x1028] ss:$20 sps:$4 sm:$0xff]  }
 0x242   :  { %4977 = vmatmul.mubr.bf16.vlgmr.msra.gmra.mrb[8].mxu0 %v8264_v19  ;;  %5017 = vmatmul.mubr.bf16.vlgmr.msra.gmra.mrb[8].mxu1 %v8473_v29  ;;  %v7511_v19 = vld [vmem:[%s9842_s1 + $0xe20] ss:$20 sps:$4 sm:$0xff]   ;;  %v7565_v31 = vld [vmem:[%s9842_s1 + $0x12a8] ss:$20 sps:$4 sm:$0xff]  }
 0x243   :  { %6432 = vmatpush3.bf16.msra.mxu0 %v7504_v47  ;;  %6454 = vmatpush3.bf16.msra.mxu1 %v7505_v49  ;;  %v7512_v29 = vld [vmem:[%s9842_s1 + $0xa60] ss:$20 sps:$4 sm:$0xff]  }
 0x244   :  { %6433 = vmatprep.subr.bf16.mxu0 %v7506_v48  ;;  %6455 = vmatprep.subr.bf16.mxu1 %v7507_v30  ;;  %v7566_v47 = vld [vmem:[%s9844_s3 + $0x40] sm:$0xff]  }
 0x245   :  { %5056 = vmatprep.mubr.bf16.mxu0 %v8491_v34  ;;  %5096 = vmatprep.mubr.bf16.mxu1 %v8700_v46  ;;  %v7515_v34 = vld [vmem:[%s9842_s1 + $0xe48] ss:$20 sps:$4 sm:$0xff]   ;;  %v7567_v49 = vld [vmem:[%s9844_s3 + $0xc0] sm:$0xff]  }
 0x246   :  { %v7516_v46 = vld [vmem:[%s9842_s1 + $0xa88] ss:$20 sps:$4 sm:$0xff]   ;;  %v7568_v48 = vld [vmem:[%s9844_s3] sm:$0xff]  }
 0x247   :  { %6434 = vmatpush3.bf16.msra.mxu0 %v7508_v50  ;;  %6456 = vmatpush3.bf16.msra.mxu1 %v7509_v51  ;;  %v7569_v30 = vld [vmem:[%s9844_s3 + $0x80] sm:$0xff]   ;;  %v7570_v50 = vld [vmem:[%s9844_s3 + $0x48] sm:$0xff]  }
 0x248   :  { %6435 = vmatprep.subr.bf16.mxu0 %v7510_v52  ;;  %6457 = vmatprep.subr.bf16.mxu1 %v7511_v19  ;;  %v7571_v51 = vld [vmem:[%s9844_s3 + $0xc8] sm:$0xff]  }
 0x249   :  { %v7572_v52 = vld [vmem:[%s9844_s3 + $0x8] sm:$0xff]  }
 0x24a   :  { %v7573_v19 = vld [vmem:[%s9844_s3 + $0x88] sm:$0xff]  }
 0x24b   :  { %6436 = vmatpush3.bf16.msra.mxu0 %v7512_v29  ;;  %6458 = vmatpush3.bf16.msra.mxu1 %v7513_v53  ;;  %v7574_v29 = vld [vmem:[%s9844_s3 + $0x50] sm:$0xff]  }
 0x24c   :  { %6437 = vmatprep.subr.bf16.mxu0 %v7514_v54  ;;  %6459 = vmatprep.subr.bf16.mxu1 %v7515_v34  ;;  %v7577_v53 = vld [vmem:[%s9844_s3 + $0x90] sm:$0xff]   ;;  %v7578_v54 = vld [vmem:[%s9844_s3 + $0x58] sm:$0xff]  }
 0x24d   :  { %v7579_v34 = vld [vmem:[%s9844_s3 + $0xd8] sm:$0xff]  }
 0x24f   :  { %6438 = vmatpush3.bf16.msra.mxu0 %v7516_v46  ;;  %6460 = vmatpush3.bf16.msra.mxu1 %v7517_v55  ;;  %v7580_v46 = vld [vmem:[%s9844_s3 + $0x18] sm:$0xff]  }
 0x250   :  { %6439 = vmatprep.subr.bf16.mxu0 %v7518_v56  ;;  %6461 = vmatprep.subr.bf16.mxu1 %v7519_v57  ;;  %v7581_v55 = vld [vmem:[%s9844_s3 + $0x98] sm:$0xff]   ;;  %v7582_v56 = vld [vmem:[%s9844_s3 + $0x60] sm:$0xff]  }
 0x251   :  { %v7583_v57 = vld [vmem:[%s9844_s3 + $0xe0] sm:$0xff]  }
 0x253   :  { %6440 = vmatpush3.bf16.msra.mxu0 %v7520_v60  ;;  %6462 = vmatpush3.bf16.msra.mxu1 %v7521_v61  ;;  %v7584_v60 = vld [vmem:[%s9844_s3 + $0x20] sm:$0xff]  }
 0x254   :  { %6441 = vmatprep.subr.bf16.mxu0 %v7522_v41  ;;  %6463 = vmatprep.subr.bf16.mxu1 %v7523_v63  ;;  %v7585_v61 = vld [vmem:[%s9844_s3 + $0xa0] sm:$0xff]   ;;  %v7586_v41 = vld [vmem:[%s9844_s3 + $0x68] sm:$0xff]  }
 0x255   :  { %v7587_v63 = vld [vmem:[%s9844_s3 + $0xe8] sm:$0xff]  }
 0x257   :  { %6442 = vmatpush3.bf16.msra.mxu0 %v7524_v0  ;;  %6464 = vmatpush3.bf16.msra.mxu1 %v7525_v1  ;;  %v7588_v0 = vld [vmem:[%s9844_s3 + $0x28] sm:$0xff]  }
 0x258   :  { %6443 = vmatprep.subr.bf16.mxu0 %v7526_v2  ;;  %6465 = vmatprep.subr.bf16.mxu1 %v7527_v3  ;;  %v7589_v1 = vld [vmem:[%s9844_s3 + $0xa8] sm:$0xff]   ;;  %v7590_v2 = vld [vmem:[%s9844_s3 + $0x70] sm:$0xff]  }
 0x259   :  { %v7591_v3 = vld [vmem:[%s9844_s3 + $0xf0] sm:$0xff]  }
 0x25b   :  { %6444 = vmatpush3.bf16.msra.mxu0 %v7528_v4  ;;  %6466 = vmatpush3.bf16.msra.mxu1 %v7529_v6  ;;  %v7592_v4 = vld [vmem:[%s9844_s3 + $0x30] sm:$0xff]  }
 0x25c   :  { %6445 = vmatprep.subr.bf16.mxu0 %v7530_v7  ;;  %6467 = vmatprep.subr.bf16.mxu1 %v7531_v8  ;;  %v7593_v6 = vld [vmem:[%s9844_s3 + $0xb0] sm:$0xff]   ;;  %v7594_v7 = vld [vmem:[%s9844_s3 + $0x78] sm:$0xff]  }
 0x25d   :  { %v7595_v8 = vld [vmem:[%s9844_s3 + $0xf8] sm:$0xff]  }
 0x25f   :  { %6446 = vmatpush3.bf16.msra.mxu0 %v7532_v10  ;;  %6468 = vmatpush3.bf16.msra.mxu1 %v7533_v11  ;;  %v7596_v10 = vld [vmem:[%s9844_s3 + $0x38] sm:$0xff]  }
 0x260   :  { %6475 = vmatprep.subr.bf16.mxu0 %v7534_v16  ;;  %6497 = vmatprep.subr.bf16.mxu1 %v7535_v17  ;;  %v7597_v11 = vld [vmem:[%s9844_s3 + $0xb8] sm:$0xff]   ;;  %v7606_v16 = vmov 0.0   ;;  %v799_v17 = vlaneseq }
 0x262   :  { %5057 = vmatmul.mubr.bf16.vlgmr.msra.gmra.mrb[12].mxu0 %v8684_v42  ;;  %5097 = vmatmul.mubr.bf16.vlgmr.msra.gmra.mrb[12].mxu1 %v8894_v58  ;;  %v7543_v42 = vld [vmem:[%s9842_s1 + $0x1320] ss:$20 sps:$4 sm:$0xff]  }
 0x263   :  { %6476 = vmatpush3.bf16.msra.mxu0 %v7536_v59  ;;  %6498 = vmatpush3.bf16.msra.mxu1 %v7537_v20  ;;  %v7544_v58 = vld [vmem:[%s9842_s1 + $0xf60] ss:$20 sps:$4 sm:$0xff]   ;;  %v800_v59 = vshrl.u32 %v799_v17, 7 }
 0x264   :  { %6477 = vmatprep.subr.bf16.mxu0 %v7538_v5  ;;  %6499 = vmatprep.subr.bf16.mxu1 %v7539_v9  ;;  %v797_v9 = vld [vmem:[%s9845_s2] sm:$0x1f] }
 0x265   :  { %5136 = vmatprep.mubr.bf16.mxu0 %v8912_v62  ;;  %5176 = vmatprep.mubr.bf16.mxu1 %v9118_v18  ;;  %v7547_v62 = vld [vmem:[%s9842_s1 + $0x1348] ss:$20 sps:$4 sm:$0xff]   ;;  %v801_v20 = vsub.s32 0, %v800_v59  ;;  %v809_v5 = vsub.s32 2, %v800_v59 }
 0x266   :  { %v7548_v18 = vld [vmem:[%s9842_s1 + $0xf88] ss:$20 sps:$4 sm:$0xff]  }
 0x267   :  { %6478 = vmatpush3.bf16.msra.mxu0 %v7540_v22  ;;  %6500 = vmatpush3.bf16.msra.mxu1 %v7541_v15  ;;  %v805_v22 = vsub.s32 1, %v800_v59  ;;  %v813_v15 = vsub.s32 3, %v800_v59 }
 0x268   :  { %6479 = vmatprep.subr.bf16.mxu0 %v7542_v23  ;;  %6501 = vmatprep.subr.bf16.mxu1 %v7543_v42  ;;  %v802_v23 = vrot.slane %v797_v9, %v801_v20  ;;  %v810_v42 = vrot.slane %v797_v9, %v809_v5 }
 0x26b   :  { %6480 = vmatpush3.bf16.msra.mxu0 %v7544_v58  ;;  %6502 = vmatpush3.bf16.msra.mxu1 %v7545_v13  ;;  %v806_v58 = vrot.slane %v797_v9, %v805_v22  ;;  %v814_v13 = vrot.slane %v797_v9, %v813_v15 }
 0x26c   :  { %6481 = vmatprep.subr.bf16.mxu0 %v7546_v24  ;;  %6503 = vmatprep.subr.bf16.mxu1 %v7547_v62 }
 0x26f   :  { %6482 = vmatpush3.bf16.msra.mxu0 %v7548_v18  ;;  %6504 = vmatpush3.bf16.msra.mxu1 %v7549_v25 }
 0x270   :  { %6483 = vmatprep.subr.bf16.mxu0 %v7550_v26  ;;  %6505 = vmatprep.subr.bf16.mxu1 %v7551_v27 }
 0x273   :  { %6484 = vmatpush3.bf16.msra.mxu0 %v7552_v28  ;;  %6506 = vmatpush3.bf16.msra.mxu1 %v7553_v32 }
 0x274   :  { %6485 = vmatprep.subr.bf16.mxu0 %v7554_v33  ;;  %6507 = vmatprep.subr.bf16.mxu1 %v7555_v21 }
 0x277   :  { %6486 = vmatpush3.bf16.msra.mxu0 %v7556_v36  ;;  %6508 = vmatpush3.bf16.msra.mxu1 %v7557_v37 }
 0x278   :  { %6487 = vmatprep.subr.bf16.mxu0 %v7558_v38  ;;  %6509 = vmatprep.subr.bf16.mxu1 %v7559_v12 }
 0x27b   :  { %6488 = vmatpush3.bf16.msra.mxu0 %v7560_v39  ;;  %6510 = vmatpush3.bf16.msra.mxu1 %v7561_v40 }
 0x27c   :  { %6489 = vmatprep.subr.bf16.mxu0 %v7562_v43  ;;  %6511 = vmatprep.subr.bf16.mxu1 %v7563_v44 }
 0x27f   :  { %6490 = vmatpush3.bf16.msra.mxu0 %v7564_v45  ;;  %6512 = vmatpush3.bf16.msra.mxu1 %v7565_v31  ;;  %v7598_v45 = vld [vmem:[%s9844_s3 + $0x100] sm:$0xff]  }
 0x280   :  { %6519 = vmatprep.subr.bf16.mxu0 %v7566_v47  ;;  %6541 = vmatprep.subr.bf16.mxu1 %v7567_v49  ;;  %v7599_v49 = vld [vmem:[%s9844_s3 + $0x108] sm:$0xff]  }
 0x282   :  { %5137 = vmatmul.mubr.bf16.vlgmr.msra.gmra.mrb[16].mxu0 %v9108_v14  ;;  %5177 = vmatmul.mubr.bf16.vlgmr.msra.gmra.mrb[16].mxu1 %v9306_v35  ;;  %v7575_v14 = vld [vmem:[%s9844_s3 + $0xd0] sm:$0xff]  }
 0x283   :  { %6520 = vmatpush3.bf16.msra.mxu0 %v7568_v48  ;;  %6542 = vmatpush3.bf16.msra.mxu1 %v7569_v30  ;;  %v7576_v35 = vld [vmem:[%s9844_s3 + $0x10] sm:$0xff]   ;;  %v7601_v30 = vld [vmem:[%s9844_s3 + $0x118] sm:$0xff]  }
 0x284   :  { %6521 = vmatprep.subr.bf16.mxu0 %v7570_v50  ;;  %6543 = vmatprep.subr.bf16.mxu1 %v7571_v51  ;;  %v7600_v48 = vld [vmem:[%s9844_s3 + $0x110] sm:$0xff]   ;;  %v7602_v50 = vld [vmem:[%s9844_s3 + $0x120] sm:$0xff]   ;;  %v7603_v51 = vld [vmem:[%s9844_s3 + $0x128] sm:$0xff]  }
 0x287   :  { %6522 = vmatpush3.bf16.msra.mxu0 %v7572_v52  ;;  %6544 = vmatpush3.bf16.msra.mxu1 %v7573_v19  ;;  %v817_v52 = vsub.s32 4, %v800_v59  ;;  %v7604_v19 = vld [vmem:[%s9844_s3 + $0x130] sm:$0xff]  }
 0x288   :  { %6523 = vmatprep.subr.bf16.mxu0 %v7574_v29  ;;  %6545 = vmatprep.subr.bf16.mxu1 %v7575_v14 }
 0x28b   :  { %6524 = vmatpush3.bf16.msra.mxu0 %v7576_v35  ;;  %6546 = vmatpush3.bf16.msra.mxu1 %v7577_v53  ;;  %v818_v35 = vrot.slane %v797_v9, %v817_v52 }
 0x28c   :  { %6525 = vmatprep.subr.bf16.mxu0 %v7578_v54  ;;  %6547 = vmatprep.subr.bf16.mxu1 %v7579_v34 }
 0x28f   :  { %6526 = vmatpush3.bf16.msra.mxu0 %v7580_v46  ;;  %6548 = vmatpush3.bf16.msra.mxu1 %v7581_v55 }
 0x290   :  { %6527 = vmatprep.subr.bf16.mxu0 %v7582_v56  ;;  %6549 = vmatprep.subr.bf16.mxu1 %v7583_v57  ;;  %v7605_v57 = vld [vmem:[%s9844_s3 + $0x138] sm:$0xff]  }
 0x293   :  { %6528 = vmatpush3.bf16.msra.mxu0 %v7584_v60  ;;  %6550 = vmatpush3.bf16.msra.mxu1 %v7585_v61 }
 0x294   :  { %6529 = vmatprep.subr.bf16.mxu0 %v7586_v41  ;;  %6551 = vmatprep.subr.bf16.mxu1 %v7587_v63 }
 0x297   :  { %6530 = vmatpush3.bf16.msra.mxu0 %v7588_v0  ;;  %6552 = vmatpush3.bf16.msra.mxu1 %v7589_v1 }
 0x298   :  { %6531 = vmatprep.subr.bf16.mxu0 %v7590_v2  ;;  %6553 = vmatprep.subr.bf16.mxu1 %v7591_v3 }
 0x29b   :  { %6532 = vmatpush3.bf16.msra.mxu0 %v7592_v4  ;;  %6554 = vmatpush3.bf16.msra.mxu1 %v7593_v6 }
 0x29c   :  { %6533 = vmatprep.subr.bf16.mxu0 %v7594_v7  ;;  %6555 = vmatprep.subr.bf16.mxu1 %v7595_v8 }
 0x29f   :  { %6534 = vmatpush3.bf16.msra.mxu0 %v7596_v10  ;;  %6556 = vmatpush3.bf16.msra.mxu1 %v7597_v11 }
 0x2a0   :  { %6572 = vmatprep.subr.bf16.mxu0 %v7606_v16 }
 0x2d5   :  { %v4529_v24 = vpop.f32.mrb[0].mxu0  ;;  %v4857_v62 = vpop.f32.mrb[0].mxu1 }
 0x2d6   :  { %v6592_v18 = vadd.f32 %v4529_v24, %v802_v23  ;;  %v6594_v25 = vadd.f32 %v4857_v62, %v810_v42  ;;  %v4531_v26 = vpop.f32.mrb[1].mxu0  ;;  %v4859_v27 = vpop.f32.mrb[1].mxu1 }
 0x2d7   :  { %v6593_v28 = vadd.f32 %v4531_v26, %v806_v58  ;;  %v6595_v32 = vadd.f32 %v4859_v27, %v814_v13  ;;  %v4533_v33 = vpop.f32.mrb[2].mxu0  ;;  %v4861_v21 = vpop.f32.mrb[2].mxu1 }
 0x2d8   :  { %v5184_v36 = vmax.f32 %v6592_v18, 0.0  ;;  %v5186_v37 = vmax.f32 %v6594_v25, 0.0  ;;  %v4534_v38 = vpop.f32.mrb[3].mxu0  ;;  %v4862_v12 = vpop.f32.mrb[3].mxu1 }
 0x2d9   :  { %v5185_v39 = vmax.f32 %v6593_v28, 0.0  ;;  %v5187_v40 = vmax.f32 %v6595_v32, 0.0 }
 0x2da   :  { %v5189_v31 = vpack.c.bf16 %v5184_v36, %v5184_v36  ;;  %v5191_v47 = vpack.c.bf16 %v5186_v37, %v5186_v37 }
 0x2db   :  { %v5190_v43 = vpack.c.bf16 %v5185_v39, %v5185_v39  ;;  %v5192_v44 = vpack.c.bf16 %v5187_v40, %v5187_v40 }
 0x2dd   :  { %5553 = vmatprep.mubr.bf16.mxu0 %v5190_v43  ;;  %5593 = vmatprep.mubr.bf16.mxu1 %v5192_v44 }
 0x2de   :  { %5554 = vmatmul.mubr.bf16.vlgmr.msra.gmra.mrb[20].mxu0 %v5189_v31  ;;  %5594 = vmatmul.mubr.bf16.vlgmr.msra.gmra.mrb[20].mxu1 %v5191_v47 }
 0x2df   :  { %6573 = vmatpush3.bf16.msra.mxu0 %v7598_v45  ;;  %6588 = vmatprep.mubr.msk.bf16.mxu0 %vm7607_vm0, %v7606_v16  ;;  %v6302_v45 = vld [vmem:[%s9846_s4] ss:$0 sm:$0xff] }
 0x2e0   :  { %6574 = vmatprep.subr.bf16.mxu0 %v7606_v16 }
 0x2e3   :  { %6575 = vmatpush3.bf16.msra.mxu0 %v7599_v49 }
 0x2e4   :  { %6576 = vmatprep.subr.bf16.mxu0 %v7606_v16 }
 0x2e7   :  { %6577 = vmatpush3.bf16.msra.mxu0 %v7600_v48 }
 0x2e8   :  { %6578 = vmatprep.subr.bf16.mxu0 %v7606_v16 }
 0x2eb   :  { %6579 = vmatpush3.bf16.msra.mxu0 %v7601_v30 }
 0x2ec   :  { %6580 = vmatprep.subr.bf16.mxu0 %v7606_v16 }
 0x2ef   :  { %6581 = vmatpush3.bf16.msra.mxu0 %v7602_v50 }
 0x2f0   :  { %6582 = vmatprep.subr.bf16.mxu0 %v7606_v16 }
 0x2f3   :  { %6583 = vmatpush3.bf16.msra.mxu0 %v7603_v51 }
 0x2f4   :  { %6584 = vmatprep.subr.bf16.mxu0 %v7606_v16 }
 0x2f5   :  { %v6359_v29 = vpop.f32.mrb[4].mxu0  ;;  %v6381_v14 = vpop.f32.mrb[4].mxu1 }
 0x2f6   :  { %v6360_v53 = vpop.f32.mrb[5].mxu0  ;;  %v6382_v54 = vpop.f32.mrb[5].mxu1 }
 0x2f7   :  { %v6361_v34 = vadd.f32 %v6360_v53, %v6359_v29  ;;  %v6383_v46 = vadd.f32 %v6382_v54, %v6381_v14  ;;  %v6362_v55 = vpop.f32.mrb[6].mxu0  ;;  %v6384_v56 = vpop.f32.mrb[6].mxu1  ;;  %6585 = vmatpush3.bf16.msra.mxu0 %v7604_v19 }
 0x2f8   :  { %v6363_v60 = vpop.f32.mrb[7].mxu0  ;;  %v6385_v61 = vpop.f32.mrb[7].mxu1  ;;  %6586 = vmatprep.subr.bf16.mxu0 %v7606_v16 }
 0x2f9   :  { %v4899_v41 = vadd.f32 %v6361_v34, %v818_v35 }
 0x2fb   :  { %v4939_v63 = vadd.f32 %v6383_v46, %v4899_v41  ;;  %6587 = vmatpush3.bf16.msra.mxu0 %v7605_v57 }
 0x315   :  { %v6403_v0 = vpop.f32.mrb[8].mxu0  ;;  %v6425_v1 = vpop.f32.mrb[8].mxu1 }
 0x316   :  { %v6404_v2 = vpop.f32.mrb[9].mxu0  ;;  %v6426_v3 = vpop.f32.mrb[9].mxu1 }
 0x317   :  { %v6405_v4 = vadd.f32 %v6404_v2, %v6403_v0  ;;  %v6427_v6 = vadd.f32 %v6426_v3, %v6425_v1  ;;  %v6406_v7 = vpop.f32.mrb[10].mxu0  ;;  %v6428_v8 = vpop.f32.mrb[10].mxu1 }
 0x318   :  { %v6407_v10 = vpop.f32.mrb[11].mxu0  ;;  %v6429_v11 = vpop.f32.mrb[11].mxu1 }
 0x319   :  { %v4979_v17 = vadd.f32 %v6405_v4, %v4939_v63 }
 0x31b   :  { %v5019_v59 = vadd.f32 %v6427_v6, %v4979_v17 }
 0x335   :  { %v6447_v20 = vpop.f32.mrb[12].mxu0  ;;  %v6469_v5 = vpop.f32.mrb[12].mxu1 }
 0x336   :  { %v6448_v9 = vpop.f32.mrb[13].mxu0  ;;  %v6470_v22 = vpop.f32.mrb[13].mxu1 }
 0x337   :  { %v6449_v16 = vadd.f32 %v6448_v9, %v6447_v20  ;;  %v6471_v15 = vadd.f32 %v6470_v22, %v6469_v5  ;;  %v6450_v23 = vpop.f32.mrb[14].mxu0  ;;  %v6472_v42 = vpop.f32.mrb[14].mxu1 }
 0x338   :  { %v6451_v58 = vpop.f32.mrb[15].mxu0  ;;  %v6473_v13 = vpop.f32.mrb[15].mxu1 }
 0x339   :  { %v5059_v24 = vadd.f32 %v6449_v16, %v5019_v59 }
 0x33b   :  { %v5099_v62 = vadd.f32 %v6471_v15, %v5059_v24 }
 0x355   :  { %v6491_v18 = vpop.f32.mrb[16].mxu0  ;;  %v6513_v25 = vpop.f32.mrb[16].mxu1 }
 0x356   :  { %v6492_v26 = vpop.f32.mrb[17].mxu0  ;;  %v6514_v27 = vpop.f32.mrb[17].mxu1 }
 0x357   :  { %v6493_v28 = vadd.f32 %v6492_v26, %v6491_v18  ;;  %v6515_v32 = vadd.f32 %v6514_v27, %v6513_v25  ;;  %v6494_v33 = vpop.f32.mrb[18].mxu0  ;;  %v6516_v21 = vpop.f32.mrb[18].mxu1 }
 0x358   :  { %v6495_v36 = vpop.f32.mrb[19].mxu0  ;;  %v6517_v37 = vpop.f32.mrb[19].mxu1 }
 0x359   :  { %v5139_v38 = vadd.f32 %v6493_v28, %v5099_v62 }
 0x35b   :  { %v5179_v12 = vadd.f32 %v6515_v32, %v5139_v38 }
 0x35d   :  { %v5188_v39 = vmax.f32 %v5179_v12, 0.0 }
 0x35f   :  { %v5193_v40 = vpack.c.bf16 %v5188_v39, %v5188_v39 }
 0x361   :  { %6589 = vmatmul.mubr.bf16.vlgmr.msra.gmra.mrb[24].mxu0 %v5193_v40 }
 0x3b1   :  { %v6535_v43 = vpop.f32.mrb[20].mxu0  ;;  %v6557_v44 = vpop.f32.mrb[20].mxu1 }
 0x3b2   :  { %v6536_v31 = vpop.f32.mrb[21].mxu0  ;;  %v6558_v47 = vpop.f32.mrb[21].mxu1 }
 0x3b3   :  { %v6537_v49 = vadd.f32 %v6536_v31, %v6535_v43  ;;  %v6559_v48 = vadd.f32 %v6558_v47, %v6557_v44  ;;  %v6538_v30 = vpop.f32.mrb[22].mxu0  ;;  %v6560_v50 = vpop.f32.mrb[22].mxu1 }
 0x3b4   :  { %v6539_v51 = vpop.f32.mrb[23].mxu0  ;;  %v6561_v52 = vpop.f32.mrb[23].mxu1 }
 0x3b5   :  { %v5556_v19 = vadd.f32 %v6537_v49, %v6302_v45 }
 0x3b7   :  { %v5596_v29 = vadd.f32 %v6559_v48, %v5556_v19 }
 0x434   :  { %v5635_v14 = vpop.f32.mrb[24].mxu0 }
 0x435   :  { %v5636_v35 = vadd.f32 %v5635_v14, %v5596_v29  ;;  %v6590_v53 = vpop.f32.mrb[25].mxu0 }
 0x436   :  { %v5638_v54 = vpop.f32.mrb[26].mxu0 }
 0x437   :  { %5641 = vst [vmem:[%s9847_s5] sm:$0xff] %v5636_v35  ;;  %v6591_v34 = vpop.f32.mrb[27].mxu0 }

</bundles_post_ra>
